<compile_context>
chip_gen: v6e
topology: v6e:2x2x1
jax: 0.10.0
libtpu: 0.0.40
codegen_flags: <defaults>
</compile_context>

<pallas_src>
import functools

import jax
import jax.numpy as jnp
from jax.experimental import pallas as pl
from jax.experimental.pallas import tpu as pltpu

# Small, forward-consistent hyperparameters.
D_MODEL = 32
D_FFN = 64
N_HEADS = 4
HEAD_DIM = D_MODEL // N_HEADS
LN_EPS = 1e-5


def _cross_mha_fusion_kernel(
    tgt_ref, qpos_ref, sk_ref, kpos_ref,
    w_in_ref, b_in_ref, wo_ref, w1_ref, b1_ref, w2_ref, vecs_ref,
    out_ref, *, bt, lq, lk, n_heads,
):
  f32 = jnp.float32
  d = tgt_ref.shape[-1]
  dh = d // n_heads
  rq = bt * lq                      # query token rows in this block
  rk = bt * lk                      # key/value token rows in this block

  tgt = tgt_ref[...]                # (rq, d) flattened token rows
  q_in = tgt + qpos_ref[...]        # q = with_pos_embed(tgt, query_pos)
  sk = sk_ref[...]                  # (rk, d)
  k_in = sk + kpos_ref[...]         # k = with_pos_embed(sk, pos_sk); v = sk

  # --- fused in-projections: one matmul produces Q, K and V -----------------
  # [q_in ; k_in ; sk] @ [Wq | Wk | Wv]; only the diagonal (row-block,
  # col-block) pairs are used, which is exactly q_in@Wq, k_in@Wk, sk@Wv.
  x_in = jnp.concatenate([q_in, k_in, sk], axis=0)                 # (rq+2rk, d)
  proj = jnp.dot(x_in, w_in_ref[...], preferred_element_type=f32) + b_in_ref[...]

  Q = proj[:rq, 0:d].reshape(bt, lq, d)                            # (bt, lq, d)
  K = proj[rq:rq + rk, d:2 * d].reshape(bt, lk, d)                 # (bt, lk, d)
  V = proj[rq + rk:, 2 * d:3 * d].reshape(bt, lk, d)               # (bt, lk, d)

  # --- multi-head attention: each head's matmuls are batched over bt --------
  scale = 1.0 / (dh ** 0.5)
  head_outs = []
  for h in range(n_heads):          # static unroll; einsums below are bt-batched
    sl = slice(h * dh, (h + 1) * dh)
    s = jnp.einsum('bqd,bkd->bqk', Q[:, :, sl], K[:, :, sl],
                   preferred_element_type=f32) * scale             # (bt, lq, lk)
    s = s - jnp.max(s, axis=-1, keepdims=True)
    p = jnp.exp(s)
    # Exact divide: an approx EUP reciprocal could break the 1e-4 check.
    p = p / jnp.sum(p, axis=-1, keepdims=True)
    head_outs.append(jnp.einsum('bqk,bkd->bqd', p, V[:, :, sl],
                                preferred_element_type=f32))       # (bt, lq, dh)
  attn = jnp.concatenate(head_outs, axis=-1).reshape(rq, d)        # (rq, d)

  bo = vecs_ref[0:1, :]
  b2 = vecs_ref[1:2, :]
  g3 = vecs_ref[2:3, :]
  be3 = vecs_ref[3:4, :]

  attn = jnp.dot(attn, wo_ref[...], preferred_element_type=f32) + bo

  # --- forward_ffn -----------------------------------------------------------
  h1 = jnp.maximum(
      jnp.dot(attn, w1_ref[...], preferred_element_type=f32) + b1_ref[...], 0.0)
  tgt2 = jnp.dot(h1, w2_ref[...], preferred_element_type=f32) + b2
  y = tgt + tgt2

  # --- LayerNorm (norm3): single-pass stats, biased variance, eps = 1e-5 ----
  s1 = jnp.sum(y, axis=-1, keepdims=True)
  s2 = jnp.sum(y * y, axis=-1, keepdims=True)
  mu = s1 * (1.0 / d)
  var = s2 * (1.0 / d) - mu * mu
  yn = (y - mu) * jax.lax.rsqrt(var + LN_EPS)
  out_ref[...] = (yn * g3 + be3).astype(out_ref.dtype)


def _pick_block_batch(B, Lq):
  """Batch elements per grid step: a few hundred token rows per block, and
  keep >= 2 grid steps when possible so v7x's two TensorCores both get work."""
  target = max(1, 256 // max(Lq, 1))
  bt = min(B, target)
  while B % bt:
    bt -= 1
  if B > 1 and B // bt < 2:
    bt = max(d for d in range(1, B) if B % d == 0)   # largest proper divisor
  return bt


def cross_mha_fusion(tgt, query_pos, sk, pos_sk, params, *, block_batch=None):
  """tgt/query_pos: (B, Lq, D), sk/pos_sk: (B, Lk, D). Returns (tgt_out, sk)."""
  B, Lq, D = tgt.shape
  _, Lk, _ = sk.shape
  assert D == D_MODEL

  Bt = block_batch if block_batch is not None else _pick_block_batch(B, Lq)
  if B % Bt or (Bt != B and ((Bt * Lq) % 8 or (Bt * Lk) % 8)):
    Bt = B                      # fall back to one full-array block
  grid = (B // Bt,)

  # Flatten tokens to rows wrapper-side (free); block boundaries align with
  # whole batch elements so attention stays within a block.
  tgt2 = tgt.reshape(B * Lq, D)
  qpos2 = query_pos.reshape(B * Lq, D)
  sk2 = sk.reshape(B * Lk, D)
  kpos2 = pos_sk.reshape(B * Lk, D)

  # Pack weights -> fewer inputs / DMA descriptors per grid step.
  w_in = jnp.concatenate([params["wq"], params["wk"], params["wv"]], axis=1)  # (D, 3D)
  b_in = jnp.concatenate([params["bq"], params["bk"], params["bv"]], axis=1)  # (1, 3D)
  vecs = jnp.concatenate(
      [params["bo"], params["b2"], params["g3"], params["be3"]], axis=0)      # (4, D)
  weights = [w_in, b_in, params["wo"], params["w1"], params["b1"], params["w2"], vecs]

  row_spec_q = pl.BlockSpec((Bt * Lq, D), lambda g: (g, 0))
  row_spec_k = pl.BlockSpec((Bt * Lk, D), lambda g: (g, 0))

  def full_spec(w):
    return pl.BlockSpec(w.shape, lambda g: (0, 0))

  kernel = functools.partial(
      _cross_mha_fusion_kernel, bt=Bt, lq=Lq, lk=Lk, n_heads=N_HEADS)

  out2 = pl.pallas_call(
      kernel,
      out_shape=jax.ShapeDtypeStruct((B * Lq, D), tgt.dtype),
      grid_spec=pltpu.PrefetchScalarGridSpec(
          num_scalar_prefetch=0,
          grid=grid,
          in_specs=[row_spec_q, row_spec_q, row_spec_k, row_spec_k]
          + [full_spec(w) for w in weights],
          out_specs=row_spec_q,
      ),
      compiler_params=pltpu.CompilerParams(
          dimension_semantics=("parallel",)),
  )(tgt2, qpos2, sk2, kpos2, *weights)

  return out2.reshape(B, Lq, D), sk


def init_params(key):
  """Deterministic synthetic parameters (shapes mirror the PyTorch module)."""
  ks = jax.random.split(key, 10)
  scale = 0.1
  p = {
      # attention in-projections (stored as (in, out) so y = x @ W + b)
      "wq": scale * jax.random.normal(ks[0], (D_MODEL, D_MODEL), jnp.float32),
      "bq": scale * jax.random.normal(ks[1], (1, D_MODEL), jnp.float32),
      "wk": scale * jax.random.normal(ks[2], (D_MODEL, D_MODEL), jnp.float32),
      "bk": jnp.zeros((1, D_MODEL), jnp.float32),
      "wv": scale * jax.random.normal(ks[3], (D_MODEL, D_MODEL), jnp.float32),
      "bv": jnp.zeros((1, D_MODEL), jnp.float32),
      # attention out-projection
      "wo": scale * jax.random.normal(ks[4], (D_MODEL, D_MODEL), jnp.float32),
      "bo": scale * jax.random.normal(ks[5], (1, D_MODEL), jnp.float32),
      # FFN (linear1: d_model -> d_ffn, linear2: d_ffn -> d_model)
      "w1": scale * jax.random.normal(ks[6], (D_MODEL, D_FFN), jnp.float32),
      "b1": scale * jax.random.normal(ks[7], (1, D_FFN), jnp.float32),
      "w2": scale * jax.random.normal(ks[8], (D_FFN, D_MODEL), jnp.float32),
      "b2": scale * jax.random.normal(ks[9], (1, D_MODEL), jnp.float32),
      # norm3
      "g3": jnp.ones((1, D_MODEL), jnp.float32),
      "be3": jnp.zeros((1, D_MODEL), jnp.float32),
  }
  return p


def reference(tgt, query_pos, sk, pos_sk, p):
  """Pure-JAX reference matching torch semantics (eval mode)."""
  q = tgt + query_pos
  k = sk + pos_sk
  v = sk
  Q = q @ p["wq"] + p["bq"]
  K = k @ p["wk"] + p["bk"]
  V = v @ p["wv"] + p["bv"]
  B, Lq, _ = Q.shape
  Lk = K.shape[1]
  Qh = Q.reshape(B, Lq, N_HEADS, HEAD_DIM)
  Kh = K.reshape(B, Lk, N_HEADS, HEAD_DIM)
  Vh = V.reshape(B, Lk, N_HEADS, HEAD_DIM)
  S = jnp.einsum("bqhd,bkhd->bhqk", Qh, Kh) / (HEAD_DIM ** 0.5)
  P = jax.nn.softmax(S, axis=-1)
  O = jnp.einsum("bhqk,bkhd->bqhd", P, Vh).reshape(B, Lq, D_MODEL)
  attn = O @ p["wo"] + p["bo"]
  h1 = jax.nn.relu(attn @ p["w1"] + p["b1"])
  tgt2 = h1 @ p["w2"] + p["b2"]
  y = tgt + tgt2
  mu = jnp.mean(y, axis=-1, keepdims=True)
  var = jnp.mean((y - mu) ** 2, axis=-1, keepdims=True)
  yn = (y - mu) / jnp.sqrt(var + LN_EPS)
  return yn * p["g3"] + p["be3"]


if __name__ == "__main__":
  key = jax.random.PRNGKey(0)
  k_tgt, k_qpos, k_sk, k_kpos, k_par = jax.random.split(key, 5)

  B, Lq, Lk = 16, 8, 16      # -> Bt=8 per grid step, grid=(2,) (both v7x cores)
  tgt = jax.random.normal(k_tgt, (B, Lq, D_MODEL), jnp.float32)
  query_pos = jax.random.normal(k_qpos, (B, Lq, D_MODEL), jnp.float32)
  sk = jax.random.normal(k_sk, (B, Lk, D_MODEL), jnp.float32)
  pos_sk = jax.random.normal(k_kpos, (B, Lk, D_MODEL), jnp.float32)

  params = init_params(k_par)

  out_tgt, out_sk = cross_mha_fusion(tgt, query_pos, sk, pos_sk, params)
  out_tgt = jax.block_until_ready(out_tgt)

  ref = reference(tgt, query_pos, sk, pos_sk, params)
  assert jnp.allclose(out_tgt, ref, atol=1e-4, rtol=1e-4), "mismatch vs reference"
  assert jnp.array_equal(out_sk, sk)

  print("KERNEL_OK")
</pallas_src>

<mosaic_0001>
module attributes {stable_mosaic.version = 11 : i64} {
  func.func @_cross_mha_fusion_kernel(%arg0: i32, %arg1: memref<64x32xf32, #tpu.memory_space<vmem>>, %arg2: memref<64x32xf32, #tpu.memory_space<vmem>>, %arg3: memref<128x32xf32, #tpu.memory_space<vmem>>, %arg4: memref<128x32xf32, #tpu.memory_space<vmem>>, %arg5: memref<32x96xf32, #tpu.memory_space<vmem>>, %arg6: memref<1x96xf32, #tpu.memory_space<vmem>>, %arg7: memref<32x32xf32, #tpu.memory_space<vmem>>, %arg8: memref<32x64xf32, #tpu.memory_space<vmem>>, %arg9: memref<1x64xf32, #tpu.memory_space<vmem>>, %arg10: memref<64x32xf32, #tpu.memory_space<vmem>>, %arg11: memref<4x32xf32, #tpu.memory_space<vmem>>, %arg12: memref<64x32xf32, #tpu.memory_space<vmem>>) attributes {dimension_semantics = [#tpu.dimension_semantics<parallel>], iteration_bounds = array<i64: 2>, scalar_prefetch = 0 : i64, scratch_operands = 0 : i64, tpu.core_type = #tpu.core_type<tc>, window_params = [{transform_indices = @transform_0, window_bounds = array<i64: 64, 32>}, {transform_indices = @transform_1, window_bounds = array<i64: 64, 32>}, {transform_indices = @transform_2, window_bounds = array<i64: 128, 32>}, {transform_indices = @transform_3, window_bounds = array<i64: 128, 32>}, {pipeline_mode = #tpu.pipeline_mode<synchronous>, transform_indices = @transform_4, window_bounds = array<i64: 32, 96>}, {pipeline_mode = #tpu.pipeline_mode<synchronous>, transform_indices = @transform_5, window_bounds = array<i64: 1, 96>}, {pipeline_mode = #tpu.pipeline_mode<synchronous>, transform_indices = @transform_6, window_bounds = array<i64: 32, 32>}, {pipeline_mode = #tpu.pipeline_mode<synchronous>, transform_indices = @transform_7, window_bounds = array<i64: 32, 64>}, {pipeline_mode = #tpu.pipeline_mode<synchronous>, transform_indices = @transform_8, window_bounds = array<i64: 1, 64>}, {pipeline_mode = #tpu.pipeline_mode<synchronous>, transform_indices = @transform_9, window_bounds = array<i64: 64, 32>}, {pipeline_mode = #tpu.pipeline_mode<synchronous>, transform_indices = @transform_10, window_bounds = array<i64: 4, 32>}, {transform_indices = @transform_11, window_bounds = array<i64: 64, 32>}]} {
    %c0 = arith.constant 0 : index
    %c0_0 = arith.constant 0 : index
    %0 = vector.load %arg1[%c0, %c0_0] : memref<64x32xf32, #tpu.memory_space<vmem>>, vector<64x32xf32>
    %c0_1 = arith.constant 0 : index
    %c0_2 = arith.constant 0 : index
    %1 = vector.load %arg2[%c0_1, %c0_2] : memref<64x32xf32, #tpu.memory_space<vmem>>, vector<64x32xf32>
    %2 = arith.addf %0, %1 : vector<64x32xf32>
    %c0_3 = arith.constant 0 : index
    %c0_4 = arith.constant 0 : index
    %3 = vector.load %arg3[%c0_3, %c0_4] : memref<128x32xf32, #tpu.memory_space<vmem>>, vector<128x32xf32>
    %c0_5 = arith.constant 0 : index
    %c0_6 = arith.constant 0 : index
    %4 = vector.load %arg4[%c0_5, %c0_6] : memref<128x32xf32, #tpu.memory_space<vmem>>, vector<128x32xf32>
    %5 = arith.addf %3, %4 : vector<128x32xf32>
    %6 = tpu.concatenate %2, %5, %3 in 0 : vector<64x32xf32>, vector<128x32xf32>, vector<128x32xf32> -> vector<320x32xf32>
    %c0_7 = arith.constant 0 : index
    %c0_8 = arith.constant 0 : index
    %7 = vector.load %arg5[%c0_7, %c0_8] : memref<32x96xf32, #tpu.memory_space<vmem>>, vector<32x96xf32>
    %cst = arith.constant dense<0.000000e+00> : vector<320x96xf32>
    %8 = tpu.matmul %6, %7, %cst {dimension_numbers = #tpu.dot_dimension_numbers<[1], [0], [0], [1], [0, 0, 1, 1], [], []>} : vector<320x32xf32>, vector<32x96xf32>, vector<320x96xf32> -> vector<320x96xf32>
    %c0_9 = arith.constant 0 : index
    %c0_10 = arith.constant 0 : index
    %9 = vector.load %arg6[%c0_9, %c0_10] : memref<1x96xf32, #tpu.memory_space<vmem>>, vector<1x96xf32>
    %10 = vector.broadcast %9 : vector<1x96xf32> to vector<320x96xf32>
    %11 = arith.addf %8, %10 : vector<320x96xf32>
    %12 = vector.extract_strided_slice %11 {offsets = [0, 0], sizes = [64, 32], strides = [1, 1]} : vector<320x96xf32> to vector<64x32xf32>
    %13 = vector.shape_cast %12 : vector<64x32xf32> to vector<8x8x32xf32>
    %14 = vector.extract_strided_slice %11 {offsets = [64, 32], sizes = [128, 32], strides = [1, 1]} : vector<320x96xf32> to vector<128x32xf32>
    %15 = vector.shape_cast %14 : vector<128x32xf32> to vector<8x16x32xf32>
    %16 = vector.extract_strided_slice %11 {offsets = [192, 64], sizes = [128, 32], strides = [1, 1]} : vector<320x96xf32> to vector<128x32xf32>
    %17 = vector.shape_cast %16 : vector<128x32xf32> to vector<8x16x32xf32>
    %18 = vector.extract_strided_slice %13 {offsets = [0, 0, 0], sizes = [8, 8, 8], strides = [1, 1, 1]} : vector<8x8x32xf32> to vector<8x8x8xf32>
    %19 = vector.extract_strided_slice %15 {offsets = [0, 0, 0], sizes = [8, 16, 8], strides = [1, 1, 1]} : vector<8x16x32xf32> to vector<8x16x8xf32>
    "tpu.trace_start"() <{level = 10 : i32, message = "bqd,bkd->bqk"}> : () -> ()
    %cst_11 = arith.constant dense<0.000000e+00> : vector<8x8x16xf32>
    %20 = tpu.matmul %18, %19, %cst_11 {dimension_numbers = #tpu.dot_dimension_numbers<[2], [2], [1], [1], [0, 0, 0, 1, 1, 1], [0], [0]>} : vector<8x8x8xf32>, vector<8x16x8xf32>, vector<8x8x16xf32> -> vector<8x8x16xf32>
    "tpu.trace_stop"() : () -> ()
    %cst_12 = arith.constant 0.353553385 : f32
    %21 = vector.broadcast %cst_12 : f32 to vector<8x8x16xf32>
    %22 = arith.mulf %20, %21 : vector<8x8x16xf32>
    %cst_13 = arith.constant dense<0xFF800000> : vector<8x8xf32>
    %23 = vector.multi_reduction <maximumf>, %22, %cst_13 [2] : vector<8x8x16xf32> to vector<8x8xf32>
    %24 = vector.shape_cast %23 : vector<8x8xf32> to vector<8x8x1xf32>
    %25 = vector.broadcast %24 : vector<8x8x1xf32> to vector<8x8x16xf32>
    %26 = arith.subf %22, %25 : vector<8x8x16xf32>
    %27 = math.exp %26 : vector<8x8x16xf32>
    %cst_14 = arith.constant dense<0.000000e+00> : vector<8x8xf32>
    %28 = vector.multi_reduction <add>, %27, %cst_14 [2] : vector<8x8x16xf32> to vector<8x8xf32>
    %29 = vector.shape_cast %28 : vector<8x8xf32> to vector<8x8x1xf32>
    %30 = vector.broadcast %29 : vector<8x8x1xf32> to vector<8x8x16xf32>
    %31 = arith.divf %27, %30 : vector<8x8x16xf32>
    %32 = vector.extract_strided_slice %17 {offsets = [0, 0, 0], sizes = [8, 16, 8], strides = [1, 1, 1]} : vector<8x16x32xf32> to vector<8x16x8xf32>
    "tpu.trace_start"() <{level = 10 : i32, message = "bqk,bkd->bqd"}> : () -> ()
    %cst_15 = arith.constant dense<0.000000e+00> : vector<8x8x8xf32>
    %33 = tpu.matmul %31, %32, %cst_15 {dimension_numbers = #tpu.dot_dimension_numbers<[2], [1], [1], [2], [0, 0, 0, 1, 1, 2], [0], [0]>} : vector<8x8x16xf32>, vector<8x16x8xf32>, vector<8x8x8xf32> -> vector<8x8x8xf32>
    "tpu.trace_stop"() : () -> ()
    %34 = vector.extract_strided_slice %13 {offsets = [0, 0, 8], sizes = [8, 8, 8], strides = [1, 1, 1]} : vector<8x8x32xf32> to vector<8x8x8xf32>
    %35 = vector.extract_strided_slice %15 {offsets = [0, 0, 8], sizes = [8, 16, 8], strides = [1, 1, 1]} : vector<8x16x32xf32> to vector<8x16x8xf32>
    "tpu.trace_start"() <{level = 10 : i32, message = "bqd,bkd->bqk"}> : () -> ()
    %cst_16 = arith.constant dense<0.000000e+00> : vector<8x8x16xf32>
    %36 = tpu.matmul %34, %35, %cst_16 {dimension_numbers = #tpu.dot_dimension_numbers<[2], [2], [1], [1], [0, 0, 0, 1, 1, 1], [0], [0]>} : vector<8x8x8xf32>, vector<8x16x8xf32>, vector<8x8x16xf32> -> vector<8x8x16xf32>
    "tpu.trace_stop"() : () -> ()
    %cst_17 = arith.constant 0.353553385 : f32
    %37 = vector.broadcast %cst_17 : f32 to vector<8x8x16xf32>
    %38 = arith.mulf %36, %37 : vector<8x8x16xf32>
    %cst_18 = arith.constant dense<0xFF800000> : vector<8x8xf32>
    %39 = vector.multi_reduction <maximumf>, %38, %cst_18 [2] : vector<8x8x16xf32> to vector<8x8xf32>
    %40 = vector.shape_cast %39 : vector<8x8xf32> to vector<8x8x1xf32>
    %41 = vector.broadcast %40 : vector<8x8x1xf32> to vector<8x8x16xf32>
    %42 = arith.subf %38, %41 : vector<8x8x16xf32>
    %43 = math.exp %42 : vector<8x8x16xf32>
    %cst_19 = arith.constant dense<0.000000e+00> : vector<8x8xf32>
    %44 = vector.multi_reduction <add>, %43, %cst_19 [2] : vector<8x8x16xf32> to vector<8x8xf32>
    %45 = vector.shape_cast %44 : vector<8x8xf32> to vector<8x8x1xf32>
    %46 = vector.broadcast %45 : vector<8x8x1xf32> to vector<8x8x16xf32>
    %47 = arith.divf %43, %46 : vector<8x8x16xf32>
    %48 = vector.extract_strided_slice %17 {offsets = [0, 0, 8], sizes = [8, 16, 8], strides = [1, 1, 1]} : vector<8x16x32xf32> to vector<8x16x8xf32>
    "tpu.trace_start"() <{level = 10 : i32, message = "bqk,bkd->bqd"}> : () -> ()
    %cst_20 = arith.constant dense<0.000000e+00> : vector<8x8x8xf32>
    %49 = tpu.matmul %47, %48, %cst_20 {dimension_numbers = #tpu.dot_dimension_numbers<[2], [1], [1], [2], [0, 0, 0, 1, 1, 2], [0], [0]>} : vector<8x8x16xf32>, vector<8x16x8xf32>, vector<8x8x8xf32> -> vector<8x8x8xf32>
    "tpu.trace_stop"() : () -> ()
    %50 = vector.extract_strided_slice %13 {offsets = [0, 0, 16], sizes = [8, 8, 8], strides = [1, 1, 1]} : vector<8x8x32xf32> to vector<8x8x8xf32>
    %51 = vector.extract_strided_slice %15 {offsets = [0, 0, 16], sizes = [8, 16, 8], strides = [1, 1, 1]} : vector<8x16x32xf32> to vector<8x16x8xf32>
    "tpu.trace_start"() <{level = 10 : i32, message = "bqd,bkd->bqk"}> : () -> ()
    %cst_21 = arith.constant dense<0.000000e+00> : vector<8x8x16xf32>
    %52 = tpu.matmul %50, %51, %cst_21 {dimension_numbers = #tpu.dot_dimension_numbers<[2], [2], [1], [1], [0, 0, 0, 1, 1, 1], [0], [0]>} : vector<8x8x8xf32>, vector<8x16x8xf32>, vector<8x8x16xf32> -> vector<8x8x16xf32>
    "tpu.trace_stop"() : () -> ()
    %cst_22 = arith.constant 0.353553385 : f32
    %53 = vector.broadcast %cst_22 : f32 to vector<8x8x16xf32>
    %54 = arith.mulf %52, %53 : vector<8x8x16xf32>
    %cst_23 = arith.constant dense<0xFF800000> : vector<8x8xf32>
    %55 = vector.multi_reduction <maximumf>, %54, %cst_23 [2] : vector<8x8x16xf32> to vector<8x8xf32>
    %56 = vector.shape_cast %55 : vector<8x8xf32> to vector<8x8x1xf32>
    %57 = vector.broadcast %56 : vector<8x8x1xf32> to vector<8x8x16xf32>
    %58 = arith.subf %54, %57 : vector<8x8x16xf32>
    %59 = math.exp %58 : vector<8x8x16xf32>
    %cst_24 = arith.constant dense<0.000000e+00> : vector<8x8xf32>
    %60 = vector.multi_reduction <add>, %59, %cst_24 [2] : vector<8x8x16xf32> to vector<8x8xf32>
    %61 = vector.shape_cast %60 : vector<8x8xf32> to vector<8x8x1xf32>
    %62 = vector.broadcast %61 : vector<8x8x1xf32> to vector<8x8x16xf32>
    %63 = arith.divf %59, %62 : vector<8x8x16xf32>
    %64 = vector.extract_strided_slice %17 {offsets = [0, 0, 16], sizes = [8, 16, 8], strides = [1, 1, 1]} : vector<8x16x32xf32> to vector<8x16x8xf32>
    "tpu.trace_start"() <{level = 10 : i32, message = "bqk,bkd->bqd"}> : () -> ()
    %cst_25 = arith.constant dense<0.000000e+00> : vector<8x8x8xf32>
    %65 = tpu.matmul %63, %64, %cst_25 {dimension_numbers = #tpu.dot_dimension_numbers<[2], [1], [1], [2], [0, 0, 0, 1, 1, 2], [0], [0]>} : vector<8x8x16xf32>, vector<8x16x8xf32>, vector<8x8x8xf32> -> vector<8x8x8xf32>
    "tpu.trace_stop"() : () -> ()
    %66 = vector.extract_strided_slice %13 {offsets = [0, 0, 24], sizes = [8, 8, 8], strides = [1, 1, 1]} : vector<8x8x32xf32> to vector<8x8x8xf32>
    %67 = vector.extract_strided_slice %15 {offsets = [0, 0, 24], sizes = [8, 16, 8], strides = [1, 1, 1]} : vector<8x16x32xf32> to vector<8x16x8xf32>
    "tpu.trace_start"() <{level = 10 : i32, message = "bqd,bkd->bqk"}> : () -> ()
    %cst_26 = arith.constant dense<0.000000e+00> : vector<8x8x16xf32>
    %68 = tpu.matmul %66, %67, %cst_26 {dimension_numbers = #tpu.dot_dimension_numbers<[2], [2], [1], [1], [0, 0, 0, 1, 1, 1], [0], [0]>} : vector<8x8x8xf32>, vector<8x16x8xf32>, vector<8x8x16xf32> -> vector<8x8x16xf32>
    "tpu.trace_stop"() : () -> ()
    %cst_27 = arith.constant 0.353553385 : f32
    %69 = vector.broadcast %cst_27 : f32 to vector<8x8x16xf32>
    %70 = arith.mulf %68, %69 : vector<8x8x16xf32>
    %cst_28 = arith.constant dense<0xFF800000> : vector<8x8xf32>
    %71 = vector.multi_reduction <maximumf>, %70, %cst_28 [2] : vector<8x8x16xf32> to vector<8x8xf32>
    %72 = vector.shape_cast %71 : vector<8x8xf32> to vector<8x8x1xf32>
    %73 = vector.broadcast %72 : vector<8x8x1xf32> to vector<8x8x16xf32>
    %74 = arith.subf %70, %73 : vector<8x8x16xf32>
    %75 = math.exp %74 : vector<8x8x16xf32>
    %cst_29 = arith.constant dense<0.000000e+00> : vector<8x8xf32>
    %76 = vector.multi_reduction <add>, %75, %cst_29 [2] : vector<8x8x16xf32> to vector<8x8xf32>
    %77 = vector.shape_cast %76 : vector<8x8xf32> to vector<8x8x1xf32>
    %78 = vector.broadcast %77 : vector<8x8x1xf32> to vector<8x8x16xf32>
    %79 = arith.divf %75, %78 : vector<8x8x16xf32>
    %80 = vector.extract_strided_slice %17 {offsets = [0, 0, 24], sizes = [8, 16, 8], strides = [1, 1, 1]} : vector<8x16x32xf32> to vector<8x16x8xf32>
    "tpu.trace_start"() <{level = 10 : i32, message = "bqk,bkd->bqd"}> : () -> ()
    %cst_30 = arith.constant dense<0.000000e+00> : vector<8x8x8xf32>
    %81 = tpu.matmul %79, %80, %cst_30 {dimension_numbers = #tpu.dot_dimension_numbers<[2], [1], [1], [2], [0, 0, 0, 1, 1, 2], [0], [0]>} : vector<8x8x16xf32>, vector<8x16x8xf32>, vector<8x8x8xf32> -> vector<8x8x8xf32>
    "tpu.trace_stop"() : () -> ()
    %82 = tpu.concatenate %33, %49, %65, %81 in 2 : vector<8x8x8xf32>, vector<8x8x8xf32>, vector<8x8x8xf32>, vector<8x8x8xf32> -> vector<8x8x32xf32>
    %83 = vector.shape_cast %82 : vector<8x8x32xf32> to vector<64x32xf32>
    %c0_31 = arith.constant 0 : index
    %c0_32 = arith.constant 0 : index
    %84 = vector.load %arg11[%c0_31, %c0_32] : memref<4x32xf32, #tpu.memory_space<vmem>>, vector<1x32xf32>
    %c1 = arith.constant 1 : index
    %c0_33 = arith.constant 0 : index
    %85 = vector.load %arg11[%c1, %c0_33] : memref<4x32xf32, #tpu.memory_space<vmem>>, vector<1x32xf32>
    %c2 = arith.constant 2 : index
    %c0_34 = arith.constant 0 : index
    %86 = vector.load %arg11[%c2, %c0_34] : memref<4x32xf32, #tpu.memory_space<vmem>>, vector<1x32xf32>
    %c3 = arith.constant 3 : index
    %c0_35 = arith.constant 0 : index
    %87 = vector.load %arg11[%c3, %c0_35] : memref<4x32xf32, #tpu.memory_space<vmem>>, vector<1x32xf32>
    %c0_36 = arith.constant 0 : index
    %c0_37 = arith.constant 0 : index
    %88 = vector.load %arg7[%c0_36, %c0_37] : memref<32x32xf32, #tpu.memory_space<vmem>>, vector<32x32xf32>
    %cst_38 = arith.constant dense<0.000000e+00> : vector<64x32xf32>
    %89 = tpu.matmul %83, %88, %cst_38 {dimension_numbers = #tpu.dot_dimension_numbers<[1], [0], [0], [1], [0, 0, 1, 1], [], []>} : vector<64x32xf32>, vector<32x32xf32>, vector<64x32xf32> -> vector<64x32xf32>
    %90 = vector.broadcast %84 : vector<1x32xf32> to vector<64x32xf32>
    %91 = arith.addf %89, %90 : vector<64x32xf32>
    %c0_39 = arith.constant 0 : index
    %c0_40 = arith.constant 0 : index
    %92 = vector.load %arg8[%c0_39, %c0_40] : memref<32x64xf32, #tpu.memory_space<vmem>>, vector<32x64xf32>
    %cst_41 = arith.constant dense<0.000000e+00> : vector<64x64xf32>
    %93 = tpu.matmul %91, %92, %cst_41 {dimension_numbers = #tpu.dot_dimension_numbers<[1], [0], [0], [1], [0, 0, 1, 1], [], []>} : vector<64x32xf32>, vector<32x64xf32>, vector<64x64xf32> -> vector<64x64xf32>
    %c0_42 = arith.constant 0 : index
    %c0_43 = arith.constant 0 : index
    %94 = vector.load %arg9[%c0_42, %c0_43] : memref<1x64xf32, #tpu.memory_space<vmem>>, vector<1x64xf32>
    %95 = vector.broadcast %94 : vector<1x64xf32> to vector<64x64xf32>
    %96 = arith.addf %93, %95 : vector<64x64xf32>
    %cst_44 = arith.constant 0.000000e+00 : f32
    %97 = vector.broadcast %cst_44 : f32 to vector<64x64xf32>
    %98 = arith.maximumf %96, %97 : vector<64x64xf32>
    %c0_45 = arith.constant 0 : index
    %c0_46 = arith.constant 0 : index
    %99 = vector.load %arg10[%c0_45, %c0_46] : memref<64x32xf32, #tpu.memory_space<vmem>>, vector<64x32xf32>
    %cst_47 = arith.constant dense<0.000000e+00> : vector<64x32xf32>
    %100 = tpu.matmul %98, %99, %cst_47 {dimension_numbers = #tpu.dot_dimension_numbers<[1], [0], [0], [1], [0, 0, 1, 1], [], []>} : vector<64x64xf32>, vector<64x32xf32>, vector<64x32xf32> -> vector<64x32xf32>
    %101 = vector.broadcast %85 : vector<1x32xf32> to vector<64x32xf32>
    %102 = arith.addf %100, %101 : vector<64x32xf32>
    %103 = arith.addf %0, %102 : vector<64x32xf32>
    %cst_48 = arith.constant dense<0.000000e+00> : vector<64xf32>
    %104 = vector.multi_reduction <add>, %103, %cst_48 [1] : vector<64x32xf32> to vector<64xf32>
    %105 = vector.shape_cast %104 : vector<64xf32> to vector<64x1xf32>
    %106 = arith.mulf %103, %103 : vector<64x32xf32>
    %cst_49 = arith.constant dense<0.000000e+00> : vector<64xf32>
    %107 = vector.multi_reduction <add>, %106, %cst_49 [1] : vector<64x32xf32> to vector<64xf32>
    %108 = vector.shape_cast %107 : vector<64xf32> to vector<64x1xf32>
    %cst_50 = arith.constant 3.125000e-02 : f32
    %109 = vector.broadcast %cst_50 : f32 to vector<64x1xf32>
    %110 = arith.mulf %105, %109 : vector<64x1xf32>
    %cst_51 = arith.constant 3.125000e-02 : f32
    %111 = vector.broadcast %cst_51 : f32 to vector<64x1xf32>
    %112 = arith.mulf %108, %111 : vector<64x1xf32>
    %113 = arith.mulf %110, %110 : vector<64x1xf32>
    %114 = arith.subf %112, %113 : vector<64x1xf32>
    %115 = vector.broadcast %110 : vector<64x1xf32> to vector<64x32xf32>
    %116 = arith.subf %103, %115 : vector<64x32xf32>
    %cst_52 = arith.constant 9.99999974E-6 : f32
    %117 = vector.broadcast %cst_52 : f32 to vector<64x1xf32>
    %118 = arith.addf %114, %117 : vector<64x1xf32>
    %119 = math.rsqrt %118 : vector<64x1xf32>
    %120 = vector.broadcast %119 : vector<64x1xf32> to vector<64x32xf32>
    %121 = arith.mulf %116, %120 : vector<64x32xf32>
    %122 = vector.broadcast %86 : vector<1x32xf32> to vector<64x32xf32>
    %123 = arith.mulf %121, %122 : vector<64x32xf32>
    %124 = vector.broadcast %87 : vector<1x32xf32> to vector<64x32xf32>
    %125 = arith.addf %123, %124 : vector<64x32xf32>
    %c0_53 = arith.constant 0 : index
    %c0_54 = arith.constant 0 : index
    %126 = vector.load %arg12[%c0_53, %c0_54] : memref<64x32xf32, #tpu.memory_space<vmem>>, vector<64x32xf32>
    tpu.vector_store %arg12[%c0_53, %c0_54], %125 {strides = array<i32>} : memref<64x32xf32, #tpu.memory_space<vmem>>, vector<64x32xf32>,
    return
  }
  func.func @transform_0(%arg0: i32) -> (i32, i32) {
    %c0_i32 = arith.constant 0 : i32
    %c0_i32_0 = arith.constant 0 : i32
    return %arg0, %c0_i32 : i32, i32
  }
  func.func @transform_1(%arg0: i32) -> (i32, i32) {
    %c0_i32 = arith.constant 0 : i32
    %c0_i32_0 = arith.constant 0 : i32
    return %arg0, %c0_i32 : i32, i32
  }
  func.func @transform_2(%arg0: i32) -> (i32, i32) {
    %c0_i32 = arith.constant 0 : i32
    %c0_i32_0 = arith.constant 0 : i32
    return %arg0, %c0_i32 : i32, i32
  }
  func.func @transform_3(%arg0: i32) -> (i32, i32) {
    %c0_i32 = arith.constant 0 : i32
    %c0_i32_0 = arith.constant 0 : i32
    return %arg0, %c0_i32 : i32, i32
  }
  func.func @transform_4(%arg0: i32) -> (i32, i32) {
    %c0_i32 = arith.constant 0 : i32
    %c0_i32_0 = arith.constant 0 : i32
    %c0_i32_1 = arith.constant 0 : i32
    return %c0_i32, %c0_i32_0 : i32, i32
  }
  func.func @transform_5(%arg0: i32) -> (i32, i32) {
    %c0_i32 = arith.constant 0 : i32
    %c0_i32_0 = arith.constant 0 : i32
    %c0_i32_1 = arith.constant 0 : i32
    return %c0_i32, %c0_i32_0 : i32, i32
  }
  func.func @transform_6(%arg0: i32) -> (i32, i32) {
    %c0_i32 = arith.constant 0 : i32
    %c0_i32_0 = arith.constant 0 : i32
    %c0_i32_1 = arith.constant 0 : i32
    return %c0_i32, %c0_i32_0 : i32, i32
  }
  func.func @transform_7(%arg0: i32) -> (i32, i32) {
    %c0_i32 = arith.constant 0 : i32
    %c0_i32_0 = arith.constant 0 : i32
    %c0_i32_1 = arith.constant 0 : i32
    return %c0_i32, %c0_i32_0 : i32, i32
  }
  func.func @transform_8(%arg0: i32) -> (i32, i32) {
    %c0_i32 = arith.constant 0 : i32
    %c0_i32_0 = arith.constant 0 : i32
    %c0_i32_1 = arith.constant 0 : i32
    return %c0_i32, %c0_i32_0 : i32, i32
  }
  func.func @transform_9(%arg0: i32) -> (i32, i32) {
    %c0_i32 = arith.constant 0 : i32
    %c0_i32_0 = arith.constant 0 : i32
    %c0_i32_1 = arith.constant 0 : i32
    return %c0_i32, %c0_i32_0 : i32, i32
  }
  func.func @transform_10(%arg0: i32) -> (i32, i32) {
    %c0_i32 = arith.constant 0 : i32
    %c0_i32_0 = arith.constant 0 : i32
    %c0_i32_1 = arith.constant 0 : i32
    return %c0_i32, %c0_i32_0 : i32, i32
  }
  func.func @transform_11(%arg0: i32) -> (i32, i32) {
    %c0_i32 = arith.constant 0 : i32
    %c0_i32_0 = arith.constant 0 : i32
    return %arg0, %c0_i32 : i32, i32
  }
}

</mosaic_0001>

<bundles_post_ra>
// kernel: tpu_custom_call.1
= control target key start
LH: loop header
LB: loop body
LE: loop exit
PB: predicated region body
PF: predicated region fallthrough
CT: control target
= control target key end

     0   :  { %s8626_s17 = smov 0   ;;  %s10347_s0 = inlined_call_operand.vmem [shape: f32[128,32], index: 0, kind: input, shape index: {}]   ;;  %s10348_s1 = inlined_call_operand.vmem [shape: f32[128,32], index: 1, kind: input, shape index: {}]   ;;  %s10349_s2 = inlined_call_operand.vmem [shape: f32[256,32], index: 2, kind: input, shape index: {}]   ;;  %s10350_s3 = inlined_call_operand.vmem [shape: f32[256,32], index: 3, kind: input, shape index: {}]   ;;  %s10351_s4 = inlined_call_operand.vmem [shape: f32[32,96], index: 4, kind: input, shape index: {}]   ;;  %s10352_s5 = inlined_call_operand.vmem [shape: f32[1,96], index: 5, kind: input, shape index: {}]   ;;  %s10353_s6 = inlined_call_operand.vmem [shape: f32[32,32], index: 6, kind: input, shape index: {}]   ;;  %s10354_s7 = inlined_call_operand.vmem [shape: f32[32,64], index: 7, kind: input, shape index: {}]   ;;  %s10355_s8 = inlined_call_operand.vmem [shape: f32[1,64], index: 8, kind: input, shape index: {}]   ;;  %s10356_s9 = inlined_call_operand.vmem [shape: f32[64,32], index: 9, kind: input, shape index: {}]   ;;  %s10357_s10 = inlined_call_operand.vmem [shape: f32[4,32], index: 10, kind: input, shape index: {}]   ;;  %s10358_s11 = inlined_call_operand.vmem [shape: f32[128,32], index: 11, kind: output, shape index: {}]  }
   0x1 LB: > { %s7291_s18 = sadd.s32 4294967295, %s8548_s17   ;;  %p7295_p0 = scmp.ge.s32.totalorder %s8548_s17, 1  ;;  %s8548_s17 = sphi %s8626_s17, %s21_s17  }
   0x2   : > { %p371_p1 = scmp.lt.s32.totalorder %s8548_s17, 3 }
   0x4   : > { %p372_p2 = pnand %p7295_p0, %p371_p1 }
   0x6   : > { %375 = sbr.rel (%p372_p2) target bundleno = 3647 (0xe3f), region = 64 }
   0xb   : > { %v531_v0 = vld [vmem:[%s10351_s4 + $0x18] sm:$0xff]  ;;  %v530_v1 = vld [vmem:[%s10351_s4 + $0x10] sm:$0xff]  ;;  %s7296_s23 = sshll.u32 %s7291_s18, 3  ;;  %s7300_s24 = sshll.u32 %s7291_s18, 4  ;;  %v529_v2 = vld [vmem:[%s10351_s4 + $0x8] sm:$0xff]  ;;  %vm539_vm0 = vcmask 261120  }
   0xc   : > { %7782 = vmatprep.subr.mxu0 %v531_v0  ;;  %p427_p3 = scmp.lt.s32.totalorder %s7296_s23, 15  ;;  %p439_p4 = scmp.lt.s32.totalorder %s7300_s24, 31  ;;  %v528_v3 = vld [vmem:[%s10351_s4] sm:$0xff]  ;;  %vm8551_vm1 = vmmov 0   ;;  %vm931_vm2 = vcmask 64512   ;;  %vm1598_vm3 = vcmask 130048  }
   0xd   : > { %7783 = vmatpush3.msra.mxu0 %v531_v0  ;;  %s8552_s27 = smov 96   ;;  %s8553_s28 = smov 88   ;;  %vm6599_vm4 = vcmask 195584   ;;  %vm6909_vm5 = vcmask 523264  }
   0xe   : > { %7784 = vmatprep.subr.mxu0 %v530_v1  ;;  %s10457_s23 = smov (!%p427_p3, %s7296_s23), 15  ;;  %s10459_s24 = smov (!%p439_p4, %s7300_s24), 31 }
   0xf   : > { %7785 = vmatpush3.msra.mxu0 %v530_v1  ;;  %s8646_s29 = sshll.u32 %s10457_s23, 3  ;;  %s7301_s18 = sshll.u32 %s10459_s24, 3 }
  0x10   : > { %7786 = vmatprep.subr.mxu0 %v529_v2  ;;  %s8652_s13 = scalar_lea.vmem %s10347_s0, %s8646_s29  ;;  %s8658_s16 = scalar_lea.vmem %s10348_s1, %s8646_s29 }
  0x11   : > { %7787 = vmatpush3.msra.mxu0 %v529_v2  ;;  %v456_v4 = vld [vmem:[%s8652_s13] sm:$0xff]  ;;  %v457_v6 = vld [vmem:[%s8652_s13 + $0x8] sm:$0xff]  ;;  %v458_v9 = vld [vmem:[%s8652_s13 + $0x10] sm:$0xff]  ;;  %s8681_s21 = scalar_lea.vmem %s10349_s2, %s7301_s18  ;;  %s8686_s25 = scalar_lea.vmem %s10350_s3, %s7301_s18 }
  0x12   : > { %7788 = vmatprep.subr.mxu0 %v528_v3  ;;  %v464_v5 = vld [vmem:[%s8658_s16] sm:$0xff]  ;;  %v465_v8 = vld [vmem:[%s8658_s16 + $0x8] sm:$0xff]  ;;  %v466_v10 = vld [vmem:[%s8658_s16 + $0x10] sm:$0xff]  ;;  %s8554_s30 = smov 64   ;;  %s8555_s12 = smov 120  }
  0x13   : > { %7789 = vmatpush3.msra.mxu0 %v528_v3  ;;  %v472_v7 = vadd.f32 %v464_v5, %v456_v4  ;;  %v473_v11 = vadd.f32 %v465_v8, %v457_v6  ;;  %v474_v12 = vadd.f32 %v466_v10, %v458_v9  ;;  %v459_v13 = vld [vmem:[%s8652_s13 + $0x18] sm:$0xff]  ;;  %v460_v15 = vld [vmem:[%s8652_s13 + $0x20] sm:$0xff]  ;;  %v461_v19 = vld [vmem:[%s8652_s13 + $0x28] sm:$0xff]  ;;  %s8556_s14 = smov 56   ;;  %s8557_s15 = smov 80  }
  0x14   : > { %v467_v14 = vld [vmem:[%s8658_s16 + $0x18] sm:$0xff]  ;;  %v468_v16 = vld [vmem:[%s8658_s16 + $0x20] sm:$0xff]  ;;  %v469_v20 = vld [vmem:[%s8658_s16 + $0x28] sm:$0xff]  ;;  %s8559_s18 = smov 48   ;;  %s8560_s19 = smov 72  }
  0x15   : > { %7790 = vmatprep.mubr.msk.f32.mxu0 %vm539_vm0, %v472_v7  ;;  %v475_v17 = vadd.f32 %v467_v14, %v459_v13  ;;  %v476_v18 = vadd.f32 %v468_v16, %v460_v15  ;;  %v462_v21 = vld [vmem:[%s8652_s13 + $0x30] sm:$0xff]  ;;  %v477_v23 = vadd.f32 %v469_v20, %v461_v19  ;;  %v463_v25 = vld [vmem:[%s8652_s13 + $0x38] sm:$0xff]  ;;  %v8693_v27 = vld [vmem:[%s8681_s21] sm:$0xff]  ;;  %s8561_s20 = smov 104   ;;  %s8563_s22 = smov 8  }
  0x16   : > { %7791 = vmatmul.mubr.msk.f32.vlgmr.msra.gmra.mxu0 %vm539_vm0, %v473_v11  ;;  %v470_v22 = vld [vmem:[%s8658_s16 + $0x30] sm:$0xff]  ;;  %v471_v26 = vld [vmem:[%s8658_s16 + $0x38] sm:$0xff]  ;;  %v496_v28 = vld [vmem:[%s8686_s25] sm:$0xff]  ;;  %s8558_s16 = smov 112   ;;  %s8564_s23 = smov 16  }
  0x17   : > { %7793 = vmatprep.mubr.msk.f32.mxu0 %vm539_vm0, %v474_v12  ;;  %v478_v24 = vadd.f32 %v470_v22, %v462_v21  ;;  %v479_v29 = vadd.f32 %v471_v26, %v463_v25  ;;  %v512_v30 = vadd.f32 %v496_v28, %v8693_v27  ;;  %v8700_v31 = vld [vmem:[%s8681_s21 + $0x8] sm:$0xff]  ;;  %v482_v33 = vld [vmem:[%s8681_s21 + $0x10] sm:$0xff]  ;;  %v483_v37 = vld [vmem:[%s8681_s21 + $0x18] sm:$0xff]  ;;  %v10359_v12 = vmov 0.0  }
  0x18   : > { %v497_v32 = vld [vmem:[%s8686_s25 + $0x8] sm:$0xff]  ;;  %v498_v34 = vld [vmem:[%s8686_s25 + $0x10] sm:$0xff]  ;;  %v499_v38 = vld [vmem:[%s8686_s25 + $0x18] sm:$0xff]  ;;  %7857 = vmatprep.subr.mxu1 %v10359_v12  ;;  %7850 = vmatprep.subr.mxu0 %v10359_v12 }
  0x19   : > { %v513_v35 = vadd.f32 %v497_v32, %v8700_v31  ;;  %v514_v36 = vadd.f32 %v498_v34, %v482_v33  ;;  %v484_v39 = vld [vmem:[%s8681_s21 + $0x20] sm:$0xff]  ;;  %v515_v41 = vadd.f32 %v499_v38, %v483_v37  ;;  %v485_v43 = vld [vmem:[%s8681_s21 + $0x28] sm:$0xff]  ;;  %v486_v45 = vld [vmem:[%s8681_s21 + $0x30] sm:$0xff]  ;;  %7861 = vmatprep.mubr.msk.f32.mxu1 %vm8551_vm1, %v10359_v12 }
  0x1a   : > { %7794 = vmatmul.mubr.msk.f32.gmra.mxu0 %vm539_vm0, %v475_v17  ;;  %v500_v40 = vld [vmem:[%s8686_s25 + $0x20] sm:$0xff]  ;;  %v501_v44 = vld [vmem:[%s8686_s25 + $0x28] sm:$0xff]  ;;  %v502_v46 = vld [vmem:[%s8686_s25 + $0x30] sm:$0xff] }
  0x1b   : > { %7796 = vmatprep.mubr.msk.f32.mxu0 %vm539_vm0, %v476_v18  ;;  %v516_v42 = vadd.f32 %v500_v40, %v484_v39  ;;  %v517_v47 = vadd.f32 %v501_v44, %v485_v43  ;;  %v518_v48 = vadd.f32 %v502_v46, %v486_v45  ;;  %v487_v49 = vld [vmem:[%s8681_s21 + $0x38] sm:$0xff]  ;;  %v488_v51 = vld [vmem:[%s8681_s21 + $0x40] sm:$0xff]  ;;  %v489_v55 = vld [vmem:[%s8681_s21 + $0x48] sm:$0xff] }
  0x1c   : > { %v503_v50 = vld [vmem:[%s8686_s25 + $0x38] sm:$0xff]  ;;  %v504_v52 = vld [vmem:[%s8686_s25 + $0x40] sm:$0xff]  ;;  %v505_v56 = vld [vmem:[%s8686_s25 + $0x48] sm:$0xff] }
  0x1d   : > { %v519_v53 = vadd.f32 %v503_v50, %v487_v49  ;;  %v520_v54 = vadd.f32 %v504_v52, %v488_v51  ;;  %v490_v57 = vld [vmem:[%s8681_s21 + $0x50] sm:$0xff]  ;;  %v521_v59 = vadd.f32 %v505_v56, %v489_v55  ;;  %v491_v61 = vld [vmem:[%s8681_s21 + $0x58] sm:$0xff]  ;;  %v492_v63 = vld [vmem:[%s8681_s21 + $0x60] sm:$0xff] }
  0x1e   : > { %7797 = vmatmul.mubr.msk.f32.gmra.mxu0 %vm539_vm0, %v477_v23  ;;  %v506_v58 = vld [vmem:[%s8686_s25 + $0x50] sm:$0xff]  ;;  %v507_v62 = vld [vmem:[%s8686_s25 + $0x58] sm:$0xff]  ;;  %v508_v0 = vld [vmem:[%s8686_s25 + $0x60] sm:$0xff] }
  0x1f   : > { %7799 = vmatprep.mubr.msk.f32.mxu0 %vm539_vm0, %v478_v24  ;;  %v522_v60 = vadd.f32 %v506_v58, %v490_v57  ;;  %v523_v1 = vadd.f32 %v507_v62, %v491_v61  ;;  %v524_v2 = vadd.f32 %v508_v0, %v492_v63  ;;  %v493_v3 = vld [vmem:[%s8681_s21 + $0x68] sm:$0xff]  ;;  %v494_v5 = vld [vmem:[%s8681_s21 + $0x70] sm:$0xff]  ;;  %v495_v9 = vld [vmem:[%s8681_s21 + $0x78] sm:$0xff]  ;;  %s8562_s21 = smov 40  }
  0x20   : > { %v509_v4 = vld [vmem:[%s8686_s25 + $0x68] sm:$0xff]  ;;  %v510_v6 = vld [vmem:[%s8686_s25 + $0x70] sm:$0xff]  ;;  %v511_v10 = vld [vmem:[%s8686_s25 + $0x78] sm:$0xff] }
  0x21   : > { %v525_v7 = vadd.f32 %v509_v4, %v493_v3  ;;  %v526_v8 = vadd.f32 %v510_v6, %v494_v5  ;;  %v527_v11 = vadd.f32 %v511_v10, %v495_v9  ;;  %v8792_v23 = vld [vmem:[%s10352_s5] ss:$0 sm:$0xff] }
  0x22   : > { %7800 = vmatmul.mubr.msk.f32.gmra.mxu0 %vm539_vm0, %v479_v29 }
  0x23   : > { %7802 = vmatprep.mubr.msk.f32.mxu0 %vm539_vm0, %v512_v30 }
  0x26   : > { %7803 = vmatmul.mubr.msk.f32.gmra.mxu0 %vm539_vm0, %v513_v35 }
  0x27   : > { %7805 = vmatprep.mubr.msk.f32.mxu0 %vm539_vm0, %v514_v36 }
  0x2a   : > { %7806 = vmatmul.mubr.msk.f32.gmra.mxu0 %vm539_vm0, %v515_v41 }
  0x2b   : > { %7808 = vmatprep.mubr.msk.f32.mxu0 %vm539_vm0, %v516_v42 }
  0x2e   : > { %7809 = vmatmul.mubr.msk.f32.gmra.mxu0 %vm539_vm0, %v517_v47 }
  0x2f   : > { %7811 = vmatprep.mubr.msk.f32.mxu0 %vm539_vm0, %v518_v48 }
  0x32   : > { %7812 = vmatmul.mubr.msk.f32.gmra.mxu0 %vm539_vm0, %v519_v53 }
  0x33   : > { %7814 = vmatprep.mubr.msk.f32.mxu0 %vm539_vm0, %v520_v54 }
  0x36   : > { %7815 = vmatmul.mubr.msk.f32.gmra.mxu0 %vm539_vm0, %v521_v59 }
  0x37   : > { %7817 = vmatprep.mubr.msk.f32.mxu0 %vm539_vm0, %v522_v60 }
  0x3a   : > { %7818 = vmatmul.mubr.msk.f32.gmra.mxu0 %vm539_vm0, %v523_v1 }
  0x3b   : > { %7820 = vmatprep.mubr.msk.f32.mxu0 %vm539_vm0, %v524_v2 }
  0x3e   : > { %7821 = vmatmul.mubr.msk.f32.gmra.mxu0 %vm539_vm0, %v525_v7 }
  0x3f   : > { %7823 = vmatprep.mubr.msk.f32.mxu0 %vm539_vm0, %v526_v8 }
  0x42   : > { %7824 = vmatmul.mubr.msk.f32.gmra.mxu0 %vm539_vm0, %v527_v11 }
  0x43   : > { %7826 = vmatprep.mubr.msk.f32.mxu0 %vm539_vm0, %v8693_v27 }
  0x46   : > { %7827 = vmatmul.mubr.msk.f32.gmra.mxu0 %vm539_vm0, %v8700_v31 }
  0x47   : > { %7829 = vmatprep.mubr.msk.f32.mxu0 %vm539_vm0, %v482_v33 }
  0x4a   : > { %7830 = vmatmul.mubr.msk.f32.gmra.mxu0 %vm539_vm0, %v483_v37 }
  0x4b   : > { %7832 = vmatprep.mubr.msk.f32.mxu0 %vm539_vm0, %v484_v39 }
  0x4e   : > { %7833 = vmatmul.mubr.msk.f32.gmra.mxu0 %vm539_vm0, %v485_v43 }
  0x4f   : > { %7835 = vmatprep.mubr.msk.f32.mxu0 %vm539_vm0, %v486_v45 }
  0x52   : > { %7836 = vmatmul.mubr.msk.f32.gmra.mxu0 %vm539_vm0, %v487_v49 }
  0x53   : > { %7838 = vmatprep.mubr.msk.f32.mxu0 %vm539_vm0, %v488_v51 }
  0x56   : > { %7839 = vmatmul.mubr.msk.f32.gmra.mxu0 %vm539_vm0, %v489_v55 }
  0x57   : > { %7841 = vmatprep.mubr.msk.f32.mxu0 %vm539_vm0, %v490_v57 }
  0x5a   : > { %7842 = vmatmul.mubr.msk.f32.gmra.mxu0 %vm539_vm0, %v491_v61 }
  0x5b   : > { %7844 = vmatprep.mubr.msk.f32.mxu0 %vm539_vm0, %v492_v63 }
  0x5e   : > { %7845 = vmatmul.mubr.msk.f32.gmra.mxu0 %vm539_vm0, %v493_v3 }
  0x5f   : > { %7847 = vmatprep.mubr.msk.f32.mxu0 %vm539_vm0, %v494_v5 }
  0x62   : > { %7848 = vmatmul.mubr.msk.f32.gmra.mxu0 %vm539_vm0, %v495_v9 }
  0x63   : > { %7854 = vmatprep.mubr.msk.f32.mxu0 %vm8551_vm1, %v10359_v12 }
  0xd6   : > { %v8769_v13 = vpop.f32.mrf.mxu0 }
  0xd8   : > { %v8771_v14 = vpop.f32.mrf.mxu0 }
  0xda   : > { %v8773_v15 = vpop.f32.mrf.mxu0 }
  0xdc   : > { %v8775_v16 = vpop.f32.mrf.mxu0 }
  0xde   : > { %v8777_v17 = vpop.f32.mrf.mxu0 }
  0xe0   : > { %v8779_v18 = vpop.f32.mrf.mxu0 }
  0xe2   : > { %v8781_v19 = vpop.f32.mrf.mxu0 }
  0xe4   : > { %v8783_v20 = vpop.f32.mrf.mxu0 }
  0xe6   : > { %v7804_v21 = vpop.f32.mrf.mxu0 }
  0xe7   : > { %v8833_v41 = vadd.f32 %v7804_v21, %v8792_v23 }
  0xe8   : > { %v766_v22 = vpop.f32.mrf.mxu0 }
  0xe9   : > { %10395 = vst [vmem:[#allocation6_spill] sm:$0xff] %v8833_v41  ;;  %v8843_v45 = vadd.f32 %v8792_v23, %v766_v22 }
  0xea   : > { %v7807_v24 = vpop.f32.mrf.mxu0 }
  0xeb   : > { %v8795_v25 = vadd.f32 %v7807_v24, %v8792_v23  ;;  %10396 = vst [vmem:[#allocation7_spill] sm:$0xff] %v8843_v45 }
  0xec   : > { %v776_v26 = vpop.f32.mrf.mxu0 }
  0xed   : > { %10391 = vst [vmem:[#allocation2_spill] sm:$0xff] %v8795_v25  ;;  %1013 = vrot.lane.b32.xlu0 %v8795_v25, %s8552_s27  ;;  %v8800_v28 = vadd.f32 %v8792_v23, %v776_v26 }
  0xee   : > { %v7810_v27 = vpop.f32.mrf.mxu0 }
  0xef   : > { %10392 = vst [vmem:[#allocation3_spill] sm:$0xff] %v8800_v28  ;;  %v8803_v29 = vadd.f32 %v7810_v27, %v8792_v23 }
  0xf0   : > { %v786_v30 = vpop.f32.mrf.mxu0 }
  0xf1   : > { %10393 = vst [vmem:[#allocation4_spill] sm:$0xff] %v8803_v29  ;;  %1096 = vrot.lane.b32.xlu1 %v8803_v29, %s8552_s27  ;;  %1011 = vrot.lane.b32.xlu0 %v8800_v28, %s8552_s27  ;;  %v8810_v32 = vadd.f32 %v8792_v23, %v786_v30 }
  0xf2   : > { %v7813_v31 = vpop.f32.mrf.mxu0 }
  0xf3   : > { %v8813_v33 = vadd.f32 %v7813_v31, %v8792_v23 }
  0xf4   : > { %v796_v34 = vpop.f32.mrf.mxu0 }
  0xf5   : > { %10394 = vst [vmem:[#allocation5_spill] sm:$0xff] %v8813_v33  ;;  %1094 = vrot.lane.b32.xlu1 %v8810_v32, %s8552_s27  ;;  %1179 = vrot.lane.b32.xlu0 %v8813_v33, %s8552_s27  ;;  %v8820_v36 = vadd.f32 %v8792_v23, %v796_v34 }
  0xf6   : > { %v7816_v35 = vpop.f32.mrf.mxu0 }
  0xf7   : > { %v8823_v37 = vadd.f32 %v7816_v35, %v8792_v23 }
  0xf8   : > { %v806_v38 = vpop.f32.mrf.mxu0 }
  0xf9   : > { %1177 = vrot.lane.b32.xlu1 %v8820_v36, %s8552_s27  ;;  %1262 = vrot.lane.b32.xlu0 %v8823_v37, %s8552_s27  ;;  %v8830_v39 = vadd.f32 %v8792_v23, %v806_v38 }
  0xfa   : > { %v7819_v40 = vpop.f32.mrf.mxu0 }
  0xfb   : > { %v8840_v43 = vadd.f32 %v7819_v40, %v8792_v23 }
  0xfc   : > { %v816_v42 = vpop.f32.mrf.mxu0 }
  0xfd   : > { %929 = vrot.lane.b32.xlu1 %v8833_v41, %s8552_s27  ;;  %1260 = vrot.lane.b32.xlu0 %v8830_v39, %s8552_s27  ;;  %v8846_v47 = vadd.f32 %v8792_v23, %v816_v42 }
  0xfe   : > { %v7822_v44 = vpop.f32.mrf.mxu0 }
  0xff   : > { %v8853_v48 = vadd.f32 %v7822_v44, %v8792_v23 }
 0x100   : > { %v826_v46 = vpop.f32.mrf.mxu0 }
 0x101   : > { %1345 = vrot.lane.b32.xlu0 %v8840_v43, %s8552_s27  ;;  %927 = vrot.lane.b32.xlu1 %v8843_v45, %s8552_s27  ;;  %v8856_v50 = vadd.f32 %v8792_v23, %v826_v46  ;;  %v8967_v46 = vadd.f32 %v8769_v13, %v8792_v23  ;;  %v8979_v13 = vadd.f32 %v8792_v23, %v8775_v16 }
 0x102   : > { %v7825_v49 = vpop.f32.mrf.mxu0 }
 0x103   : > { %v8863_v51 = vadd.f32 %v7825_v49, %v8792_v23  ;;  %10406 = vst [vmem:[#allocation17_spill] sm:$0xff] %v8967_v46 }
 0x104   : > { %v836_v52 = vpop.f32.mrf.mxu0 }
 0x105   : > { %1428 = vrot.lane.b32.xlu0 %v8853_v48, %s8552_s27  ;;  %1343 = vrot.lane.b32.xlu1 %v8846_v47, %s8552_s27  ;;  %v8870_v53 = vadd.f32 %v8792_v23, %v836_v52 }
 0x106   : > { %v7828_v54 = vpop.f32.mrf.mxu0 }
 0x107   : > { %v8883_v55 = vadd.f32 %v7828_v54, %v8792_v23 }
 0x108   : > { %v846_v56 = vpop.f32.mrf.mxu0 }
 0x109   : > { %1511 = vrot.lane.b32.xlu0 %v8863_v51, %s8552_s27  ;;  %1426 = vrot.lane.b32.xlu1 %v8856_v50, %s8552_s27  ;;  %v8886_v57 = vadd.f32 %v8792_v23, %v846_v56 }
 0x10a   : > { %v7831_v58 = vpop.f32.mrf.mxu0 }
 0x10b   : > { %v8891_v59 = vadd.f32 %v7831_v58, %v8792_v23 }
 0x10c   : > { %v856_v60 = vpop.f32.mrf.mxu0 }
 0x10d   : > { %2339 = vrot.lane.b32.xlu0 %v8833_v41, %s8553_s28  ;;  %1509 = vrot.lane.b32.xlu1 %v8870_v53, %s8552_s27  ;;  %v8896_v61 = vadd.f32 %v8792_v23, %v856_v60  ;;  %v8994_v60 = vadd.f32 %v8792_v23, %v8771_v14 }
 0x10e   : > { %v7834_v62 = vpop.f32.mrf.mxu0 }
 0x10f   : > { %v8901_v63 = vadd.f32 %v7834_v62, %v8792_v23  ;;  %10407 = vst [vmem:[#allocation18_spill] sm:$0xff] %v8994_v60  ;;  %v8998_v62 = vadd.f32 %v8773_v15, %v8792_v23  ;;  %v9015_v15 = vadd.f32 %v8792_v23, %v8779_v18  ;;  %v9027_v18 = vadd.f32 %v8777_v17, %v8792_v23 }
 0x110   : > { %v866_v0 = vpop.f32.mrf.mxu0  ;;  %v9039_v17 = vadd.f32 %v8792_v23, %v8783_v20  ;;  %v9051_v20 = vadd.f32 %v8781_v19, %v8792_v23 }
 0x111   : > { %2337 = vrot.lane.b32.xlu0 %v8843_v45, %s8553_s28  ;;  %2421 = vrot.lane.b32.xlu1 %v8795_v25, %s8553_s28  ;;  %v8904_v1 = vadd.f32 %v8792_v23, %v866_v0 }
 0x112   : > { %v7837_v2 = vpop.f32.mrf.mxu0 }
 0x113   : > { %v8911_v3 = vadd.f32 %v7837_v2, %v8792_v23 }
 0x114   : > { %v876_v4 = vpop.f32.mrf.mxu0 }
 0x115   : > { %2419 = vrot.lane.b32.xlu1 %v8800_v28, %s8553_s28  ;;  %1689 = vrot.lane.b32.xlu0 %v8886_v57, %s8554_s30  ;;  %v8914_v5 = vadd.f32 %v8792_v23, %v876_v4 }
 0x116   : > { %v7840_v6 = vpop.f32.mrf.mxu0 }
 0x117   : > { %10397 = vst [vmem:[#allocation8_spill] sm:$0xff] %v8914_v5  ;;  %v8921_v7 = vadd.f32 %v7840_v6, %v8792_v23 }
 0x118   : > { %v886_v8 = vpop.f32.mrf.mxu0 }
 0x119   : > { %1691 = vrot.lane.b32.xlu1 %v8883_v55, %s8554_s30  ;;  %1853 = vrot.lane.b32.xlu0 %v8901_v63, %s8554_s30  ;;  %10398 = vst [vmem:[#allocation9_spill] sm:$0xff] %v8921_v7  ;;  %v8924_v9 = vadd.f32 %v8792_v23, %v886_v8 }
 0x11a   : > { %v7843_v10 = vpop.f32.mrf.mxu0 }
 0x11b   : > { %10399 = vst [vmem:[#allocation10_spill] sm:$0xff] %v8924_v9  ;;  %v8931_v11 = vadd.f32 %v7843_v10, %v8792_v23 }
 0x11c   : > { %v896_v21 = vpop.f32.mrf.mxu0 }
 0x11d   : > { %1772 = vrot.lane.b32.xlu1 %v8891_v59, %s8554_s30  ;;  %1934 = vrot.lane.b32.xlu0 %v8911_v3, %s8554_s30  ;;  %10400 = vst [vmem:[#allocation11_spill] sm:$0xff] %v8931_v11  ;;  %v8934_v22 = vadd.f32 %v8792_v23, %v896_v21 }
 0x11e   : > { %v7846_v24 = vpop.f32.mrf.mxu0 }
 0x11f   : > { %10401 = vst [vmem:[#allocation12_spill] sm:$0xff] %v8934_v22  ;;  %v8941_v26 = vadd.f32 %v7846_v24, %v8792_v23 }
 0x120   : > { %v906_v27 = vpop.f32.mrf.mxu0 }
 0x121   : > { %1770 = vrot.lane.b32.xlu1 %v8896_v61, %s8554_s30  ;;  %2015 = vrot.lane.b32.xlu0 %v8921_v7, %s8554_s30  ;;  %10402 = vst [vmem:[#allocation13_spill] sm:$0xff] %v8941_v26  ;;  %v8944_v30 = vadd.f32 %v8792_v23, %v906_v27 }
 0x122   : > { %v7849_v31 = vpop.f32.mrf.mxu0 }
 0x123   : > { %10403 = vst [vmem:[#allocation14_spill] sm:$0xff] %v8944_v30  ;;  %v8951_v34 = vadd.f32 %v7849_v31, %v8792_v23 }
 0x124   : > { %v916_v35 = vpop.f32.mrf.mxu0 }
 0x125   : > { %1851 = vrot.lane.b32.xlu1 %v8904_v1, %s8554_s30  ;;  %2013 = vrot.lane.b32.xlu0 %v8924_v9, %s8554_s30  ;;  %10404 = vst [vmem:[#allocation15_spill] sm:$0xff] %v8951_v34  ;;  %v8956_v38 = vadd.f32 %v8792_v23, %v916_v35 }
 0x127   : > { %10405 = vst [vmem:[#allocation16_spill] sm:$0xff] %v8956_v38 }
 0x129   : > { %1932 = vrot.lane.b32.xlu1 %v8914_v5, %s8554_s30  ;;  %2177 = vrot.lane.b32.xlu0 %v8941_v26, %s8554_s30 }
 0x12d   : > { %2096 = vrot.lane.b32.xlu1 %v8931_v11, %s8554_s30  ;;  %2175 = vrot.lane.b32.xlu0 %v8944_v30, %s8554_s30 }
 0x131   : > { %2094 = vrot.lane.b32.xlu1 %v8934_v22, %s8554_s30 }
 0x135   : > { %2258 = vrot.lane.b32.xlu1 %v8951_v34, %s8554_s30 }
 0x139   : > { %2256 = vrot.lane.b32.xlu1 %v8956_v38, %s8554_s30 }
 0x15f   : > { %v1014_v40 = vpop.permute.xlu0 %1013 }
 0x160   : > { %7858 = vmatpush3.xpose.msk.msra.mxu1 %vm931_vm2, %v1014_v40 }
 0x161   : > { %7859 = vmatprep.subr.mxu1 %v10359_v12 }
 0x163   : > { %v1097_v42 = vpop.permute.xlu1 %1096  ;;  %v1012_v44 = vpop.permute.xlu0 %1011 }
 0x164   : > { %7860 = vmatpush3.xpose.msk.msra.mxu1 %vm931_vm2, %v1012_v44 }
 0x165   : > { %7864 = vmatprep.subr.mxu1 %v10359_v12 }
 0x167   : > { %v1095_v49 = vpop.permute.xlu1 %1094  ;;  %7862 = vmatmul.mubr.msk.f32.vlgmr.msra.gmra.mxu1 %vm931_vm2, %v8967_v46  ;;  %v1180_v54 = vpop.permute.xlu0 %1179 }
 0x168   : > { %7865 = vmatpush3.xpose.msk.msra.mxu1 %vm931_vm2, %v1097_v42  ;;  %7868 = vmatprep.mubr.msk.f32.mxu1 %vm8551_vm1, %v10359_v12 }
 0x169   : > { %7866 = vmatprep.subr.mxu1 %v10359_v12 }
 0x16b   : > { %v1178_v52 = vpop.permute.xlu1 %1177  ;;  %v1263_v16 = vpop.permute.xlu0 %1262 }
 0x16c   : > { %7867 = vmatpush3.xpose.msk.msra.mxu1 %vm931_vm2, %v1095_v49 }
 0x16d   : > { %7871 = vmatprep.subr.mxu1 %v10359_v12 }
 0x16f   : > { %v930_v56 = vpop.permute.xlu1 %929  ;;  %7869 = vmatmul.mubr.msk.f32.vlgmr.msra.gmra.mxu1 %vm931_vm2, %v8979_v13  ;;  %v1261_v14 = vpop.permute.xlu0 %1260 }
 0x170   : > { %7851 = vmatpush3.xpose.msk.msra.mxu0 %vm931_vm2, %v930_v56  ;;  %7872 = vmatpush3.xpose.msk.msra.mxu1 %vm931_vm2, %v1180_v54 }
 0x171   : > { %7852 = vmatprep.subr.mxu0 %v10359_v12  ;;  %7873 = vmatprep.subr.mxu1 %v10359_v12 }
 0x172   : > { %7875 = vmatprep.mubr.msk.f32.mxu1 %vm8551_vm1, %v10359_v12 }
 0x173   : > { %v928_v58 = vpop.permute.xlu1 %927  ;;  %v1346_v0 = vpop.permute.xlu0 %1345 }
 0x174   : > { %7853 = vmatpush3.xpose.msk.msra.mxu0 %vm931_vm2, %v928_v58  ;;  %7874 = vmatpush3.xpose.msk.msra.mxu1 %vm931_vm2, %v1178_v52 }
 0x175   : > { %7878 = vmatprep.subr.mxu1 %v10359_v12  ;;  %7941 = vmatprep.subr.mxu0 %v10359_v12 }
 0x177   : > { %7855 = vmatmul.mubr.msk.f32.vlgmr.msra.gmra.mxu0 %vm931_vm2, %v8994_v60  ;;  %7876 = vmatmul.mubr.msk.f32.vlgmr.msra.gmra.mxu1 %vm931_vm2, %v8998_v62  ;;  %v1344_v2 = vpop.permute.xlu1 %1343  ;;  %v1429_v4 = vpop.permute.xlu0 %1428 }
 0x178   : > { %7879 = vmatpush3.xpose.msk.msra.mxu1 %vm931_vm2, %v1263_v16  ;;  %7882 = vmatprep.mubr.msk.f32.mxu1 %vm8551_vm1, %v10359_v12 }
 0x179   : > { %7880 = vmatprep.subr.mxu1 %v10359_v12  ;;  %7945 = vmatprep.mubr.msk.f32.mxu0 %vm8551_vm1, %v10359_v12 }
 0x17b   : > { %v1427_v6 = vpop.permute.xlu1 %1426  ;;  %v1512_v8 = vpop.permute.xlu0 %1511 }
 0x17c   : > { %7881 = vmatpush3.xpose.msk.msra.mxu1 %vm931_vm2, %v1261_v14 }
 0x17d   : > { %7885 = vmatprep.subr.mxu1 %v10359_v12 }
 0x17f   : > { %7883 = vmatmul.mubr.msk.f32.vlgmr.msra.gmra.mxu1 %vm931_vm2, %v9015_v15  ;;  %v1510_v10 = vpop.permute.xlu1 %1509  ;;  %v9060_v24 = vpop.permute.xlu0 %2339 }
 0x180   : > { %7886 = vmatpush3.xpose.msk.msra.mxu1 %vm931_vm2, %v1346_v0  ;;  %7889 = vmatprep.mubr.msk.f32.mxu1 %vm8551_vm1, %v10359_v12 }
 0x181   : > { %7887 = vmatprep.subr.mxu1 %v10359_v12 }
 0x183   : > { %v9058_v21 = vpop.permute.xlu1 %2421  ;;  %v9064_v31 = vpop.permute.xlu0 %2337 }
 0x184   : > { %7888 = vmatpush3.xpose.msk.msra.mxu1 %vm931_vm2, %v1344_v2  ;;  %10408 = vst [vmem:[#allocation19_spill] sm:$0xff] %v9064_v31 }
 0x185   : > { %7892 = vmatprep.subr.mxu1 %v10359_v12 }
 0x187   : > { %7890 = vmatmul.mubr.msk.f32.vlgmr.msra.gmra.mxu1 %vm931_vm2, %v9027_v18  ;;  %v9062_v27 = vpop.permute.xlu1 %2419  ;;  %v1690_v23 = vpop.permute.xlu0 %1689 }
 0x188   : > { %7893 = vmatpush3.xpose.msk.msra.mxu1 %vm931_vm2, %v1429_v4  ;;  %7896 = vmatprep.mubr.msk.f32.mxu1 %vm8551_vm1, %v10359_v12 }
 0x189   : > { %7894 = vmatprep.subr.mxu1 %v10359_v12 }
 0x18b   : > { %v1692_v35 = vpop.permute.xlu1 %1691 }
 0x18c   : > { %7895 = vmatpush3.xpose.msk.msra.mxu1 %vm931_vm2, %v1427_v6 }
 0x18d   : > { %7899 = vmatprep.subr.mxu1 %v10359_v12 }
 0x18f   : > { %7897 = vmatmul.mubr.msk.f32.vlgmr.msra.gmra.mxu1 %vm931_vm2, %v9039_v17  ;;  %v9067_v19 = vpop.permute.xlu1 %1772 }
 0x190   : > { %7900 = vmatpush3.xpose.msk.msra.mxu1 %vm931_vm2, %v1512_v8  ;;  %7903 = vmatprep.mubr.msk.f32.mxu1 %vm8551_vm1, %v10359_v12 }
 0x191   : > { %7901 = vmatprep.subr.mxu1 %v10359_v12 }
 0x193   : > { %v9070_v40 = vpop.permute.xlu1 %1770 }
 0x194   : > { %7902 = vmatpush3.xpose.msk.msra.mxu1 %vm931_vm2, %v1510_v10 }
 0x195   : > { %7906 = vmatprep.subr.mxu1 %v10359_v12 }
 0x197   : > { %7904 = vmatmul.mubr.msk.f32.vlgmr.msra.gmra.mxu1 %vm931_vm2, %v9051_v20  ;;  %v9072_v42 = vpop.permute.xlu1 %1851 }
 0x198   : > { %7910 = vmatprep.mubr.msk.f32.mxu1 %vm8551_vm1, %v10359_v12  ;;  %7907 = vmatpush3.msra.mxu1 %v1692_v35 }
 0x199   : > { %7908 = vmatprep.subr.mxu1 %v10359_v12 }
 0x19a   : > { %7909 = vmatpush3.msra.mxu1 %v1690_v23 }
 0x19b   : > { %7913 = vmatprep.subr.mxu1 %v10359_v12  ;;  %v9074_v44 = vpop.permute.xlu1 %1932 }
 0x19f   : > { %v2097_v49 = vpop.permute.xlu1 %2096 }
 0x1a0   : > { %7942 = vmatpush3.msra.mxu0 %v2097_v49 }
 0x1a1   : > { %7943 = vmatprep.subr.mxu0 %v10359_v12 }
 0x1a3   : > { %v2095_v52 = vpop.permute.xlu1 %2094 }
 0x1a4   : > { %7944 = vmatpush3.msra.mxu0 %v2095_v52 }
 0x1a5   : > { %7955 = vmatprep.subr.mxu0 %v10359_v12 }
 0x227   : > { %v1088_v54 = vpop.f32.mrf.mxu1 }
 0x228   : > { %v1591_v56 = vmul.f32 0.35355338, %v1088_v54 }
 0x229   : > { %v7863_v16 = vpop.f32.mrf.mxu1 }
 0x22a   : > { %v1602_v58 = vsel %vm1598_vm3, %v1591_v56, -inf }
 0x22b   : > { %1603 = vmax.xlane.f32.xlu1 %v1602_v58 }
 0x22f   : > { %v1171_v14 = vpop.f32.mrf.mxu1 }
 0x230   : > { %v9079_v35 = vmul.f32 0.35355338, %v1171_v14 }
 0x231   : > { %v7870_v0 = vpop.f32.mrf.mxu1 }
 0x232   : > { %v1605_v52 = vsel %vm1598_vm3, %v9079_v35, -inf }
 0x237   : > { %v1005_v2 = vpop.f32.mrf.mxu0  ;;  %v1254_v4 = vpop.f32.mrf.mxu1 }
 0x238   : > { %v1590_v6 = vmul.f32 0.35355338, %v1005_v2  ;;  %v1593_v49 = vmul.f32 0.35355338, %v1254_v4 }
 0x239   : > { %v7856_v8 = vpop.f32.mrf.mxu0  ;;  %v7877_v10 = vpop.f32.mrf.mxu1 }
 0x23a   : > { %v1599_v23 = vsel %vm1598_vm3, %v1590_v6, -inf  ;;  %v1608_v2 = vsel %vm1598_vm3, %v1593_v49, -inf }
 0x23b   : > { %1600 = vmax.xlane.f32.xlu0 %v1599_v23 }
 0x23f   : > { %v1337_v54 = vpop.f32.mrf.mxu1  ;;  %1606 = vmax.xlane.f32.xlu0 %v1605_v52 }
 0x240   : > { %v9084_v16 = vmul.f32 0.35355338, %v1337_v54 }
 0x241   : > { %v7884_v58 = vpop.f32.mrf.mxu1 }
 0x242   : > { %v1611_v0 = vsel %vm1598_vm3, %v9084_v16, -inf }
 0x243   : > { %1612 = vmax.xlane.f32.xlu1 %v1611_v0  ;;  %1609 = vmax.xlane.f32.xlu0 %v1608_v2  ;;  %v9096_v0 = vpop.permute.xlu0 %1853 }
 0x247   : > { %v1420_v14 = vpop.f32.mrf.mxu1  ;;  %v9098_v2 = vpop.permute.xlu0 %1934 }
 0x248   : > { %v1595_v8 = vmul.f32 0.35355338, %v1420_v14 }
 0x249   : > { %v7891_v10 = vpop.f32.mrf.mxu1 }
 0x24a   : > { %v1614_v4 = vsel %vm1598_vm3, %v1595_v8, -inf }
 0x24b   : > { %1615 = vmax.xlane.f32.xlu0 %v1614_v4  ;;  %v9102_v14 = vpop.permute.xlu0 %2015 }
 0x24f   : > { %v1503_v23 = vpop.f32.mrf.mxu1  ;;  %v9106_v4 = vpop.permute.xlu0 %2013 }
 0x250   : > { %v1596_v12 = vmul.f32 0.35355338, %v1503_v23 }
 0x251   : > { %v7898_v45 = vpop.f32.mrf.mxu1 }
 0x252   : > { %v1617_v52 = vsel %vm1598_vm3, %v1596_v12, -inf  ;;  %v9100_v45 = vpop.permute.xlu1 %2258 }
 0x253   : > { %1618 = vmax.xlane.f32.xlu1 %v1617_v52  ;;  %v9108_v52 = vpop.permute.xlu0 %2177 }
 0x256   : > { %v9104_v10 = vpop.permute.xlu1 %2256 }
 0x257   : > { %v1586_v54 = vpop.f32.mrf.mxu1 }
 0x258   : > { %v1597_v58 = vmul.f32 0.35355338, %v1586_v54  ;;  %v9110_v54 = vpop.permute.xlu0 %2175 }
 0x259   : > { %v7905_v28 = vpop.f32.mrf.mxu1 }
 0x25a   : > { %v1620_v41 = vsel %vm1598_vm3, %v1597_v58, -inf }
 0x25b   : > { %1621 = vmax.xlane.f32.xlu0 %v1620_v41 }
 0x264   : > { %2503 = vrot.lane.b32.xlu1 %v8803_v29, %s8553_s28 }
 0x271   : > { %2335 = vrot.lane.b32.xlu0 %v8994_v60, %s8555_s12 }
 0x2b4   : > { %v1604_v28 = vpop.xlane.xlu1 %1603 }
 0x2b5   : > { %v1624_v41 = vsub.f32 %v1591_v56, %v1604_v28 }
 0x2b7   : > { %v1633_v23 = vmul.f32 1.442695, %v1624_v41 }
 0x2b9   : > { %8390 = vpow2.f32 %v1633_v23 }
 0x2c4   : > { %v1601_v60 = vpop.xlane.xlu0 %1600 }
 0x2c5   : > { %v1623_v29 = vsub.f32 %v1590_v6, %v1601_v60 }
 0x2c6   : > { %v9112_v25 = vpop.eup %8390 }
 0x2c7   : > { %v1631_v30 = vmul.f32 1.442695, %v1623_v29  ;;  %v1650_v38 = vsel %vm1598_vm3, %v9112_v25, 0.0 }
 0x2c8   : > { %1651 = vadd.xlane.f32.xlu0 %v1650_v38  ;;  %v1607_v28 = vpop.xlane.xlu0 %1606 }
 0x2c9   : > { %8392 = vpow2.f32 %v1631_v30 }
 0x2cc   : > { %v1610_v41 = vpop.xlane.xlu0 %1609  ;;  %v1613_v22 = vpop.xlane.xlu1 %1612 }
 0x2cd   : > { %v1626_v60 = vsub.f32 %v1593_v49, %v1610_v41 }
 0x2cf   : > { %v1637_v23 = vmul.f32 1.442695, %v1626_v60 }
 0x2d1   : > { %8394 = vpow2.f32 %v1637_v23 }
 0x2d4   : > { %v1616_v6 = vpop.xlane.xlu0 %1615 }
 0x2d5   : > { %v1628_v29 = vsub.f32 %v1595_v8, %v1616_v6 }
 0x2d6   : > { %v9116_v26 = vpop.eup %8392 }
 0x2d7   : > { %v1647_v56 = vsel %vm1598_vm3, %v9116_v26, 0.0  ;;  %v1641_v30 = vmul.f32 1.442695, %v1628_v29 }
 0x2d8   : > { %1648 = vadd.xlane.f32.xlu1 %v1647_v56  ;;  %v1625_v56 = vsub.f32 %v9079_v35, %v1607_v28 }
 0x2d9   : > { %8396 = vpow2.f32 %v1641_v30 }
 0x2da   : > { %v1635_v31 = vmul.f32 1.442695, %v1625_v56 }
 0x2dc   : > { %v1619_v41 = vpop.xlane.xlu1 %1618 }
 0x2dd   : > { %v1629_v60 = vsub.f32 %v1596_v12, %v1619_v41 }
 0x2de   : > { %2417 = vrot.lane.b32.xlu0 %v8967_v46, %s8555_s12  ;;  %v1627_v46 = vsub.f32 %v9084_v16, %v1613_v22  ;;  %v9126_v49 = vpop.eup %8394 }
 0x2df   : > { %v1656_v6 = vsel %vm1598_vm3, %v9126_v49, 0.0 }
 0x2e0   : > { %v1639_v8 = vmul.f32 1.442695, %v1627_v46  ;;  %v9202_v29 = vpop.permute.xlu1 %2503 }
 0x2e4   : > { %v1622_v34 = vpop.xlane.xlu0 %1621 }
 0x2e5   : > { %v1630_v38 = vsub.f32 %v1597_v58, %v1622_v34  ;;  %v1643_v34 = vmul.f32 1.442695, %v1629_v60 }
 0x2e6   : > { %v9130_v23 = vpop.eup %8396 }
 0x2e7   : > { %v1645_v9 = vmul.f32 1.442695, %v1630_v38 }
 0x2e8   : > { %v9204_v30 = vpop.permute.xlu0 %2335 }
 0x2e9   : > { %2585 = vrot.lane.b32.xlu1 %v8813_v33, %s8553_s28  ;;  %8398 = vpow2.f32 %v1645_v9  ;;  %v1662_v9 = vsel %vm1598_vm3, %v9130_v23, 0.0 }
 0x2ea   : > { %8400 = vpow2.f32 %v1635_v31 }
 0x2eb   : > { %8402 = vpow2.f32 %v1639_v8 }
 0x2ec   : > { %8404 = vpow2.f32 %v1643_v34 }
 0x2f6   : > { %v9134_v35 = vpop.eup %8398 }
 0x2f7   : > { %v1668_v22 = vsel %vm1598_vm3, %v9134_v35, 0.0  ;;  %v9138_v12 = vpop.eup %8400 }
 0x2f8   : > { %v1653_v46 = vsel %vm1598_vm3, %v9138_v12, 0.0  ;;  %v9142_v31 = vpop.eup %8402 }
 0x2f9   : > { %v1659_v16 = vsel %vm1598_vm3, %v9142_v31, 0.0  ;;  %v9146_v58 = vpop.eup %8404 }
 0x2fa   : > { %v1665_v28 = vsel %vm1598_vm3, %v9146_v58, 0.0 }
 0x2fd   : > { %1657 = vadd.xlane.f32.xlu0 %v1656_v6  ;;  %v10409_v6 = vmov 0.0  }
 0x301   : > { %1663 = vadd.xlane.f32.xlu0 %v1662_v9 }
 0x305   : > { %1669 = vadd.xlane.f32.xlu0 %v1668_v22 }
 0x30d   : > { %1654 = vadd.xlane.f32.xlu1 %v1653_v46 }
 0x311   : > { %1660 = vadd.xlane.f32.xlu1 %v1659_v16 }
 0x315   : > { %1666 = vadd.xlane.f32.xlu1 %v1665_v28 }
 0x31b   : > { %2501 = vrot.lane.b32.xlu0 %v8810_v32, %s8553_s28 }
 0x31f   : > { %2499 = vrot.lane.b32.xlu0 %v8979_v13, %s8555_s12 }
 0x323   : > { %2581 = vrot.lane.b32.xlu0 %v8998_v62, %s8555_s12 }
 0x326   : > { %2583 = vrot.lane.b32.xlu1 %v8820_v36, %s8553_s28 }
 0x327   : > { %2665 = vrot.lane.b32.xlu0 %v8830_v39, %s8553_s28 }
 0x32a   : > { %2667 = vrot.lane.b32.xlu1 %v8823_v37, %s8553_s28 }
 0x32b   : > { %2663 = vrot.lane.b32.xlu0 %v9015_v15, %s8555_s12 }
 0x32e   : > { %2749 = vrot.lane.b32.xlu1 %v8840_v43, %s8553_s28 }
 0x32f   : > { %2745 = vrot.lane.b32.xlu0 %v9027_v18, %s8555_s12 }
 0x332   : > { %2747 = vrot.lane.b32.xlu1 %v8846_v47, %s8553_s28 }
 0x333   : > { %2829 = vrot.lane.b32.xlu0 %v8856_v50, %s8553_s28 }
 0x336   : > { %2831 = vrot.lane.b32.xlu1 %v8853_v48, %s8553_s28 }
 0x337   : > { %2827 = vrot.lane.b32.xlu0 %v9039_v17, %s8555_s12 }
 0x33a   : > { %2913 = vrot.lane.b32.xlu1 %v8863_v51, %s8553_s28 }
 0x33b   : > { %3168 = vrot.lane.b32.xlu0 %v8891_v59, %s8556_s14 }
 0x33e   : > { %2911 = vrot.lane.b32.xlu1 %v8870_v53, %s8553_s28 }
 0x33f   : > { %3247 = vrot.lane.b32.xlu0 %v8901_v63, %s8556_s14 }
 0x342   : > { %2909 = vrot.lane.b32.xlu1 %v9051_v20, %s8555_s12 }
 0x343   : > { %3245 = vrot.lane.b32.xlu0 %v8904_v1, %s8556_s14 }
 0x346   : > { %3089 = vrot.lane.b32.xlu1 %v8883_v55, %s8556_s14 }
 0x347   : > { %3405 = vrot.lane.b32.xlu0 %v8921_v7, %s8556_s14 }
 0x34a   : > { %3087 = vrot.lane.b32.xlu1 %v8886_v57, %s8556_s14 }
 0x34e   : > { %3166 = vrot.lane.b32.xlu1 %v8896_v61, %s8556_s14 }
 0x351   : > { %v1652_v38 = vpop.xlane.xlu0 %1651 }
 0x352   : > { %3326 = vrot.lane.b32.xlu1 %v8911_v3, %s8556_s14 }
 0x356   : > { %3324 = vrot.lane.b32.xlu1 %v8914_v5, %s8556_s14 }
 0x35a   : > { %3484 = vrot.lane.b32.xlu1 %v8931_v11, %s8556_s14 }
 0x361   : > { %v1649_v56 = vpop.xlane.xlu1 %1648 }
 0x362   : > { %8406 = vrcp.f32 %v1649_v56 }
 0x363   : > { %8408 = vrcp.f32 %v1652_v38 }
 0x365   : > { %v2586_v9 = vpop.permute.xlu1 %2585 }
 0x36f   : > { %v8407_v41 = vpop.eup %8406 }
 0x370   : > { %v1672_v8 = vmul.f32 %v8407_v41, %v9116_v26  ;;  %v8409_v60 = vpop.eup %8408  ;;  %v2418_v26 = vpop.permute.xlu0 %2417 }
 0x371   : > { %v1674_v34 = vmul.f32 %v8409_v60, %v9112_v25 }
 0x372   : > { %7911 = vmatmul.mubr.msk.f32.vlgmr.msra.gmra.mxu1 %vm1598_vm3, %v1672_v8 }
 0x373   : > { %7914 = vmatpush3.msra.mxu1 %v9067_v19  ;;  %7917 = vmatprep.mubr.msk.f32.mxu1 %vm8551_vm1, %v10409_v6 }
 0x374   : > { %7915 = vmatprep.subr.mxu1 %v10409_v6 }
 0x375   : > { %7916 = vmatpush3.msra.mxu1 %v9070_v40 }
 0x376   : > { %7920 = vmatprep.subr.mxu1 %v10409_v6  ;;  %7918 = vmatmul.mubr.msk.f32.vlgmr.msra.gmra.mxu1 %vm1598_vm3, %v1674_v34 }
 0x377   : > { %7921 = vmatpush3.msra.mxu1 %v9096_v0  ;;  %7924 = vmatprep.mubr.msk.f32.mxu1 %vm8551_vm1, %v10409_v6 }
 0x378   : > { %7922 = vmatprep.subr.mxu1 %v10409_v6 }
 0x379   : > { %7923 = vmatpush3.msra.mxu1 %v9072_v42 }
 0x37a   : > { %7927 = vmatprep.subr.mxu1 %v10409_v6 }
 0x386   : > { %v1658_v19 = vpop.xlane.xlu0 %1657 }
 0x38a   : > { %v1664_v25 = vpop.xlane.xlu0 %1663 }
 0x38b   : > { %8410 = vrcp.f32 %v1664_v25 }
 0x38e   : > { %v1670_v40 = vpop.xlane.xlu0 %1669 }
 0x38f   : > { %8412 = vrcp.f32 %v1670_v40 }
 0x392   : > { %v9222_v22 = vpop.permute.xlu0 %2501 }
 0x396   : > { %v1655_v46 = vpop.xlane.xlu1 %1654  ;;  %v9224_v0 = vpop.permute.xlu0 %2499 }
 0x397   : > { %8414 = vrcp.f32 %v1655_v46 }
 0x398   : > { %v8411_v16 = vpop.eup %8410  ;;  %8416 = vrcp.f32 %v1658_v19 }
 0x399   : > { %v1682_v28 = vmul.f32 %v8411_v16, %v9130_v23 }
 0x39a   : > { %v1661_v42 = vpop.xlane.xlu1 %1660  ;;  %v2582_v56 = vpop.permute.xlu0 %2581 }
 0x39b   : > { %7946 = vmatmul.mubr.msk.f32.vlgmr.msra.gmra.mxu0 %vm1598_vm3, %v1682_v28  ;;  %8418 = vrcp.f32 %v1661_v42 }
 0x39c   : > { %v8413_v38 = vpop.eup %8412  ;;  %7956 = vmatpush3.msra.mxu0 %v9100_v45  ;;  %7959 = vmatprep.mubr.msk.f32.mxu0 %vm8551_vm1, %v10409_v6 }
 0x39d   : > { %7957 = vmatprep.subr.mxu0 %v10409_v6  ;;  %v1686_v41 = vmul.f32 %v8413_v38, %v9134_v35 }
 0x39e   : > { %7958 = vmatpush3.msra.mxu0 %v9104_v10  ;;  %v1667_v8 = vpop.xlane.xlu1 %1666  ;;  %v9241_v45 = vpop.permute.xlu0 %2665 }
 0x39f   : > { %7969 = vmatprep.subr.mxu0 %v10409_v6  ;;  %7960 = vmatmul.mubr.msk.f32.vlgmr.msra.gmra.mxu0 %vm1598_vm3, %v1686_v41  ;;  %8420 = vrcp.f32 %v1667_v8 }
 0x3a0   : > { %7970 = vmatpush3.xpose.msk.msra.mxu0 %vm931_vm2, %v9058_v21  ;;  %7973 = vmatprep.mubr.msk.f32.mxu0 %vm8551_vm1, %v10409_v6 }
 0x3a1   : > { %7971 = vmatprep.subr.mxu0 %v10409_v6 }
 0x3a2   : > { %v2584_v23 = vpop.permute.xlu1 %2583  ;;  %v9251_v21 = vpop.permute.xlu0 %2663 }
 0x3a4   : > { %v8415_v35 = vpop.eup %8414  ;;  %7972 = vmatpush3.xpose.msk.msra.mxu0 %vm931_vm2, %v9062_v27 }
 0x3a5   : > { %7983 = vmatprep.subr.mxu0 %v10409_v6  ;;  %v1676_v10 = vmul.f32 %v8415_v35, %v9138_v12  ;;  %v8417_v60 = vpop.eup %8416 }
 0x3a6   : > { %v9247_v34 = vpop.permute.xlu1 %2667  ;;  %v1678_v27 = vmul.f32 %v8417_v60, %v9126_v49 }
 0x3a7   : > { %7974 = vmatmul.mubr.msk.f32.vlgmr.msra.gmra.mxu0 %vm931_vm2, %v2418_v26  ;;  %7925 = vmatmul.mubr.msk.f32.vlgmr.msra.gmra.mxu1 %vm1598_vm3, %v1676_v10 }
 0x3a8   : > { %7928 = vmatpush3.msra.mxu1 %v9098_v2  ;;  %7984 = vmatpush3.xpose.msk.msra.mxu0 %vm931_vm2, %v2586_v9  ;;  %v8419_v26 = vpop.eup %8418  ;;  %v2746_v2 = vpop.permute.xlu0 %2745 }
 0x3a9   : > { %7929 = vmatprep.subr.mxu1 %v10409_v6  ;;  %7931 = vmatprep.mubr.msk.f32.mxu1 %vm8551_vm1, %v10409_v6  ;;  %v1680_v49 = vmul.f32 %v8419_v26, %v9142_v31 }
 0x3aa   : > { %7930 = vmatpush3.msra.mxu1 %v9074_v44  ;;  %v2750_v12 = vpop.permute.xlu1 %2749  ;;  %7985 = vmatprep.subr.mxu0 %v10409_v6 }
 0x3ab   : > { %7934 = vmatprep.subr.mxu1 %v10409_v6  ;;  %7932 = vmatmul.mubr.msk.f32.vlgmr.msra.gmra.mxu1 %vm1598_vm3, %v1678_v27 }
 0x3ac   : > { %7935 = vmatpush3.msra.mxu1 %v9102_v14  ;;  %7986 = vmatpush3.xpose.msk.msra.mxu0 %vm931_vm2, %v2584_v23  ;;  %v8421_v19 = vpop.eup %8420  ;;  %v2830_v31 = vpop.permute.xlu0 %2829 }
 0x3ad   : > { %7936 = vmatprep.subr.mxu1 %v10409_v6  ;;  %7987 = vmatprep.mubr.msk.f32.mxu0 %vm8551_vm1, %v10409_v6 }
 0x3ae   : > { %7937 = vmatpush3.msra.mxu1 %v9106_v4  ;;  %v2748_v44 = vpop.permute.xlu1 %2747  ;;  %7938 = vmatprep.mubr.msk.f32.mxu1 %vm8551_vm1, %v10409_v6  ;;  %v1684_v4 = vmul.f32 %v8421_v19, %v9146_v58 }
 0x3af   : > { %7948 = vmatprep.subr.mxu1 %v10409_v6  ;;  %7988 = vmatmul.mubr.msk.f32.vlgmr.msra.gmra.mxu0 %vm931_vm2, %v2582_v56 }
 0x3b0   : > { %7997 = vmatprep.subr.mxu0 %v10409_v6  ;;  %7939 = vmatmul.mubr.msk.f32.vlgmr.msra.gmra.mxu1 %vm1598_vm3, %v1680_v49 }
 0x3b1   : > { %7949 = vmatpush3.msra.mxu1 %v9108_v52  ;;  %7998 = vmatpush3.xpose.msk.msra.mxu0 %vm931_vm2, %v2750_v12 }
 0x3b2   : > { %7950 = vmatprep.subr.mxu1 %v10409_v6  ;;  %v2832_v14 = vpop.permute.xlu1 %2831  ;;  %7952 = vmatprep.mubr.msk.f32.mxu1 %vm8551_vm1, %v10409_v6 }
 0x3b3   : > { %7951 = vmatpush3.msra.mxu1 %v9110_v54  ;;  %7999 = vmatprep.subr.mxu0 %v10409_v6  ;;  %v10410_v54 = vld [vmem:[#allocation19_spill] sm:$0xff] }
 0x3b4   : > { %7962 = vmatprep.subr.mxu1 %v10409_v6  ;;  %7953 = vmatmul.mubr.msk.f32.vlgmr.msra.gmra.mxu1 %vm1598_vm3, %v1684_v4 }
 0x3b5   : > { %7963 = vmatpush3.xpose.msk.msra.mxu1 %vm931_vm2, %v9060_v24  ;;  %8000 = vmatpush3.xpose.msk.msra.mxu0 %vm931_vm2, %v2748_v44  ;;  %v2828_v24 = vpop.permute.xlu0 %2827 }
 0x3b6   : > { %8001 = vmatprep.mubr.msk.f32.mxu0 %vm8551_vm1, %v10409_v6  ;;  %v2914_v52 = vpop.permute.xlu1 %2913  ;;  %7964 = vmatprep.subr.mxu1 %v10409_v6 }
 0x3b7   : > { %8011 = vmatprep.subr.mxu0 %v10409_v6  ;;  %7966 = vmatprep.mubr.msk.f32.mxu1 %vm8551_vm1, %v10409_v6 }
 0x3b8   : > { %8002 = vmatmul.mubr.msk.f32.vlgmr.msra.gmra.mxu0 %vm931_vm2, %v2746_v2 }
 0x3b9   : > { %7965 = vmatpush3.xpose.msk.msra.mxu1 %vm931_vm2, %v10410_v54  ;;  %8012 = vmatpush3.xpose.msk.msra.mxu0 %vm931_vm2, %v2914_v52  ;;  %v3169_v40 = vpop.permute.xlu0 %3168 }
 0x3ba   : > { %v2912_v58 = vpop.permute.xlu1 %2911  ;;  %7976 = vmatprep.subr.mxu1 %v10409_v6  ;;  %8013 = vmatprep.subr.mxu0 %v10409_v6 }
 0x3bb   : > { %8015 = vmatprep.mubr.msk.f32.mxu0 %vm8551_vm1, %v10409_v6 }
 0x3bc   : > { %7967 = vmatmul.mubr.msk.f32.vlgmr.msra.gmra.mxu1 %vm931_vm2, %v9204_v30 }
 0x3bd   : > { %7977 = vmatpush3.xpose.msk.msra.mxu1 %vm931_vm2, %v9202_v29  ;;  %8014 = vmatpush3.xpose.msk.msra.mxu0 %vm931_vm2, %v2912_v58 }
 0x3be   : > { %v2910_v25 = vpop.permute.xlu1 %2909  ;;  %7978 = vmatprep.subr.mxu1 %v10409_v6  ;;  %8025 = vmatprep.subr.mxu0 %v10409_v6 }
 0x3bf   : > { %7980 = vmatprep.mubr.msk.f32.mxu1 %vm8551_vm1, %v10409_v6 }
 0x3c0   : > { %8016 = vmatmul.mubr.msk.f32.vlgmr.msra.gmra.mxu0 %vm931_vm2, %v2910_v25 }
 0x3c1   : > { %7979 = vmatpush3.xpose.msk.msra.mxu1 %vm931_vm2, %v9222_v22  ;;  %8026 = vmatpush3.msra.mxu0 %v3169_v40 }
 0x3c2   : > { %v3090_v30 = vpop.permute.xlu1 %3089  ;;  %7990 = vmatprep.subr.mxu1 %v10409_v6  ;;  %8027 = vmatprep.subr.mxu0 %v10409_v6 }
 0x3c3   : > { %8029 = vmatprep.mubr.msk.f32.mxu0 %vm8551_vm1, %v10409_v6 }
 0x3c4   : > { %7981 = vmatmul.mubr.msk.f32.vlgmr.msra.gmra.mxu1 %vm931_vm2, %v9224_v0 }
 0x3c5   : > { %7991 = vmatpush3.xpose.msk.msra.mxu1 %vm931_vm2, %v9247_v34  ;;  %7994 = vmatprep.mubr.msk.f32.mxu1 %vm8551_vm1, %v10409_v6 }
 0x3c6   : > { %v3088_v29 = vpop.permute.xlu1 %3087  ;;  %7992 = vmatprep.subr.mxu1 %v10409_v6 }
 0x3c9   : > { %7993 = vmatpush3.xpose.msk.msra.mxu1 %vm931_vm2, %v9241_v45 }
 0x3ca   : > { %v3167_v9 = vpop.permute.xlu1 %3166  ;;  %8004 = vmatprep.subr.mxu1 %v10409_v6 }
 0x3cb   : > { %8028 = vmatpush3.msra.mxu0 %v3167_v9 }
 0x3cc   : > { %7995 = vmatmul.mubr.msk.f32.vlgmr.msra.gmra.mxu1 %vm931_vm2, %v9251_v21  ;;  %8039 = vmatprep.subr.mxu0 %v10409_v6 }
 0x3cd   : > { %8005 = vmatpush3.xpose.msk.msra.mxu1 %vm931_vm2, %v2832_v14  ;;  %8008 = vmatprep.mubr.msk.f32.mxu1 %vm8551_vm1, %v10409_v6 }
 0x3ce   : > { %8006 = vmatprep.subr.mxu1 %v10409_v6 }
 0x3d1   : > { %8007 = vmatpush3.xpose.msk.msra.mxu1 %vm931_vm2, %v2830_v31 }
 0x3d2   : > { %8018 = vmatprep.subr.mxu1 %v10409_v6 }
 0x3d4   : > { %8009 = vmatmul.mubr.msk.f32.vlgmr.msra.gmra.mxu1 %vm931_vm2, %v2828_v24 }
 0x3d5   : > { %8019 = vmatpush3.msra.mxu1 %v3090_v30  ;;  %8022 = vmatprep.mubr.msk.f32.mxu1 %vm8551_vm1, %v10409_v6 }
 0x3d6   : > { %8020 = vmatprep.subr.mxu1 %v10409_v6 }
 0x3d7   : > { %8021 = vmatpush3.msra.mxu1 %v3088_v29 }
 0x3d8   : > { %8032 = vmatprep.subr.mxu1 %v10409_v6 }
 0x432   : > { %v9343_v22 = vpop.f32.mrf.mxu1 }
 0x433   : > { %10411 = vst [vmem:[#allocation19_spill] sm:$0xff] %v9343_v22 }
 0x434   : > { %v7912_v46 = vpop.f32.mrf.mxu1 }
 0x436   : > { %v9345_v0 = vpop.f32.mrf.mxu1 }
 0x437   : > { %10412 = vst [vmem:[#allocation20_spill] sm:$0xff] %v9345_v0 }
 0x438   : > { %v7919_v16 = vpop.f32.mrf.mxu1 }
 0x45b   : > { %v9347_v28 = vpop.f32.mrf.mxu0 }
 0x45c   : > { %10413 = vst [vmem:[#allocation21_spill] sm:$0xff] %v9347_v28 }
 0x45d   : > { %v7947_v42 = vpop.f32.mrf.mxu0 }
 0x45f   : > { %v9349_v38 = vpop.f32.mrf.mxu0 }
 0x460   : > { %10414 = vst [vmem:[#allocation22_spill] sm:$0xff] %v9349_v38 }
 0x461   : > { %v7961_v56 = vpop.f32.mrf.mxu0 }
 0x467   : > { %v2495_v41 = vpop.f32.mrf.mxu0  ;;  %v9351_v8 = vpop.f32.mrf.mxu1 }
 0x468   : > { %10415 = vst [vmem:[#allocation23_spill] sm:$0xff] %v9351_v8  ;;  %v9353_v45 = vmul.f32 0.35355338, %v2495_v41 }
 0x469   : > { %v7975_v23 = vpop.f32.mrf.mxu0  ;;  %v7926_v35 = vpop.f32.mrf.mxu1 }
 0x46a   : > { %v3002_v10 = vsel %vm1598_vm3, %v9353_v45, -inf }
 0x46b   : > { %3003 = vmax.xlane.f32.xlu1 %v3002_v10  ;;  %v9357_v60 = vpop.f32.mrf.mxu1 }
 0x46c   : > { %10416 = vst [vmem:[#allocation24_spill] sm:$0xff] %v9357_v60 }
 0x46d   : > { %v7933_v34 = vpop.f32.mrf.mxu1 }
 0x46f   : > { %v2659_v21 = vpop.f32.mrf.mxu0 }
 0x470   : > { %v9359_v27 = vpop.f32.mrf.mxu1  ;;  %v2994_v30 = vmul.f32 0.35355338, %v2659_v21 }
 0x471   : > { %10417 = vst [vmem:[#allocation25_spill] sm:$0xff] %v9359_v27  ;;  %v7989_v12 = vpop.f32.mrf.mxu0 }
 0x472   : > { %v7940_v26 = vpop.f32.mrf.mxu1  ;;  %v3008_v46 = vsel %vm1598_vm3, %v2994_v30, -inf }
 0x474   : > { %v9361_v2 = vpop.f32.mrf.mxu1 }
 0x475   : > { %10418 = vst [vmem:[#allocation26_spill] sm:$0xff] %v9361_v2 }
 0x476   : > { %v7954_v44 = vpop.f32.mrf.mxu1 }
 0x477   : > { %v10419_v44 = vld [vmem:[#allocation12_spill] sm:$0xff] }
 0x478   : > { %v2823_v49 = vpop.f32.mrf.mxu0 }
 0x479   : > { %v9365_v9 = vmul.f32 0.35355338, %v2823_v49  ;;  %v10420_v49 = vld [vmem:[#allocation10_spill] sm:$0xff] }
 0x47a   : > { %v8003_v19 = vpop.f32.mrf.mxu0 }
 0x47b   : > { %v3014_v35 = vsel %vm1598_vm3, %v9365_v9, -inf  ;;  %v10421_v19 = vld [vmem:[#allocation15_spill] sm:$0xff] }
 0x47c   : > { %v2413_v14 = vpop.f32.mrf.mxu1 }
 0x47d   : > { %v2991_v4 = vmul.f32 0.35355338, %v2413_v14  ;;  %v10422_v14 = vld [vmem:[#allocation13_spill] sm:$0xff] }
 0x47e   : > { %v7968_v31 = vpop.f32.mrf.mxu1 }
 0x47f   : > { %v2999_v52 = vsel %vm1598_vm3, %v2991_v4, -inf  ;;  %v10423_v31 = vld [vmem:[#allocation16_spill] sm:$0xff] }
 0x480   : > { %3000 = vmax.xlane.f32.xlu0 %v2999_v52  ;;  %v2987_v54 = vpop.f32.mrf.mxu0  ;;  %v10424_v52 = vld [vmem:[#allocation14_spill] sm:$0xff] }
 0x481   : > { %v9368_v41 = vmul.f32 0.35355338, %v2987_v54  ;;  %v10425_v54 = vld [vmem:[#allocation2_spill] sm:$0xff] }
 0x482   : > { %v8017_v24 = vpop.f32.mrf.mxu0 }
 0x483   : > { %v3020_v10 = vsel %vm1598_vm3, %v9368_v41, -inf  ;;  %v10426_v24 = vld [vmem:[#allocation6_spill] sm:$0xff] }
 0x484   : > { %v2577_v58 = vpop.f32.mrf.mxu1 }
 0x485   : > { %v2993_v25 = vmul.f32 0.35355338, %v2577_v58  ;;  %v10427_v58 = vld [vmem:[#allocation3_spill] sm:$0xff] }
 0x486   : > { %v7982_v40 = vpop.f32.mrf.mxu1 }
 0x487   : > { %v3005_v29 = vsel %vm1598_vm3, %v2993_v25, -inf  ;;  %v10428_v40 = vld [vmem:[#allocation7_spill] sm:$0xff] }
 0x488   : > { %3006 = vmax.xlane.f32.xlu0 %v3005_v29  ;;  %v10429_v29 = vld [vmem:[#allocation4_spill] sm:$0xff] }
 0x48c   : > { %v2741_v16 = vpop.f32.mrf.mxu1  ;;  %3009 = vmax.xlane.f32.xlu0 %v3008_v46  ;;  %v10430_v46 = vld [vmem:[#allocation18_spill] sm:$0xff] }
 0x48d   : > { %v2995_v42 = vmul.f32 0.35355338, %v2741_v16  ;;  %v10431_v16 = vld [vmem:[#allocation17_spill] sm:$0xff] }
 0x48e   : > { %v7996_v56 = vpop.f32.mrf.mxu1 }
 0x48f   : > { %v3011_v23 = vsel %vm1598_vm3, %v2995_v42, -inf  ;;  %v9407_v56 = vpop.permute.xlu1 %3326 }
 0x490   : > { %3012 = vmax.xlane.f32.xlu1 %v3011_v23  ;;  %3015 = vmax.xlane.f32.xlu0 %v3014_v35 }
 0x493   : > { %v9409_v23 = vpop.permute.xlu1 %3324 }
 0x494   : > { %v2905_v34 = vpop.f32.mrf.mxu1  ;;  %3021 = vmax.xlane.f32.xlu0 %v3020_v10 }
 0x495   : > { %v9375_v21 = vmul.f32 0.35355338, %v2905_v34 }
 0x496   : > { %v8010_v12 = vpop.f32.mrf.mxu1 }
 0x497   : > { %v3017_v26 = vsel %vm1598_vm3, %v9375_v21, -inf  ;;  %v9411_v35 = vpop.permute.xlu1 %3484 }
 0x498   : > { %3018 = vmax.xlane.f32.xlu1 %v3017_v26  ;;  %v9414_v26 = vpop.permute.xlu0 %3247 }
 0x49c   : > { %v9416_v38 = vpop.permute.xlu0 %3245 }
 0x4a0   : > { %v9418_v2 = vpop.permute.xlu0 %3405 }
 0x4a9   : > { %3482 = vrot.lane.b32.xlu1 %v10419_v44, %s8556_s14 }
 0x4aa   : > { %3403 = vrot.lane.b32.xlu0 %v10420_v49, %s8556_s14 }
 0x4ad   : > { %3642 = vrot.lane.b32.xlu1 %v10421_v19, %s8556_s14 }
 0x4ae   : > { %3563 = vrot.lane.b32.xlu0 %v10422_v14, %s8556_s14 }
 0x4b1   : > { %3640 = vrot.lane.b32.xlu1 %v10423_v31, %s8556_s14 }
 0x4b2   : > { %3561 = vrot.lane.b32.xlu0 %v10424_v52, %s8556_s14 }
 0x4b5   : > { %3805 = vrot.lane.b32.xlu1 %v10425_v54, %s8557_s15 }
 0x4b6   : > { %3723 = vrot.lane.b32.xlu0 %v10426_v24, %s8557_s15 }
 0x4b9   : > { %3803 = vrot.lane.b32.xlu1 %v10427_v58, %s8557_s15 }
 0x4ba   : > { %3721 = vrot.lane.b32.xlu0 %v10428_v40, %s8557_s15 }
 0x4bd   : > { %3887 = vrot.lane.b32.xlu1 %v10429_v29, %s8557_s15 }
 0x4be   : > { %3719 = vrot.lane.b32.xlu0 %v10430_v46, %s8558_s16 }
 0x4c1   : > { %3969 = vrot.lane.b32.xlu1 %v8813_v33, %s8557_s15 }
 0x4c2   : > { %3801 = vrot.lane.b32.xlu0 %v10431_v16, %s8558_s16 }
 0x4f4   : > { %v3004_v10 = vpop.xlane.xlu1 %3003 }
 0x4f5   : > { %v3024_v34 = vsub.f32 %v9353_v45, %v3004_v10 }
 0x4f7   : > { %v3033_v12 = vmul.f32 1.442695, %v3024_v34 }
 0x4f9   : > { %8422 = vpow2.f32 %v3033_v12 }
 0x506   : > { %v9420_v28 = vpop.eup %8422 }
 0x507   : > { %v3050_v27 = vsel %vm1598_vm3, %v9420_v28, 0.0 }
 0x508   : > { %3051 = vadd.xlane.f32.xlu0 %v3050_v27 }
 0x509   : > { %v3001_v60 = vpop.xlane.xlu0 %3000 }
 0x50a   : > { %v3023_v8 = vsub.f32 %v2991_v4, %v3001_v60 }
 0x50c   : > { %v3031_v0 = vmul.f32 1.442695, %v3023_v8 }
 0x50e   : > { %8424 = vpow2.f32 %v3031_v0 }
 0x511   : > { %v3007_v22 = vpop.xlane.xlu0 %3006 }
 0x512   : > { %v3025_v45 = vsub.f32 %v2993_v25, %v3007_v22 }
 0x514   : > { %v3035_v10 = vmul.f32 1.442695, %v3025_v45 }
 0x515   : > { %v3010_v34 = vpop.xlane.xlu0 %3009 }
 0x516   : > { %8426 = vpow2.f32 %v3035_v10  ;;  %v3026_v12 = vsub.f32 %v2994_v30, %v3010_v34 }
 0x518   : > { %v3037_v16 = vmul.f32 1.442695, %v3026_v12 }
 0x519   : > { %v3013_v33 = vpop.xlane.xlu1 %3012  ;;  %v3016_v46 = vpop.xlane.xlu0 %3015 }
 0x51a   : > { %8428 = vpow2.f32 %v3037_v16  ;;  %v3027_v29 = vsub.f32 %v2995_v42, %v3013_v33  ;;  %v3028_v40 = vsub.f32 %v9365_v9, %v3016_v46 }
 0x51b   : > { %v9425_v58 = vpop.eup %8424 }
 0x51c   : > { %v3039_v27 = vmul.f32 1.442695, %v3027_v29  ;;  %v3041_v24 = vmul.f32 1.442695, %v3028_v40  ;;  %v3047_v0 = vsel %vm1598_vm3, %v9425_v58, 0.0 }
 0x51d   : > { %3048 = vadd.xlane.f32.xlu1 %v3047_v0  ;;  %v3022_v22 = vpop.xlane.xlu0 %3021 }
 0x51e   : > { %8430 = vpow2.f32 %v3039_v27  ;;  %v3030_v8 = vsub.f32 %v9368_v41, %v3022_v22 }
 0x51f   : > { %8432 = vpow2.f32 %v3041_v24 }
 0x520   : > { %v3045_v60 = vmul.f32 1.442695, %v3030_v8 }
 0x521   : > { %v3019_v4 = vpop.xlane.xlu1 %3018  ;;  %v9491_v34 = vpop.permute.xlu0 %3403 }
 0x522   : > { %8434 = vpow2.f32 %v3045_v60  ;;  %v3029_v33 = vsub.f32 %v9375_v21, %v3019_v4 }
 0x523   : > { %v9431_v25 = vpop.eup %8426 }
 0x524   : > { %v3043_v30 = vmul.f32 1.442695, %v3029_v33  ;;  %v3053_v9 = vsel %vm1598_vm3, %v9431_v25, 0.0 }
 0x525   : > { %3054 = vadd.xlane.f32.xlu1 %v3053_v9  ;;  %v9499_v12 = vpop.permute.xlu0 %3563  ;;  %v3483_v22 = vpop.permute.xlu1 %3482 }
 0x526   : > { %8436 = vpow2.f32 %v3043_v30 }
 0x527   : > { %v9435_v42 = vpop.eup %8428 }
 0x528   : > { %v3056_v40 = vsel %vm1598_vm3, %v9435_v42, 0.0 }
 0x529   : > { %3057 = vadd.xlane.f32.xlu0 %v3056_v40  ;;  %v9507_v27 = vpop.permute.xlu0 %3561  ;;  %v9517_v60 = vpop.permute.xlu1 %3642 }
 0x52b   : > { %v9439_v41 = vpop.eup %8430 }
 0x52c   : > { %v9441_v24 = vpop.eup %8432  ;;  %v3059_v21 = vsel %vm1598_vm3, %v9439_v41, 0.0 }
 0x52d   : > { %3060 = vadd.xlane.f32.xlu1 %v3059_v21  ;;  %v3062_v29 = vsel %vm1598_vm3, %v9441_v24, 0.0  ;;  %v9513_v0 = vpop.permute.xlu0 %3723  ;;  %v9521_v33 = vpop.permute.xlu1 %3640 }
 0x52e   : > { %3063 = vadd.xlane.f32.xlu0 %v3062_v29 }
 0x52f   : > { %v9447_v46 = vpop.eup %8434 }
 0x530   : > { %v3068_v16 = vsel %vm1598_vm3, %v9447_v46, 0.0 }
 0x531   : > { %v9515_v8 = vpop.permute.xlu0 %3721  ;;  %v9525_v9 = vpop.permute.xlu1 %3805 }
 0x532   : > { %3069 = vadd.xlane.f32.xlu0 %v3068_v16 }
 0x533   : > { %v9451_v45 = vpop.eup %8436 }
 0x534   : > { %v3065_v10 = vsel %vm1598_vm3, %v9451_v45, 0.0 }
 0x535   : > { %3066 = vadd.xlane.f32.xlu1 %v3065_v10  ;;  %v9519_v4 = vpop.permute.xlu0 %3719  ;;  %v9527_v21 = vpop.permute.xlu1 %3803 }
 0x539   : > { %v9523_v30 = vpop.permute.xlu0 %3801  ;;  %v9529_v29 = vpop.permute.xlu1 %3887 }
 0x546   : > { %3967 = vrot.lane.b32.xlu1 %v8820_v36, %s8557_s15 }
 0x548   : > { %3885 = vrot.lane.b32.xlu0 %v8810_v32, %s8557_s15 }
 0x54a   : > { %4051 = vrot.lane.b32.xlu1 %v8823_v37, %s8557_s15 }
 0x54c   : > { %3883 = vrot.lane.b32.xlu0 %v8979_v13, %s8558_s16 }
 0x54e   : > { %4133 = vrot.lane.b32.xlu1 %v8840_v43, %s8557_s15 }
 0x550   : > { %3965 = vrot.lane.b32.xlu0 %v8998_v62, %s8558_s16 }
 0x552   : > { %4131 = vrot.lane.b32.xlu1 %v8846_v47, %s8557_s15 }
 0x554   : > { %4049 = vrot.lane.b32.xlu0 %v8830_v39, %s8557_s15 }
 0x556   : > { %4215 = vrot.lane.b32.xlu1 %v8853_v48, %s8557_s15 }
 0x558   : > { %4047 = vrot.lane.b32.xlu0 %v9015_v15, %s8558_s16 }
 0x55a   : > { %4297 = vrot.lane.b32.xlu1 %v8863_v51, %s8557_s15 }
 0x55c   : > { %4129 = vrot.lane.b32.xlu0 %v9027_v18, %s8558_s16 }
 0x55e   : > { %4295 = vrot.lane.b32.xlu1 %v8870_v53, %s8557_s15 }
 0x560   : > { %4213 = vrot.lane.b32.xlu0 %v8856_v50, %s8557_s15  ;;  %s8565_s15 = smov 24  }
 0x562   : > { %4293 = vrot.lane.b32.xlu1 %v9051_v20, %s8558_s16 }
 0x564   : > { %4211 = vrot.lane.b32.xlu0 %v9039_v17, %s8558_s16 }
 0x566   : > { %4473 = vrot.lane.b32.xlu1 %v8883_v55, %s8559_s18 }
 0x568   : > { %4552 = vrot.lane.b32.xlu0 %v8891_v59, %s8559_s18 }
 0x56a   : > { %4471 = vrot.lane.b32.xlu1 %v8886_v57, %s8559_s18 }
 0x56c   : > { %4631 = vrot.lane.b32.xlu0 %v8901_v63, %s8559_s18 }
 0x56e   : > { %4550 = vrot.lane.b32.xlu1 %v8896_v61, %s8559_s18 }
 0x570   : > { %4629 = vrot.lane.b32.xlu0 %v8904_v1, %s8559_s18 }
 0x572   : > { %4710 = vrot.lane.b32.xlu1 %v8911_v3, %s8559_s18 }
 0x574   : > { %4789 = vrot.lane.b32.xlu0 %v8921_v7, %s8559_s18 }
 0x576   : > { %4708 = vrot.lane.b32.xlu1 %v8914_v5, %s8559_s18 }
 0x57a   : > { %4868 = vrot.lane.b32.xlu1 %v8931_v11, %s8559_s18  ;;  %v9532_v11 = vpop.permute.xlu1 %3969 }
 0x591   : > { %v3052_v40 = vpop.xlane.xlu0 %3051 }
 0x592   : > { %8438 = vrcp.f32 %v3052_v40 }
 0x59f   : > { %v8439_v16 = vpop.eup %8438 }
 0x5a0   : > { %v3074_v10 = vmul.f32 %v8439_v16, %v9420_v28 }
 0x5a2   : > { %8030 = vmatmul.mubr.msk.f32.vlgmr.msra.gmra.mxu0 %vm1598_vm3, %v3074_v10 }
 0x5a3   : > { %8040 = vmatpush3.msra.mxu0 %v9407_v56  ;;  %8043 = vmatprep.mubr.msk.f32.mxu0 %vm8551_vm1, %v10409_v6 }
 0x5a4   : > { %8041 = vmatprep.subr.mxu0 %v10409_v6 }
 0x5a5   : > { %8042 = vmatpush3.msra.mxu0 %v9409_v23 }
 0x5a6   : > { %v3049_v40 = vpop.xlane.xlu1 %3048  ;;  %8053 = vmatprep.subr.mxu0 %v10409_v6 }
 0x5a7   : > { %8440 = vrcp.f32 %v3049_v40 }
 0x5ae   : > { %v3055_v7 = vpop.xlane.xlu1 %3054 }
 0x5af   : > { %8442 = vrcp.f32 %v3055_v7 }
 0x5b2   : > { %v3058_v28 = vpop.xlane.xlu0 %3057 }
 0x5b3   : > { %8444 = vrcp.f32 %v3058_v28 }
 0x5b4   : > { %v8441_v16 = vpop.eup %8440 }
 0x5b5   : > { %v3072_v10 = vmul.f32 %v8441_v16, %v9425_v58 }
 0x5b6   : > { %v3061_v5 = vpop.xlane.xlu1 %3060 }
 0x5b7   : > { %8446 = vrcp.f32 %v3061_v5  ;;  %v3064_v56 = vpop.xlane.xlu0 %3063  ;;  %8023 = vmatmul.mubr.msk.f32.vlgmr.msra.gmra.mxu1 %vm1598_vm3, %v3072_v10 }
 0x5b8   : > { %8448 = vrcp.f32 %v3064_v56  ;;  %8033 = vmatpush3.msra.mxu1 %v9414_v26  ;;  %8036 = vmatprep.mubr.msk.f32.mxu1 %vm8551_vm1, %v10409_v6 }
 0x5b9   : > { %8034 = vmatprep.subr.mxu1 %v10409_v6 }
 0x5ba   : > { %8035 = vmatpush3.msra.mxu1 %v9416_v38 }
 0x5bb   : > { %v3070_v7 = vpop.xlane.xlu0 %3069  ;;  %8046 = vmatprep.subr.mxu1 %v10409_v6 }
 0x5bc   : > { %v8443_v23 = vpop.eup %8442  ;;  %8450 = vrcp.f32 %v3070_v7 }
 0x5bd   : > { %v3076_v5 = vmul.f32 %v8443_v23, %v9431_v25 }
 0x5be   : > { %v3067_v58 = vpop.xlane.xlu1 %3066 }
 0x5bf   : > { %8452 = vrcp.f32 %v3067_v58  ;;  %v9550_v40 = vpop.permute.xlu0 %3885  ;;  %8037 = vmatmul.mubr.msk.f32.vlgmr.msra.gmra.mxu1 %vm1598_vm3, %v3076_v5 }
 0x5c0   : > { %v8445_v26 = vpop.eup %8444  ;;  %8047 = vmatpush3.msra.mxu1 %v9418_v2  ;;  %8050 = vmatprep.mubr.msk.f32.mxu1 %vm8551_vm1, %v10409_v6 }
 0x5c1   : > { %8048 = vmatprep.subr.mxu1 %v10409_v6  ;;  %v3078_v38 = vmul.f32 %v8445_v26, %v9435_v42 }
 0x5c2   : > { %8049 = vmatpush3.msra.mxu1 %v9491_v34  ;;  %v3968_v28 = vpop.permute.xlu1 %3967 }
 0x5c3   : > { %v9559_v25 = vpop.permute.xlu0 %3883  ;;  %8044 = vmatmul.mubr.msk.f32.vlgmr.msra.gmra.mxu0 %vm1598_vm3, %v3078_v38  ;;  %8060 = vmatprep.subr.mxu1 %v10409_v6 }
 0x5c4   : > { %v8447_v16 = vpop.eup %8446  ;;  %8054 = vmatpush3.msra.mxu0 %v9411_v35  ;;  %8057 = vmatprep.mubr.msk.f32.mxu0 %vm8551_vm1, %v10409_v6 }
 0x5c5   : > { %v8449_v2 = vpop.eup %8448  ;;  %8055 = vmatprep.subr.mxu0 %v10409_v6  ;;  %v3080_v42 = vmul.f32 %v8447_v16, %v9439_v41 }
 0x5c6   : > { %8056 = vmatpush3.msra.mxu0 %v3483_v22  ;;  %v4052_v34 = vpop.permute.xlu1 %4051  ;;  %v3082_v10 = vmul.f32 %v8449_v2, %v9441_v24 }
 0x5c7   : > { %8067 = vmatprep.subr.mxu0 %v10409_v6  ;;  %8051 = vmatmul.mubr.msk.f32.vlgmr.msra.gmra.mxu1 %vm1598_vm3, %v3080_v42  ;;  %v3966_v56 = vpop.permute.xlu0 %3965 }
 0x5c8   : > { %8058 = vmatmul.mubr.msk.f32.vlgmr.msra.gmra.mxu0 %vm1598_vm3, %v3082_v10  ;;  %8061 = vmatpush3.msra.mxu1 %v9499_v12 }
 0x5c9   : > { %v8451_v35 = vpop.eup %8450  ;;  %8068 = vmatpush3.msra.mxu0 %v9517_v60  ;;  %8062 = vmatprep.subr.mxu1 %v10409_v6 }
 0x5ca   : > { %8069 = vmatprep.subr.mxu0 %v10409_v6  ;;  %8063 = vmatpush3.msra.mxu1 %v9507_v27  ;;  %v4134_v41 = vpop.permute.xlu1 %4133  ;;  %v3086_v24 = vmul.f32 %v8451_v35, %v9447_v46 }
 0x5cb   : > { %8070 = vmatpush3.msra.mxu0 %v9521_v33  ;;  %8071 = vmatprep.mubr.msk.f32.mxu0 %vm8551_vm1, %v10409_v6  ;;  %v4050_v27 = vpop.permute.xlu0 %4049 }
 0x5cc   : > { %v8453_v22 = vpop.eup %8452  ;;  %8081 = vmatprep.subr.mxu0 %v10409_v6  ;;  %8072 = vmatmul.mubr.msk.f32.vlgmr.msra.gmra.mxu0 %vm1598_vm3, %v3086_v24 }
 0x5cd   : > { %8082 = vmatpush3.xpose.msk.msra.mxu0 %vm931_vm2, %v9525_v9  ;;  %8064 = vmatprep.mubr.msk.f32.mxu1 %vm8551_vm1, %v10409_v6  ;;  %v3084_v12 = vmul.f32 %v8453_v22, %v9451_v45 }
 0x5ce   : > { %v4132_v46 = vpop.permute.xlu1 %4131  ;;  %8074 = vmatprep.subr.mxu1 %v10409_v6  ;;  %8083 = vmatprep.subr.mxu0 %v10409_v6 }
 0x5cf   : > { %8065 = vmatmul.mubr.msk.f32.vlgmr.msra.gmra.mxu1 %vm1598_vm3, %v3084_v12  ;;  %8085 = vmatprep.mubr.msk.f32.mxu0 %vm8551_vm1, %v10409_v6  ;;  %v4048_v60 = vpop.permute.xlu0 %4047 }
 0x5d0   : > { %8075 = vmatpush3.xpose.msk.msra.mxu1 %vm931_vm2, %v9513_v0  ;;  %8078 = vmatprep.mubr.msk.f32.mxu1 %vm8551_vm1, %v10409_v6 }
 0x5d1   : > { %8084 = vmatpush3.xpose.msk.msra.mxu0 %vm931_vm2, %v9527_v21  ;;  %8076 = vmatprep.subr.mxu1 %v10409_v6 }
 0x5d2   : > { %v4216_v45 = vpop.permute.xlu1 %4215  ;;  %8095 = vmatprep.subr.mxu0 %v10409_v6 }
 0x5d4   : > { %8086 = vmatmul.mubr.msk.f32.vlgmr.msra.gmra.mxu0 %vm931_vm2, %v9523_v30  ;;  %8077 = vmatpush3.xpose.msk.msra.mxu1 %vm931_vm2, %v9515_v8 }
 0x5d5   : > { %8096 = vmatpush3.xpose.msk.msra.mxu0 %vm931_vm2, %v9532_v11  ;;  %8088 = vmatprep.subr.mxu1 %v10409_v6  ;;  %v4130_v11 = vpop.permute.xlu0 %4129 }
 0x5d6   : > { %v4298_v0 = vpop.permute.xlu1 %4297  ;;  %8097 = vmatprep.subr.mxu0 %v10409_v6  ;;  %8099 = vmatprep.mubr.msk.f32.mxu0 %vm8551_vm1, %v10409_v6 }
 0x5d7   : > { %8079 = vmatmul.mubr.msk.f32.vlgmr.msra.gmra.mxu1 %vm931_vm2, %v9519_v4 }
 0x5d8   : > { %8089 = vmatpush3.xpose.msk.msra.mxu1 %vm931_vm2, %v9529_v29  ;;  %8092 = vmatprep.mubr.msk.f32.mxu1 %vm8551_vm1, %v10409_v6 }
 0x5d9   : > { %8098 = vmatpush3.xpose.msk.msra.mxu0 %vm931_vm2, %v3968_v28  ;;  %8090 = vmatprep.subr.mxu1 %v10409_v6  ;;  %v4214_v33 = vpop.permute.xlu0 %4213 }
 0x5da   : > { %v4296_v8 = vpop.permute.xlu1 %4295  ;;  %8109 = vmatprep.subr.mxu0 %v10409_v6 }
 0x5dc   : > { %8100 = vmatmul.mubr.msk.f32.vlgmr.msra.gmra.mxu0 %vm931_vm2, %v3966_v56  ;;  %8091 = vmatpush3.xpose.msk.msra.mxu1 %vm931_vm2, %v9550_v40 }
 0x5dd   : > { %8110 = vmatpush3.xpose.msk.msra.mxu0 %vm931_vm2, %v4134_v41  ;;  %8102 = vmatprep.subr.mxu1 %v10409_v6  ;;  %v4212_v9 = vpop.permute.xlu0 %4211 }
 0x5de   : > { %v4294_v4 = vpop.permute.xlu1 %4293  ;;  %8111 = vmatprep.subr.mxu0 %v10409_v6  ;;  %8113 = vmatprep.mubr.msk.f32.mxu0 %vm8551_vm1, %v10409_v6 }
 0x5df   : > { %8093 = vmatmul.mubr.msk.f32.vlgmr.msra.gmra.mxu1 %vm931_vm2, %v9559_v25 }
 0x5e0   : > { %8103 = vmatpush3.xpose.msk.msra.mxu1 %vm931_vm2, %v4052_v34  ;;  %8106 = vmatprep.mubr.msk.f32.mxu1 %vm8551_vm1, %v10409_v6 }
 0x5e1   : > { %8112 = vmatpush3.xpose.msk.msra.mxu0 %vm931_vm2, %v4132_v46  ;;  %8104 = vmatprep.subr.mxu1 %v10409_v6  ;;  %v4553_v29 = vpop.permute.xlu0 %4552 }
 0x5e2   : > { %v4474_v30 = vpop.permute.xlu1 %4473  ;;  %8123 = vmatprep.subr.mxu0 %v10409_v6 }
 0x5e4   : > { %8114 = vmatmul.mubr.msk.f32.vlgmr.msra.gmra.mxu0 %vm931_vm2, %v4130_v11  ;;  %8105 = vmatpush3.xpose.msk.msra.mxu1 %vm931_vm2, %v4050_v27 }
 0x5e5   : > { %8124 = vmatpush3.xpose.msk.msra.mxu0 %vm931_vm2, %v4298_v0  ;;  %8116 = vmatprep.subr.mxu1 %v10409_v6 }
 0x5e6   : > { %8125 = vmatprep.subr.mxu0 %v10409_v6  ;;  %8127 = vmatprep.mubr.msk.f32.mxu0 %vm8551_vm1, %v10409_v6  ;;  %v4472_v21 = vpop.permute.xlu1 %4471 }
 0x5e7   : > { %8107 = vmatmul.mubr.msk.f32.vlgmr.msra.gmra.mxu1 %vm931_vm2, %v4048_v60 }
 0x5e8   : > { %8117 = vmatpush3.xpose.msk.msra.mxu1 %vm931_vm2, %v4216_v45  ;;  %8120 = vmatprep.mubr.msk.f32.mxu1 %vm8551_vm1, %v10409_v6 }
 0x5e9   : > { %8126 = vmatpush3.xpose.msk.msra.mxu0 %vm931_vm2, %v4296_v8  ;;  %8118 = vmatprep.subr.mxu1 %v10409_v6 }
 0x5ea   : > { %8137 = vmatprep.subr.mxu0 %v10409_v6  ;;  %v4551_v7 = vpop.permute.xlu1 %4550 }
 0x5ec   : > { %8128 = vmatmul.mubr.msk.f32.vlgmr.msra.gmra.mxu0 %vm931_vm2, %v4294_v4  ;;  %8119 = vmatpush3.xpose.msk.msra.mxu1 %vm931_vm2, %v4214_v33 }
 0x5ed   : > { %8138 = vmatpush3.msra.mxu0 %v4553_v29  ;;  %8130 = vmatprep.subr.mxu1 %v10409_v6 }
 0x5ee   : > { %8139 = vmatprep.subr.mxu0 %v10409_v6  ;;  %8141 = vmatprep.mubr.msk.f32.mxu0 %vm8551_vm1, %v10409_v6 }
 0x5ef   : > { %8140 = vmatpush3.msra.mxu0 %v4551_v7  ;;  %8121 = vmatmul.mubr.msk.f32.vlgmr.msra.gmra.mxu1 %vm931_vm2, %v4212_v9 }
 0x5f0   : > { %8131 = vmatpush3.msra.mxu1 %v4474_v30  ;;  %8151 = vmatprep.subr.mxu0 %v10409_v6 }
 0x5f1   : > { %8132 = vmatprep.subr.mxu1 %v10409_v6  ;;  %8134 = vmatprep.mubr.msk.f32.mxu1 %vm8551_vm1, %v10409_v6 }
 0x5f2   : > { %8133 = vmatpush3.msra.mxu1 %v4472_v21 }
 0x5f3   : > { %8144 = vmatprep.subr.mxu1 %v10409_v6 }
 0x662   : > { %v9662_v23 = vpop.f32.mrf.mxu0 }
 0x664   : > { %v8031_v5 = vpop.f32.mrf.mxu0 }
 0x677   : > { %v9664_v58 = vpop.f32.mrf.mxu1 }
 0x679   : > { %v8024_v40 = vpop.f32.mrf.mxu1 }
 0x67f   : > { %v9666_v26 = vpop.f32.mrf.mxu1 }
 0x681   : > { %v8038_v38 = vpop.f32.mrf.mxu1 }
 0x683   : > { %v9668_v28 = vpop.f32.mrf.mxu0 }
 0x685   : > { %v8045_v25 = vpop.f32.mrf.mxu0 }
 0x687   : > { %v9670_v16 = vpop.f32.mrf.mxu1 }
 0x688   : > { %10432 = vst [vmem:[#allocation12_spill] sm:$0xff] %v9670_v16  ;;  %v9672_v2 = vpop.f32.mrf.mxu0 }
 0x689   : > { %v8052_v42 = vpop.f32.mrf.mxu1 }
 0x68a   : > { %v8059_v34 = vpop.f32.mrf.mxu0 }
 0x68c   : > { %v9674_v10 = vpop.f32.mrf.mxu0 }
 0x68d   : > { %10433 = vst [vmem:[#allocation10_spill] sm:$0xff] %v9674_v10 }
 0x68e   : > { %v8073_v56 = vpop.f32.mrf.mxu0 }
 0x68f   : > { %v9676_v35 = vpop.f32.mrf.mxu1 }
 0x690   : > { %10434 = vst [vmem:[#allocation15_spill] sm:$0xff] %v9676_v35 }
 0x691   : > { %v8066_v41 = vpop.f32.mrf.mxu1 }
 0x694   : > { %v3879_v24 = vpop.f32.mrf.mxu0 }
 0x695   : > { %v9678_v22 = vmul.f32 0.35355338, %v3879_v24 }
 0x696   : > { %v8087_v12 = vpop.f32.mrf.mxu0 }
 0x697   : > { %v3797_v27 = vpop.f32.mrf.mxu1  ;;  %v4386_v46 = vsel %vm1598_vm3, %v9678_v22, -inf }
 0x698   : > { %v9682_v45 = vmul.f32 0.35355338, %v3797_v27  ;;  %4387 = vmax.xlane.f32.xlu1 %v4386_v46 }
 0x699   : > { %v8080_v60 = vpop.f32.mrf.mxu1 }
 0x69a   : > { %v4383_v0 = vsel %vm1598_vm3, %v9682_v45, -inf }
 0x69b   : > { %4384 = vmax.xlane.f32.xlu0 %v4383_v0 }
 0x69c   : > { %v4043_v11 = vpop.f32.mrf.mxu0 }
 0x69d   : > { %v4378_v9 = vmul.f32 0.35355338, %v4043_v11 }
 0x69e   : > { %v8101_v8 = vpop.f32.mrf.mxu0 }
 0x69f   : > { %v3961_v4 = vpop.f32.mrf.mxu1  ;;  %v4392_v40 = vsel %vm1598_vm3, %v4378_v9, -inf  ;;  %v10435_v8 = vld [vmem:[#allocation6_spill] sm:$0xff] }
 0x6a0   : > { %v4377_v33 = vmul.f32 0.35355338, %v3961_v4  ;;  %v10436_v4 = vld [vmem:[#allocation3_spill] sm:$0xff] }
 0x6a1   : > { %v8094_v30 = vpop.f32.mrf.mxu1 }
 0x6a2   : > { %v4389_v21 = vsel %vm1598_vm3, %v4377_v33, -inf  ;;  %v10437_v30 = vld [vmem:[#allocation7_spill] sm:$0xff] }
 0x6a3   : > { %4390 = vmax.xlane.f32.xlu0 %v4389_v21  ;;  %v10438_v21 = vld [vmem:[#allocation4_spill] sm:$0xff] }
 0x6a4   : > { %v4207_v29 = vpop.f32.mrf.mxu0 }
 0x6a5   : > { %v9687_v7 = vmul.f32 0.35355338, %v4207_v29  ;;  %v10439_v29 = vld [vmem:[#allocation18_spill] sm:$0xff] }
 0x6a6   : > { %v8115_v5 = vpop.f32.mrf.mxu0 }
 0x6a7   : > { %v4125_v38 = vpop.f32.mrf.mxu1  ;;  %4393 = vmax.xlane.f32.xlu0 %v4392_v40  ;;  %v4398_v56 = vsel %vm1598_vm3, %v9687_v7, -inf  ;;  %v10440_v5 = vld [vmem:[#allocation5_spill] sm:$0xff]  ;;  %v9729_v40 = vpop.permute.xlu1 %4710 }
 0x6a8   : > { %v4379_v25 = vmul.f32 0.35355338, %v4125_v38  ;;  %v9731_v38 = vpop.permute.xlu0 %4631 }
 0x6a9   : > { %v8108_v42 = vpop.f32.mrf.mxu1 }
 0x6aa   : > { %v4395_v34 = vsel %vm1598_vm3, %v4379_v25, -inf }
 0x6ab   : > { %4396 = vmax.xlane.f32.xlu1 %v4395_v34  ;;  %4399 = vmax.xlane.f32.xlu0 %v4398_v56  ;;  %v9733_v42 = vpop.permute.xlu1 %4708 }
 0x6ac   : > { %v4371_v41 = vpop.f32.mrf.mxu0  ;;  %v9735_v34 = vpop.permute.xlu0 %4629 }
 0x6ad   : > { %v9693_v24 = vmul.f32 0.35355338, %v4371_v41 }
 0x6ae   : > { %v8129_v12 = vpop.f32.mrf.mxu0 }
 0x6af   : > { %v4289_v27 = vpop.f32.mrf.mxu1  ;;  %v4404_v46 = vsel %vm1598_vm3, %v9693_v24, -inf  ;;  %v9737_v56 = vpop.permute.xlu1 %4868 }
 0x6b0   : > { %v9697_v60 = vmul.f32 0.35355338, %v4289_v27  ;;  %4405 = vmax.xlane.f32.xlu0 %v4404_v46  ;;  %v9739_v41 = vpop.permute.xlu0 %4789 }
 0x6b1   : > { %v8122_v0 = vpop.f32.mrf.mxu1 }
 0x6b2   : > { %v4401_v11 = vsel %vm1598_vm3, %v9697_v60, -inf }
 0x6b3   : > { %4402 = vmax.xlane.f32.xlu1 %v4401_v11 }
 0x6c4   : > { %4866 = vrot.lane.b32.xlu1 %v10419_v44, %s8559_s18 }
 0x6c6   : > { %4787 = vrot.lane.b32.xlu0 %v10420_v49, %s8559_s18 }
 0x6c8   : > { %5026 = vrot.lane.b32.xlu1 %v10421_v19, %s8559_s18 }
 0x6ca   : > { %4947 = vrot.lane.b32.xlu0 %v10422_v14, %s8559_s18 }
 0x6cc   : > { %5024 = vrot.lane.b32.xlu1 %v10423_v31, %s8559_s18 }
 0x6ce   : > { %4945 = vrot.lane.b32.xlu0 %v10424_v52, %s8559_s18 }
 0x6d0   : > { %5189 = vrot.lane.b32.xlu1 %v10425_v54, %s8560_s19  ;;  %v10441_v54 = vld [vmem:[#allocation17_spill] sm:$0xff] }
 0x6d2   : > { %5107 = vrot.lane.b32.xlu0 %v10435_v8, %s8560_s19 }
 0x6d4   : > { %5187 = vrot.lane.b32.xlu1 %v10436_v4, %s8560_s19 }
 0x6d6   : > { %5105 = vrot.lane.b32.xlu0 %v10437_v30, %s8560_s19 }
 0x6d8   : > { %5271 = vrot.lane.b32.xlu1 %v10438_v21, %s8560_s19 }
 0x6da   : > { %5103 = vrot.lane.b32.xlu0 %v10439_v29, %s8561_s20 }
 0x6dc   : > { %5353 = vrot.lane.b32.xlu1 %v10440_v5, %s8560_s19 }
 0x6de   : > { %5185 = vrot.lane.b32.xlu0 %v10441_v54, %s8561_s20 }
 0x721   : > { %v4388_v12 = vpop.xlane.xlu1 %4387 }
 0x722   : > { %v4408_v27 = vsub.f32 %v9678_v22, %v4388_v12 }
 0x724   : > { %v4417_v46 = vmul.f32 1.442695, %v4408_v27  ;;  %v4385_v0 = vpop.xlane.xlu0 %4384 }
 0x725   : > { %v4407_v11 = vsub.f32 %v9682_v45, %v4385_v0 }
 0x726   : > { %8454 = vpow2.f32 %v4417_v46 }
 0x727   : > { %v4415_v8 = vmul.f32 1.442695, %v4407_v11 }
 0x729   : > { %8456 = vpow2.f32 %v4415_v8 }
 0x72c   : > { %v4391_v4 = vpop.xlane.xlu0 %4390 }
 0x72d   : > { %v4409_v30 = vsub.f32 %v4377_v33, %v4391_v4 }
 0x72f   : > { %v4419_v21 = vmul.f32 1.442695, %v4409_v30 }
 0x730   : > { %v4394_v29 = vpop.xlane.xlu0 %4393 }
 0x731   : > { %8458 = vpow2.f32 %v4419_v21  ;;  %v4410_v5 = vsub.f32 %v4378_v9, %v4394_v29 }
 0x733   : > { %v9743_v54 = vpop.eup %8454  ;;  %v4421_v35 = vmul.f32 1.442695, %v4410_v5 }
 0x734   : > { %v4397_v10 = vpop.xlane.xlu1 %4396  ;;  %v4400_v16 = vpop.xlane.xlu0 %4399  ;;  %v4434_v22 = vsel %vm1598_vm3, %v9743_v54, 0.0 }
 0x735   : > { %8460 = vpow2.f32 %v4421_v35  ;;  %v4411_v12 = vsub.f32 %v4379_v25, %v4397_v10  ;;  %v4412_v45 = vsub.f32 %v9687_v7, %v4400_v16  ;;  %4435 = vadd.xlane.f32.xlu0 %v4434_v22 }
 0x736   : > { %v9748_v27 = vpop.eup %8456 }
 0x737   : > { %v4423_v33 = vmul.f32 1.442695, %v4411_v12  ;;  %v4425_v46 = vmul.f32 1.442695, %v4412_v45  ;;  %v4431_v9 = vsel %vm1598_vm3, %v9748_v27, 0.0 }
 0x738   : > { %4432 = vadd.xlane.f32.xlu1 %v4431_v9 }
 0x739   : > { %8462 = vpow2.f32 %v4423_v33  ;;  %v4406_v0 = vpop.xlane.xlu0 %4405 }
 0x73a   : > { %8464 = vpow2.f32 %v4425_v46  ;;  %v4414_v11 = vsub.f32 %v9693_v24, %v4406_v0 }
 0x73c   : > { %v4429_v8 = vmul.f32 1.442695, %v4414_v11  ;;  %v4403_v4 = vpop.xlane.xlu1 %4402 }
 0x73d   : > { %v4413_v10 = vsub.f32 %v9697_v60, %v4403_v4 }
 0x73e   : > { %v9754_v35 = vpop.eup %8458  ;;  %8466 = vpow2.f32 %v4429_v8 }
 0x73f   : > { %v4427_v16 = vmul.f32 1.442695, %v4413_v10  ;;  %v4437_v7 = vsel %vm1598_vm3, %v9754_v35, 0.0 }
 0x740   : > { %4438 = vadd.xlane.f32.xlu1 %v4437_v7 }
 0x741   : > { %8468 = vpow2.f32 %v4427_v16 }
 0x742   : > { %v9758_v25 = vpop.eup %8460 }
 0x743   : > { %v4440_v30 = vsel %vm1598_vm3, %v9758_v25, 0.0 }
 0x744   : > { %4441 = vadd.xlane.f32.xlu0 %v4440_v30 }
 0x746   : > { %v9762_v24 = vpop.eup %8462 }
 0x747   : > { %v9764_v21 = vpop.eup %8464  ;;  %v4443_v60 = vsel %vm1598_vm3, %v9762_v24, 0.0 }
 0x748   : > { %4444 = vadd.xlane.f32.xlu1 %v4443_v60  ;;  %v4446_v29 = vsel %vm1598_vm3, %v9764_v21, 0.0 }
 0x749   : > { %4447 = vadd.xlane.f32.xlu0 %v4446_v29 }
 0x74b   : > { %v9770_v5 = vpop.eup %8466 }
 0x74c   : > { %v4452_v22 = vsel %vm1598_vm3, %v9770_v5, 0.0 }
 0x74d   : > { %4453 = vadd.xlane.f32.xlu0 %v4452_v22 }
 0x74e   : > { %v9774_v12 = vpop.eup %8468 }
 0x74f   : > { %v4449_v45 = vsel %vm1598_vm3, %v9774_v12, 0.0 }
 0x750   : > { %4450 = vadd.xlane.f32.xlu1 %v4449_v45 }
 0x761   : > { %5351 = vrot.lane.b32.xlu1 %v8820_v36, %s8560_s19  ;;  %v9812_v36 = vpop.permute.xlu1 %4866 }
 0x763   : > { %5269 = vrot.lane.b32.xlu0 %v8810_v32, %s8560_s19  ;;  %v4788_v32 = vpop.permute.xlu0 %4787 }
 0x765   : > { %5435 = vrot.lane.b32.xlu1 %v8823_v37, %s8560_s19 }
 0x767   : > { %5267 = vrot.lane.b32.xlu0 %v8979_v13, %s8561_s20  ;;  %v9814_v37 = vpop.permute.xlu0 %4947 }
 0x769   : > { %5517 = vrot.lane.b32.xlu1 %v8840_v43, %s8560_s19 }
 0x76b   : > { %5349 = vrot.lane.b32.xlu0 %v8998_v62, %s8561_s20  ;;  %v9818_v43 = vpop.permute.xlu0 %4945 }
 0x76d   : > { %5515 = vrot.lane.b32.xlu1 %v8846_v47, %s8560_s19 }
 0x76f   : > { %5433 = vrot.lane.b32.xlu0 %v8830_v39, %s8560_s19  ;;  %v9816_v39 = vpop.permute.xlu1 %5026 }
 0x771   : > { %5599 = vrot.lane.b32.xlu1 %v8853_v48, %s8560_s19  ;;  %v9822_v48 = vpop.permute.xlu0 %5107 }
 0x773   : > { %5431 = vrot.lane.b32.xlu0 %v9015_v15, %s8561_s20  ;;  %v9820_v47 = vpop.permute.xlu1 %5024 }
 0x775   : > { %5681 = vrot.lane.b32.xlu1 %v8863_v51, %s8560_s19  ;;  %v9826_v51 = vpop.permute.xlu0 %5105 }
 0x777   : > { %5513 = vrot.lane.b32.xlu0 %v9027_v18, %s8561_s20 }
 0x779   : > { %5679 = vrot.lane.b32.xlu1 %v8870_v53, %s8560_s19 }
 0x77b   : > { %5597 = vrot.lane.b32.xlu0 %v8856_v50, %s8560_s19  ;;  %v9824_v50 = vpop.permute.xlu1 %5189 }
 0x77d   : > { %5677 = vrot.lane.b32.xlu1 %v9051_v20, %s8561_s20 }
 0x77f   : > { %5595 = vrot.lane.b32.xlu0 %v9039_v17, %s8561_s20  ;;  %v9828_v53 = vpop.permute.xlu1 %5187  ;;  %s10303_s20 = scalar_lea.vmem %s10358_s11, %s8646_s29 }
 0x781   : > { %5857 = vrot.lane.b32.xlu1 %v8883_v55, %s8562_s21  ;;  %v9830_v55 = vpop.permute.xlu0 %5103 }
 0x783   : > { %v9832_v13 = vpop.permute.xlu1 %5271 }
 0x785   : > { %v9834_v62 = vpop.permute.xlu0 %5185 }
 0x787   : > { %v9836_v15 = vpop.permute.xlu1 %5353 }
 0x7be   : > { %v4436_v18 = vpop.xlane.xlu0 %4435 }
 0x7bf   : > { %8470 = vrcp.f32 %v4436_v18 }
 0x7c1   : > { %v4433_v17 = vpop.xlane.xlu1 %4432 }
 0x7c2   : > { %8472 = vrcp.f32 %v4433_v17 }
 0x7c9   : > { %v4439_v20 = vpop.xlane.xlu1 %4438 }
 0x7ca   : > { %8474 = vrcp.f32 %v4439_v20 }
 0x7cc   : > { %v8471_v33 = vpop.eup %8470 }
 0x7cd   : > { %v4442_v46 = vpop.xlane.xlu0 %4441  ;;  %v4458_v9 = vmul.f32 %v8471_v33, %v9743_v54 }
 0x7ce   : > { %8476 = vrcp.f32 %v4442_v46 }
 0x7cf   : > { %v8473_v0 = vpop.eup %8472  ;;  %8142 = vmatmul.mubr.msk.f32.vlgmr.msra.gmra.mxu0 %vm1598_vm3, %v4458_v9 }
 0x7d0   : > { %8152 = vmatpush3.msra.mxu0 %v9729_v40  ;;  %v4456_v11 = vmul.f32 %v8473_v0, %v9748_v27  ;;  %8155 = vmatprep.mubr.msk.f32.mxu0 %vm8551_vm1, %v10409_v6 }
 0x7d1   : > { %8153 = vmatprep.subr.mxu0 %v10409_v6  ;;  %v4445_v8 = vpop.xlane.xlu1 %4444 }
 0x7d2   : > { %8154 = vmatpush3.msra.mxu0 %v9733_v42  ;;  %8478 = vrcp.f32 %v4445_v8  ;;  %v4448_v4 = vpop.xlane.xlu0 %4447  ;;  %8135 = vmatmul.mubr.msk.f32.vlgmr.msra.gmra.mxu1 %vm1598_vm3, %v4456_v11 }
 0x7d3   : > { %8480 = vrcp.f32 %v4448_v4  ;;  %8145 = vmatpush3.msra.mxu1 %v9731_v38  ;;  %8148 = vmatprep.mubr.msk.f32.mxu1 %vm8551_vm1, %v10409_v6 }
 0x7d4   : > { %8146 = vmatprep.subr.mxu1 %v10409_v6  ;;  %8165 = vmatprep.subr.mxu0 %v10409_v6 }
 0x7d5   : > { %8147 = vmatpush3.msra.mxu1 %v9735_v34 }
 0x7d6   : > { %v4454_v40 = vpop.xlane.xlu0 %4453  ;;  %8158 = vmatprep.subr.mxu1 %v10409_v6 }
 0x7d7   : > { %v8475_v42 = vpop.eup %8474  ;;  %8482 = vrcp.f32 %v4454_v40 }
 0x7d8   : > { %v4460_v54 = vmul.f32 %v8475_v42, %v9754_v35 }
 0x7d9   : > { %v4451_v27 = vpop.xlane.xlu1 %4450 }
 0x7da   : > { %8484 = vrcp.f32 %v4451_v27  ;;  %8149 = vmatmul.mubr.msk.f32.vlgmr.msra.gmra.mxu1 %vm1598_vm3, %v4460_v54  ;;  %v5270_v16 = vpop.permute.xlu0 %5269 }
 0x7db   : > { %v8477_v38 = vpop.eup %8476  ;;  %8159 = vmatpush3.msra.mxu1 %v9739_v41  ;;  %8162 = vmatprep.mubr.msk.f32.mxu1 %vm8551_vm1, %v10409_v6 }
 0x7dc   : > { %8160 = vmatprep.subr.mxu1 %v10409_v6  ;;  %v4462_v34 = vmul.f32 %v8477_v38, %v9758_v25 }
 0x7dd   : > { %8161 = vmatpush3.msra.mxu1 %v4788_v32  ;;  %v5352_v10 = vpop.permute.xlu1 %5351 }
 0x7de   : > { %8156 = vmatmul.mubr.msk.f32.vlgmr.msra.gmra.mxu0 %vm1598_vm3, %v4462_v34  ;;  %8172 = vmatprep.subr.mxu1 %v10409_v6  ;;  %v5268_v60 = vpop.permute.xlu0 %5267 }
 0x7df   : > { %v8479_v35 = vpop.eup %8478  ;;  %8166 = vmatpush3.msra.mxu0 %v9737_v56  ;;  %8169 = vmatprep.mubr.msk.f32.mxu0 %vm8551_vm1, %v10409_v6 }
 0x7e0   : > { %v8481_v41 = vpop.eup %8480  ;;  %8167 = vmatprep.subr.mxu0 %v10409_v6  ;;  %v4464_v7 = vmul.f32 %v8479_v35, %v9762_v24 }
 0x7e1   : > { %8168 = vmatpush3.msra.mxu0 %v9812_v36  ;;  %v5436_v25 = vpop.permute.xlu1 %5435  ;;  %v4466_v30 = vmul.f32 %v8481_v41, %v9764_v21 }
 0x7e2   : > { %8179 = vmatprep.subr.mxu0 %v10409_v6  ;;  %8163 = vmatmul.mubr.msk.f32.vlgmr.msra.gmra.mxu1 %vm1598_vm3, %v4464_v7 }
 0x7e3   : > { %8170 = vmatmul.mubr.msk.f32.vlgmr.msra.gmra.mxu0 %vm1598_vm3, %v4466_v30  ;;  %8173 = vmatpush3.msra.mxu1 %v9814_v37 }
 0x7e4   : > { %v8483_v56 = vpop.eup %8482  ;;  %8180 = vmatpush3.msra.mxu0 %v9816_v39  ;;  %8174 = vmatprep.subr.mxu1 %v10409_v6 }
 0x7e5   : > { %8181 = vmatprep.subr.mxu0 %v10409_v6  ;;  %8175 = vmatpush3.msra.mxu1 %v9818_v43  ;;  %v4470_v24 = vmul.f32 %v8483_v56, %v9770_v5  ;;  %v5518_v21 = vpop.permute.xlu1 %5517  ;;  %v5350_v5 = vpop.permute.xlu0 %5349 }
 0x7e6   : > { %8182 = vmatpush3.msra.mxu0 %v9820_v47  ;;  %8183 = vmatprep.mubr.msk.f32.mxu0 %vm8551_vm1, %v10409_v6 }
 0x7e7   : > { %v8485_v29 = vpop.eup %8484  ;;  %8193 = vmatprep.subr.mxu0 %v10409_v6  ;;  %8184 = vmatmul.mubr.msk.f32.vlgmr.msra.gmra.mxu0 %vm1598_vm3, %v4470_v24 }
 0x7e8   : > { %8194 = vmatpush3.xpose.msk.msra.mxu0 %vm931_vm2, %v9824_v50  ;;  %8176 = vmatprep.mubr.msk.f32.mxu1 %vm8551_vm1, %v10409_v6  ;;  %v4468_v22 = vmul.f32 %v8485_v29, %v9774_v12 }
 0x7e9   : > { %8186 = vmatprep.subr.mxu1 %v10409_v6  ;;  %8195 = vmatprep.subr.mxu0 %v10409_v6  ;;  %v5516_v45 = vpop.permute.xlu1 %5515  ;;  %v5434_v12 = vpop.permute.xlu0 %5433 }
 0x7ea   : > { %8177 = vmatmul.mubr.msk.f32.vlgmr.msra.gmra.mxu1 %vm1598_vm3, %v4468_v22  ;;  %8197 = vmatprep.mubr.msk.f32.mxu0 %vm8551_vm1, %v10409_v6 }
 0x7eb   : > { %8187 = vmatpush3.xpose.msk.msra.mxu1 %vm931_vm2, %v9822_v48  ;;  %8190 = vmatprep.mubr.msk.f32.mxu1 %vm8551_vm1, %v10409_v6 }
 0x7ec   : > { %8196 = vmatpush3.xpose.msk.msra.mxu0 %vm931_vm2, %v9828_v53  ;;  %8188 = vmatprep.subr.mxu1 %v10409_v6 }
 0x7ed   : > { %8207 = vmatprep.subr.mxu0 %v10409_v6  ;;  %v5600_v32 = vpop.permute.xlu1 %5599  ;;  %v5432_v36 = vpop.permute.xlu0 %5431 }
 0x7ef   : > { %8198 = vmatmul.mubr.msk.f32.vlgmr.msra.gmra.mxu0 %vm931_vm2, %v9834_v62  ;;  %8189 = vmatpush3.xpose.msk.msra.mxu1 %vm931_vm2, %v9826_v51 }
 0x7f0   : > { %8208 = vmatpush3.xpose.msk.msra.mxu0 %vm931_vm2, %v9836_v15  ;;  %8200 = vmatprep.subr.mxu1 %v10409_v6 }
 0x7f1   : > { %8209 = vmatprep.subr.mxu0 %v10409_v6  ;;  %8211 = vmatprep.mubr.msk.f32.mxu0 %vm8551_vm1, %v10409_v6  ;;  %v5682_v37 = vpop.permute.xlu1 %5681  ;;  %v5514_v39 = vpop.permute.xlu0 %5513 }
 0x7f2   : > { %8191 = vmatmul.mubr.msk.f32.vlgmr.msra.gmra.mxu1 %vm931_vm2, %v9830_v55 }
 0x7f3   : > { %8201 = vmatpush3.xpose.msk.msra.mxu1 %vm931_vm2, %v9832_v13  ;;  %8204 = vmatprep.mubr.msk.f32.mxu1 %vm8551_vm1, %v10409_v6 }
 0x7f4   : > { %8210 = vmatpush3.xpose.msk.msra.mxu0 %vm931_vm2, %v5352_v10  ;;  %8202 = vmatprep.subr.mxu1 %v10409_v6 }
 0x7f5   : > { %8221 = vmatprep.subr.mxu0 %v10409_v6  ;;  %v5680_v43 = vpop.permute.xlu1 %5679  ;;  %v5598_v47 = vpop.permute.xlu0 %5597 }
 0x7f7   : > { %8212 = vmatmul.mubr.msk.f32.vlgmr.msra.gmra.mxu0 %vm931_vm2, %v5350_v5  ;;  %8203 = vmatpush3.xpose.msk.msra.mxu1 %vm931_vm2, %v5270_v16 }
 0x7f8   : > { %8222 = vmatpush3.xpose.msk.msra.mxu0 %vm931_vm2, %v5518_v21  ;;  %8214 = vmatprep.subr.mxu1 %v10409_v6 }
 0x7f9   : > { %8223 = vmatprep.subr.mxu0 %v10409_v6  ;;  %8225 = vmatprep.mubr.msk.f32.mxu0 %vm8551_vm1, %v10409_v6  ;;  %v5678_v48 = vpop.permute.xlu1 %5677  ;;  %v5596_v50 = vpop.permute.xlu0 %5595 }
 0x7fa   : > { %8205 = vmatmul.mubr.msk.f32.vlgmr.msra.gmra.mxu1 %vm931_vm2, %v5268_v60 }
 0x7fb   : > { %8215 = vmatpush3.xpose.msk.msra.mxu1 %vm931_vm2, %v5436_v25  ;;  %8218 = vmatprep.mubr.msk.f32.mxu1 %vm8551_vm1, %v10409_v6 }
 0x7fc   : > { %8224 = vmatpush3.xpose.msk.msra.mxu0 %vm931_vm2, %v5516_v45  ;;  %8216 = vmatprep.subr.mxu1 %v10409_v6 }
 0x7fd   : > { %8235 = vmatprep.subr.mxu0 %v10409_v6  ;;  %v5858_v51 = vpop.permute.xlu1 %5857 }
 0x7ff   : > { %8226 = vmatmul.mubr.msk.f32.vlgmr.msra.gmra.mxu0 %vm931_vm2, %v5514_v39  ;;  %8217 = vmatpush3.xpose.msk.msra.mxu1 %vm931_vm2, %v5434_v12 }
 0x800   : > { %8236 = vmatpush3.xpose.msk.msra.mxu0 %vm931_vm2, %v5682_v37  ;;  %8228 = vmatprep.subr.mxu1 %v10409_v6 }
 0x801   : > { %8237 = vmatprep.subr.mxu0 %v10409_v6  ;;  %8239 = vmatprep.mubr.msk.f32.mxu0 %vm8551_vm1, %v10409_v6 }
 0x802   : > { %8219 = vmatmul.mubr.msk.f32.vlgmr.msra.gmra.mxu1 %vm931_vm2, %v5432_v36 }
 0x803   : > { %8229 = vmatpush3.xpose.msk.msra.mxu1 %vm931_vm2, %v5600_v32  ;;  %8232 = vmatprep.mubr.msk.f32.mxu1 %vm8551_vm1, %v10409_v6 }
 0x804   : > { %8238 = vmatpush3.xpose.msk.msra.mxu0 %vm931_vm2, %v5680_v43  ;;  %8230 = vmatprep.subr.mxu1 %v10409_v6 }
 0x805   : > { %8249 = vmatprep.subr.mxu0 %v10409_v6 }
 0x807   : > { %8240 = vmatmul.mubr.msk.f32.vlgmr.msra.gmra.mxu0 %vm931_vm2, %v5678_v48  ;;  %8231 = vmatpush3.xpose.msk.msra.mxu1 %vm931_vm2, %v5598_v47 }
 0x808   : > { %8242 = vmatprep.subr.mxu1 %v10409_v6  ;;  %8253 = vmatprep.mubr.msk.f32.mxu0 %vm8551_vm1, %v10409_v6 }
 0x80a   : > { %8233 = vmatmul.mubr.msk.f32.vlgmr.msra.gmra.mxu1 %vm931_vm2, %v5596_v50 }
 0x80b   : > { %8243 = vmatpush3.msra.mxu1 %v5858_v51  ;;  %8246 = vmatprep.mubr.msk.f32.mxu1 %vm8551_vm1, %v10409_v6 }
 0x80c   : > { %8244 = vmatprep.subr.mxu1 %v10409_v6 }
 0x88f   : > { %v9958_v53 = vpop.f32.mrf.mxu0 }
 0x891   : > { %v8143_v55 = vpop.f32.mrf.mxu0 }
 0x892   : > { %v9960_v13 = vpop.f32.mrf.mxu1 }
 0x894   : > { %v8136_v62 = vpop.f32.mrf.mxu1 }
 0x89a   : > { %v9962_v15 = vpop.f32.mrf.mxu1 }
 0x89c   : > { %v8150_v18 = vpop.f32.mrf.mxu1 }
 0x89d   : > { %v10442_v18 = vld [vmem:[#allocation8_spill] sm:$0xff] }
 0x89e   : > { %v9964_v17 = vpop.f32.mrf.mxu0 }
 0x8a0   : > { %v8157_v20 = vpop.f32.mrf.mxu0 }
 0x8a2   : > { %v9966_v33 = vpop.f32.mrf.mxu1 }
 0x8a3   : > { %v9968_v46 = vpop.f32.mrf.mxu0 }
 0x8a4   : > { %v8164_v9 = vpop.f32.mrf.mxu1 }
 0x8a5   : > { %v8171_v0 = vpop.f32.mrf.mxu0 }
 0x8a7   : > { %v9970_v11 = vpop.f32.mrf.mxu0 }
 0x8a9   : > { %v8185_v8 = vpop.f32.mrf.mxu0 }
 0x8aa   : > { %v9972_v4 = vpop.f32.mrf.mxu1 }
 0x8ac   : > { %v8178_v40 = vpop.f32.mrf.mxu1 }
 0x8af   : > { %v5263_v42 = vpop.f32.mrf.mxu0 }
 0x8b0   : > { %v5760_v54 = vmul.f32 0.35355338, %v5263_v42 }
 0x8b1   : > { %v8199_v27 = vpop.f32.mrf.mxu0 }
 0x8b2   : > { %v5181_v38 = vpop.f32.mrf.mxu1  ;;  %v5770_v34 = vsel %vm1598_vm3, %v5760_v54, -inf }
 0x8b3   : > { %v5759_v10 = vmul.f32 0.35355338, %v5181_v38  ;;  %5771 = vmax.xlane.f32.xlu1 %v5770_v34 }
 0x8b4   : > { %v8192_v35 = vpop.f32.mrf.mxu1 }
 0x8b5   : > { %v5767_v16 = vsel %vm1598_vm3, %v5759_v10, -inf }
 0x8b6   : > { %5768 = vmax.xlane.f32.xlu0 %v5767_v16 }
 0x8b7   : > { %v5427_v41 = vpop.f32.mrf.mxu0 }
 0x8b8   : > { %v5762_v60 = vmul.f32 0.35355338, %v5427_v41 }
 0x8b9   : > { %v8213_v7 = vpop.f32.mrf.mxu0 }
 0x8ba   : > { %v5345_v25 = vpop.f32.mrf.mxu1  ;;  %v5776_v5 = vsel %vm1598_vm3, %v5762_v60, -inf }
 0x8bb   : > { %v5761_v30 = vmul.f32 0.35355338, %v5345_v25 }
 0x8bc   : > { %v8206_v56 = vpop.f32.mrf.mxu1 }
 0x8bd   : > { %v5773_v24 = vsel %vm1598_vm3, %v5761_v30, -inf }
 0x8be   : > { %5774 = vmax.xlane.f32.xlu0 %v5773_v24 }
 0x8bf   : > { %v5591_v21 = vpop.f32.mrf.mxu0 }
 0x8c0   : > { %v5764_v29 = vmul.f32 0.35355338, %v5591_v21 }
 0x8c1   : > { %v8227_v22 = vpop.f32.mrf.mxu0 }
 0x8c2   : > { %v5509_v45 = vpop.f32.mrf.mxu1  ;;  %5777 = vmax.xlane.f32.xlu0 %v5776_v5  ;;  %v5782_v37 = vsel %vm1598_vm3, %v5764_v29, -inf }
 0x8c3   : > { %v5763_v12 = vmul.f32 0.35355338, %v5509_v45 }
 0x8c4   : > { %v8220_v32 = vpop.f32.mrf.mxu1 }
 0x8c5   : > { %v5779_v36 = vsel %vm1598_vm3, %v5763_v12, -inf }
 0x8c6   : > { %5780 = vmax.xlane.f32.xlu1 %v5779_v36  ;;  %5783 = vmax.xlane.f32.xlu0 %v5782_v37 }
 0x8c7   : > { %v5755_v39 = vpop.f32.mrf.mxu0 }
 0x8c8   : > { %v5766_v43 = vmul.f32 0.35355338, %v5755_v39 }
 0x8c9   : > { %v8241_v47 = vpop.f32.mrf.mxu0 }
 0x8ca   : > { %v5673_v48 = vpop.f32.mrf.mxu1  ;;  %v5788_v50 = vsel %vm1598_vm3, %v5766_v43, -inf }
 0x8cb   : > { %v5765_v51 = vmul.f32 0.35355338, %v5673_v48  ;;  %5789 = vmax.xlane.f32.xlu0 %v5788_v50 }
 0x8cc   : > { %v8234_v55 = vpop.f32.mrf.mxu1 }
 0x8cd   : > { %v5785_v62 = vsel %vm1598_vm3, %v5765_v51, -inf }
 0x8ce   : > { %5786 = vmax.xlane.f32.xlu1 %v5785_v62 }
 0x8df   : > { %5855 = vrot.lane.b32.xlu1 %v8886_v57, %s8562_s21  ;;  %v10443_v57 = vld [vmem:[#allocation9_spill] sm:$0xff] }
 0x8e1   : > { %5936 = vrot.lane.b32.xlu0 %v8891_v59, %s8562_s21  ;;  %v10444_v59 = vld [vmem:[#allocation11_spill] sm:$0xff] }
 0x8e3   : > { %5934 = vrot.lane.b32.xlu1 %v8896_v61, %s8562_s21 }
 0x8e5   : > { %6015 = vrot.lane.b32.xlu0 %v8901_v63, %s8562_s21 }
 0x8e7   : > { %6094 = vrot.lane.b32.xlu1 %v8911_v3, %s8562_s21 }
 0x8e9   : > { %6013 = vrot.lane.b32.xlu0 %v8904_v1, %s8562_s21 }
 0x8eb   : > { %6092 = vrot.lane.b32.xlu1 %v10442_v18, %s8562_s21 }
 0x8ed   : > { %6173 = vrot.lane.b32.xlu0 %v10443_v57, %s8562_s21 }
 0x8ef   : > { %6252 = vrot.lane.b32.xlu1 %v10444_v59, %s8562_s21 }
 0x8f1   : > { %6171 = vrot.lane.b32.xlu0 %v10420_v49, %s8562_s21 }
 0x8f3   : > { %6250 = vrot.lane.b32.xlu1 %v10419_v44, %s8562_s21 }
 0x8f5   : > { %6331 = vrot.lane.b32.xlu0 %v10422_v14, %s8562_s21 }
 0x8f7   : > { %6410 = vrot.lane.b32.xlu1 %v10421_v19, %s8562_s21 }
 0x93c   : > { %v5772_v61 = vpop.xlane.xlu1 %5771 }
 0x93d   : > { %v5792_v63 = vsub.f32 %v5760_v54, %v5772_v61 }
 0x93f   : > { %v5801_v1 = vmul.f32 1.442695, %v5792_v63  ;;  %v5769_v3 = vpop.xlane.xlu0 %5768 }
 0x940   : > { %v5791_v20 = vsub.f32 %v5759_v10, %v5769_v3 }
 0x941   : > { %8486 = vpow2.f32 %v5801_v1 }
 0x942   : > { %v5799_v9 = vmul.f32 1.442695, %v5791_v20 }
 0x944   : > { %8488 = vpow2.f32 %v5799_v9 }
 0x947   : > { %v5775_v0 = vpop.xlane.xlu0 %5774 }
 0x948   : > { %v5793_v8 = vsub.f32 %v5761_v30, %v5775_v0 }
 0x94a   : > { %v5803_v49 = vmul.f32 1.442695, %v5793_v8 }
 0x94b   : > { %v5778_v40 = vpop.xlane.xlu0 %5777 }
 0x94c   : > { %8490 = vpow2.f32 %v5803_v49  ;;  %v5794_v44 = vsub.f32 %v5762_v60, %v5778_v40 }
 0x94e   : > { %v10008_v42 = vpop.eup %8486  ;;  %v5805_v14 = vmul.f32 1.442695, %v5794_v44 }
 0x94f   : > { %v5781_v27 = vpop.xlane.xlu1 %5780  ;;  %v5784_v38 = vpop.xlane.xlu0 %5783  ;;  %v5818_v19 = vsel %vm1598_vm3, %v10008_v42, 0.0 }
 0x950   : > { %8492 = vpow2.f32 %v5805_v14  ;;  %v5795_v54 = vsub.f32 %v5763_v12, %v5781_v27  ;;  %v5796_v34 = vsub.f32 %v5764_v29, %v5784_v38  ;;  %5819 = vadd.xlane.f32.xlu0 %v5818_v19 }
 0x951   : > { %v10012_v10 = vpop.eup %8488 }
 0x952   : > { %v5807_v35 = vmul.f32 1.442695, %v5795_v54  ;;  %v5809_v16 = vmul.f32 1.442695, %v5796_v34  ;;  %v5815_v41 = vsel %vm1598_vm3, %v10012_v10, 0.0 }
 0x953   : > { %5816 = vadd.xlane.f32.xlu1 %v5815_v41  ;;  %v6613_v41 = vld [vmem:[%s10353_s6 + $0x8] sm:$0xff] }
 0x954   : > { %8494 = vpow2.f32 %v5807_v35  ;;  %v5790_v7 = vpop.xlane.xlu0 %5789  ;;  %v6615_v35 = vld [vmem:[%s10353_s6 + $0x18] sm:$0xff] }
 0x955   : > { %8496 = vpow2.f32 %v5809_v16  ;;  %v5798_v25 = vsub.f32 %v5766_v43, %v5790_v7  ;;  %v6614_v16 = vld [vmem:[%s10353_s6 + $0x10] sm:$0xff] }
 0x957   : > { %v5813_v30 = vmul.f32 1.442695, %v5798_v25  ;;  %v5787_v56 = vpop.xlane.xlu1 %5786 }
 0x958   : > { %v5797_v60 = vsub.f32 %v5765_v51, %v5787_v56  ;;  %v5937_v24 = vpop.permute.xlu0 %5936 }
 0x959   : > { %v10016_v21 = vpop.eup %8490  ;;  %8498 = vpow2.f32 %v5813_v30  ;;  %8250 = vmatpush3.msra.mxu0 %v5937_v24 }
 0x95a   : > { %v5811_v29 = vmul.f32 1.442695, %v5797_v60  ;;  %v5821_v22 = vsel %vm1598_vm3, %v10016_v21, 0.0  ;;  %8251 = vmatprep.subr.mxu0 %v10409_v6 }
 0x95b   : > { %5822 = vadd.xlane.f32.xlu1 %v5821_v22  ;;  %v5856_v5 = vpop.permute.xlu1 %5855  ;;  %v6752_v22 = vld [vmem:[%s10354_s7 + $0x18] sm:$0xff] }
 0x95c   : > { %8500 = vpow2.f32 %v5811_v29  ;;  %8245 = vmatpush3.msra.mxu1 %v5856_v5 }
 0x95d   : > { %v10021_v45 = vpop.eup %8492  ;;  %8256 = vmatprep.subr.mxu1 %v10409_v6 }
 0x95e   : > { %v5824_v12 = vsel %vm1598_vm3, %v10021_v45, 0.0 }
 0x95f   : > { %v5935_v32 = vpop.permute.xlu1 %5934  ;;  %5825 = vadd.xlane.f32.xlu0 %v5824_v12 }
 0x960   : > { %8252 = vmatpush3.msra.mxu0 %v5935_v32 }
 0x961   : > { %v10026_v36 = vpop.eup %8494  ;;  %8263 = vmatprep.subr.mxu0 %v10409_v6 }
 0x962   : > { %v10029_v37 = vpop.eup %8496  ;;  %v5827_v39 = vsel %vm1598_vm3, %v10026_v36, 0.0 }
 0x963   : > { %5828 = vadd.xlane.f32.xlu1 %v5827_v39  ;;  %v5830_v43 = vsel %vm1598_vm3, %v10029_v37, 0.0 }
 0x964   : > { %5831 = vadd.xlane.f32.xlu0 %v5830_v43 }
 0x966   : > { %v10035_v47 = vpop.eup %8498 }
 0x967   : > { %v5836_v48 = vsel %vm1598_vm3, %v10035_v47, 0.0 }
 0x968   : > { %5837 = vadd.xlane.f32.xlu0 %v5836_v48 }
 0x969   : > { %v10039_v50 = vpop.eup %8500 }
 0x96a   : > { %v5833_v51 = vsel %vm1598_vm3, %v10039_v50, 0.0 }
 0x96b   : > { %5834 = vadd.xlane.f32.xlu1 %v5833_v51 }
 0x97c   : > { %6408 = vrot.lane.b32.xlu1 %v10423_v31, %s8562_s21  ;;  %v10445_v31 = vld [vmem:[#allocation12_spill] sm:$0xff] }
 0x97e   : > { %6329 = vrot.lane.b32.xlu0 %v10424_v52, %s8562_s21  ;;  %v10446_v52 = vld [vmem:[#allocation10_spill] sm:$0xff] }
 0x980   : > { %6497 = vrot.lane.b32.xlu1 %v9662_v23, %s8563_s22  ;;  %v10447_v23 = vld [vmem:[#allocation15_spill] sm:$0xff] }
 0x982   : > { %6495 = vrot.lane.b32.xlu0 %v9664_v58, %s8563_s22  ;;  %v6016_v58 = vpop.permute.xlu0 %6015 }
 0x984   : > { %6529 = vrot.lane.b32.xlu1 %v9958_v53, %s8564_s23 }
 0x986   : > { %6527 = vrot.lane.b32.xlu0 %v9960_v13, %s8564_s23 }
 0x988   : > { %6501 = vrot.lane.b32.xlu1 %v9668_v28, %s8563_s22  ;;  %v6014_v28 = vpop.permute.xlu0 %6013 }
 0x98a   : > { %6499 = vrot.lane.b32.xlu0 %v9666_v26, %s8563_s22  ;;  %v6095_v26 = vpop.permute.xlu1 %6094 }
 0x98c   : > { %6533 = vrot.lane.b32.xlu1 %v9964_v17, %s8564_s23  ;;  %v6174_v13 = vpop.permute.xlu0 %6173 }
 0x98e   : > { %6531 = vrot.lane.b32.xlu0 %v9962_v15, %s8564_s23  ;;  %v6093_v53 = vpop.permute.xlu1 %6092 }
 0x990   : > { %6505 = vrot.lane.b32.xlu1 %v9672_v2, %s8563_s22  ;;  %v6172_v15 = vpop.permute.xlu0 %6171 }
 0x992   : > { %6503 = vrot.lane.b32.xlu0 %v10445_v31, %s8563_s22  ;;  %v6253_v2 = vpop.permute.xlu1 %6252 }
 0x994   : > { %6537 = vrot.lane.b32.xlu1 %v9968_v46, %s8564_s23  ;;  %v6332_v55 = vpop.permute.xlu0 %6331 }
 0x996   : > { %6535 = vrot.lane.b32.xlu0 %v9966_v33, %s8564_s23  ;;  %v6251_v17 = vpop.permute.xlu1 %6250 }
 0x998   : > { %6509 = vrot.lane.b32.xlu1 %v10446_v52, %s8563_s22 }
 0x99a   : > { %6507 = vrot.lane.b32.xlu0 %v10447_v23, %s8563_s22  ;;  %v6411_v46 = vpop.permute.xlu1 %6410 }
 0x99c   : > { %6541 = vrot.lane.b32.xlu1 %v9970_v11, %s8564_s23 }
 0x99e   : > { %6539 = vrot.lane.b32.xlu0 %v9972_v4, %s8564_s23 }
 0x9d9   : > { %v5820_v62 = vpop.xlane.xlu0 %5819 }
 0x9da   : > { %8502 = vrcp.f32 %v5820_v62 }
 0x9dc   : > { %v5817_v33 = vpop.xlane.xlu1 %5816 }
 0x9dd   : > { %8504 = vrcp.f32 %v5817_v33 }
 0x9e4   : > { %v5823_v18 = vpop.xlane.xlu1 %5822 }
 0x9e5   : > { %8506 = vrcp.f32 %v5823_v18  ;;  %v10449_v18 = vld [vmem:[#allocation20_spill] sm:$0xff] }
 0x9e7   : > { %v8503_v57 = vpop.eup %8502 }
 0x9e8   : > { %v5826_v11 = vpop.xlane.xlu0 %5825  ;;  %v5842_v4 = vmul.f32 %v8503_v57, %v10008_v42 }
 0x9e9   : > { %8508 = vrcp.f32 %v5826_v11 }
 0x9ea   : > { %v8505_v59 = vpop.eup %8504  ;;  %8254 = vmatmul.mubr.msk.f32.vlgmr.msra.gmra.mxu0 %vm1598_vm3, %v5842_v4 }
 0x9eb   : > { %8264 = vmatpush3.msra.mxu0 %v6095_v26  ;;  %v5840_v61 = vmul.f32 %v8505_v59, %v10012_v10  ;;  %8267 = vmatprep.mubr.msk.f32.mxu0 %vm8551_vm1, %v10409_v6 }
 0x9ec   : > { %8265 = vmatprep.subr.mxu0 %v10409_v6  ;;  %v5829_v63 = vpop.xlane.xlu1 %5828 }
 0x9ed   : > { %8266 = vmatpush3.msra.mxu0 %v6093_v53  ;;  %8510 = vrcp.f32 %v5829_v63  ;;  %v5832_v1 = vpop.xlane.xlu0 %5831  ;;  %8247 = vmatmul.mubr.msk.f32.vlgmr.msra.gmra.mxu1 %vm1598_vm3, %v5840_v61 }
 0x9ee   : > { %8512 = vrcp.f32 %v5832_v1  ;;  %8257 = vmatpush3.msra.mxu1 %v6016_v58  ;;  %8260 = vmatprep.mubr.msk.f32.mxu1 %vm8551_vm1, %v10409_v6  ;;  %v10450_v1 = vld [vmem:[#allocation23_spill] sm:$0xff] }
 0x9ef   : > { %8258 = vmatprep.subr.mxu1 %v10409_v6  ;;  %8277 = vmatprep.subr.mxu0 %v10409_v6 }
 0x9f0   : > { %8259 = vmatpush3.msra.mxu1 %v6014_v28 }
 0x9f1   : > { %v5838_v3 = vpop.xlane.xlu0 %5837  ;;  %8270 = vmatprep.subr.mxu1 %v10409_v6 }
 0x9f2   : > { %v8507_v20 = vpop.eup %8506  ;;  %8514 = vrcp.f32 %v5838_v3 }
 0x9f3   : > { %v5844_v9 = vmul.f32 %v8507_v20, %v10016_v21 }
 0x9f4   : > { %v5835_v0 = vpop.xlane.xlu1 %5834 }
 0x9f5   : > { %8516 = vrcp.f32 %v5835_v0  ;;  %8261 = vmatmul.mubr.msk.f32.vlgmr.msra.gmra.mxu1 %vm1598_vm3, %v5844_v9  ;;  %v6330_v38 = vpop.permute.xlu0 %6329 }
 0x9f6   : > { %v8509_v8 = vpop.eup %8508  ;;  %8271 = vmatpush3.msra.mxu1 %v6174_v13  ;;  %8274 = vmatprep.mubr.msk.f32.mxu1 %vm8551_vm1, %v10409_v6 }
 0x9f7   : > { %8272 = vmatprep.subr.mxu1 %v10409_v6  ;;  %v5846_v49 = vmul.f32 %v8509_v8, %v10021_v45  ;;  %v10451_v8 = vld [vmem:[#allocation24_spill] sm:$0xff] }
 0x9f8   : > { %8273 = vmatpush3.msra.mxu1 %v6172_v15  ;;  %v6409_v19 = vpop.permute.xlu1 %6408 }
 0x9f9   : > { %8268 = vmatmul.mubr.msk.f32.vlgmr.msra.gmra.mxu0 %vm1598_vm3, %v5846_v49  ;;  %8284 = vmatprep.subr.mxu1 %v10409_v6  ;;  %v6496_v48 = vpop.permute.xlu0 %6495 }
 0x9fa   : > { %v8511_v40 = vpop.eup %8510  ;;  %8278 = vmatpush3.msra.mxu0 %v6253_v2  ;;  %8281 = vmatprep.mubr.msk.f32.mxu0 %vm8551_vm1, %v10409_v6 }
 0x9fb   : > { %v8513_v44 = vpop.eup %8512  ;;  %8279 = vmatprep.subr.mxu0 %v10409_v6  ;;  %v5848_v42 = vmul.f32 %v8511_v40, %v10026_v36 }
 0x9fc   : > { %8280 = vmatpush3.msra.mxu0 %v6251_v17  ;;  %v5850_v14 = vmul.f32 %v8513_v44, %v10029_v37 }
 0x9fd   : > { %8291 = vmatprep.subr.mxu0 %v10409_v6  ;;  %8275 = vmatmul.mubr.msk.f32.vlgmr.msra.gmra.mxu1 %vm1598_vm3, %v5848_v42  ;;  %v6528_v51 = vpop.permute.xlu0 %6527 }
 0x9fe   : > { %8282 = vmatmul.mubr.msk.f32.vlgmr.msra.gmra.mxu0 %vm1598_vm3, %v5850_v14  ;;  %8285 = vmatpush3.msra.mxu1 %v6332_v55  ;;  %v10452_v14 = vld [vmem:[#allocation25_spill] sm:$0xff] }
 0x9ff   : > { %v8515_v27 = vpop.eup %8514  ;;  %8292 = vmatpush3.msra.mxu0 %v6411_v46  ;;  %8286 = vmatprep.subr.mxu1 %v10409_v6  ;;  %v10448_v46 = vld [vmem:[#allocation19_spill] sm:$0xff] }
 0xa00   : > { %8293 = vmatprep.subr.mxu0 %v10409_v6  ;;  %8287 = vmatpush3.msra.mxu1 %v6330_v38  ;;  %v5854_v54 = vmul.f32 %v8515_v27, %v10035_v47  ;;  %v6498_v47 = vpop.permute.xlu1 %6497  ;;  %v6583_v62 = vsel %vm931_vm2, %v10448_v46, %v6496_v48  ;;  %v10453_v38 = vld [vmem:[#allocation21_spill] sm:$0xff] }
 0xa01   : > { %8294 = vmatpush3.msra.mxu0 %v6409_v19  ;;  %8295 = vmatprep.mubr.msk.f32.mxu0 %vm8551_vm1, %v10409_v6  ;;  %v6500_v52 = vpop.permute.xlu0 %6499  ;;  %v6584_v57 = vsel %vm931_vm2, %v10449_v18, %v6498_v47  ;;  %v6591_v11 = vsel %vm1598_vm3, %v6583_v62, %v6528_v51  ;;  %v7475_v47 = vld [vmem:[%s10357_s10] ss:$0 sm:$0xff]  ;;  %v6900_v46 = vld [vmem:[%s10356_s9 + $0x18] sm:$0xff]  ;;  %v6899_v62 = vld [vmem:[%s10356_s9 + $0x10] sm:$0xff] }
 0xa02   : > { %v8517_v34 = vpop.eup %8516  ;;  %8296 = vmatmul.mubr.msk.f32.vlgmr.msra.gmra.mxu0 %vm1598_vm3, %v5854_v54  ;;  %8288 = vmatprep.mubr.msk.f32.mxu1 %vm8551_vm1, %v10409_v6  ;;  %v6612_v6 = vld [vmem:[%s10353_s6] sm:$0xff]  ;;  %v6585_v3 = vsel %vm931_vm2, %v10450_v1, %v6500_v52 }
 0xa03   : > { %v5852_v10 = vmul.f32 %v8517_v34, %v10039_v50  ;;  %8298 = vmatprep.subr.mxu1 %v6615_v35  ;;  %8318 = vmatprep.subr.mxu0 %v6752_v22  ;;  %v6897_v18 = vld [vmem:[%s10356_s9] sm:$0xff] }
 0xa04   : > { %8319 = vmatpush3.msra.mxu0 %v6752_v22  ;;  %v6530_v50 = vpop.permute.xlu1 %6529 }
 0xa05   : > { %8289 = vmatmul.mubr.msk.f32.vlgmr.msra.gmra.mxu1 %vm1598_vm3, %v5852_v10  ;;  %v6532_v58 = vpop.permute.xlu0 %6531  ;;  %v6592_v59 = vsel %vm1598_vm3, %v6584_v57, %v6530_v50  ;;  %v7484_v57 = vld [vmem:[%s10355_s8] ss:$0 sm:$0xff] }
 0xa06   : > { %8299 = vmatpush3.msra.mxu1 %v6615_v35  ;;  %v6593_v20 = vsel %vm1598_vm3, %v6585_v3, %v6532_v58 }
 0xa07   : > { %8300 = vmatprep.subr.mxu1 %v6614_v16 }
 0xa08   : > { %8301 = vmatpush3.msra.mxu1 %v6614_v16  ;;  %v6502_v31 = vpop.permute.xlu1 %6501 }
 0xa09   : > { %8302 = vmatprep.subr.mxu1 %v6613_v41  ;;  %v6504_v28 = vpop.permute.xlu0 %6503  ;;  %v6586_v49 = vsel %vm931_vm2, %v10451_v8, %v6502_v31 }
 0xa0a   : > { %8303 = vmatpush3.msra.mxu1 %v6613_v41  ;;  %v6587_v27 = vsel %vm931_vm2, %v10452_v14, %v6504_v28 }
 0xa0b   : > { %8304 = vmatprep.subr.mxu1 %v6612_v6 }
 0xa0c   : > { %8305 = vmatpush3.msra.mxu1 %v6612_v6  ;;  %v6534_v23 = vpop.permute.xlu1 %6533  ;;  %v10454_v6 = vld [vmem:[#allocation26_spill] sm:$0xff] }
 0xa0d   : > { %v6536_v13 = vpop.permute.xlu0 %6535  ;;  %v6594_v40 = vsel %vm1598_vm3, %v6586_v49, %v6534_v23 }
 0xa0e   : > { %v6595_v54 = vsel %vm1598_vm3, %v6587_v27, %v6536_v13 }
 0xa10   : > { %v6506_v26 = vpop.permute.xlu1 %6505 }
 0xa11   : > { %v6508_v15 = vpop.permute.xlu0 %6507  ;;  %v6588_v19 = vsel %vm931_vm2, %v10453_v38, %v6506_v26 }
 0xa14   : > { %v6538_v53 = vpop.permute.xlu1 %6537 }
 0xa15   : > { %v6540_v55 = vpop.permute.xlu0 %6539  ;;  %v6596_v10 = vsel %vm1598_vm3, %v6588_v19, %v6538_v53 }
 0xa18   : > { %v6510_v2 = vpop.permute.xlu1 %6509 }
 0xa1c   : > { %v6542_v17 = vpop.permute.xlu1 %6541 }
 0xaaa   : > { %v6009_v7 = vpop.f32.mrf.mxu0 }
 0xaab   : > { %6561 = vrot.lane.b32.xlu1 %v6009_v7, %s8565_s15  ;;  %v6589_v7 = vsel %vm931_vm2, %v10454_v6, %v6508_v15 }
 0xaac   : > { %v8255_v25 = vpop.f32.mrf.mxu0 }
 0xaad   : > { %v5930_v30 = vpop.f32.mrf.mxu1 }
 0xaae   : > { %6559 = vrot.lane.b32.xlu0 %v5930_v30, %s8565_s15  ;;  %v10455_v30 = vld [vmem:[#allocation22_spill] sm:$0xff] }
 0xaaf   : > { %v8248_v56 = vpop.f32.mrf.mxu1 }
 0xab0   : > { %v6590_v56 = vsel %vm931_vm2, %v10455_v30, %v6510_v2  ;;  %v8534_v30 = vld [vmem:[%s8652_s13 + $0x8] sm:$0xff] }
 0xab5   : > { %v6088_v60 = vpop.f32.mrf.mxu1 }
 0xab6   : > { %6563 = vrot.lane.b32.xlu0 %v6088_v60, %s8565_s15  ;;  %v6597_v60 = vsel %vm1598_vm3, %v6589_v7, %v6540_v55 }
 0xab7   : > { %v8262_v24 = vpop.f32.mrf.mxu1 }
 0xab9   : > { %v6167_v21 = vpop.f32.mrf.mxu0 }
 0xaba   : > { %6565 = vrot.lane.b32.xlu1 %v6167_v21, %s8565_s15  ;;  %v6598_v21 = vsel %vm1598_vm3, %v6590_v56, %v6542_v17 }
 0xabb   : > { %v8269_v29 = vpop.f32.mrf.mxu0 }
 0xabd   : > { %v6246_v5 = vpop.f32.mrf.mxu1 }
 0xabe   : > { %v6325_v45 = vpop.f32.mrf.mxu0  ;;  %6567 = vrot.lane.b32.xlu0 %v6246_v5, %s8565_s15  ;;  %v6751_v5 = vld [vmem:[%s10354_s7 + $0x10] sm:$0xff] }
 0xabf   : > { %6569 = vrot.lane.b32.xlu1 %v6325_v45, %s8565_s15  ;;  %v8276_v12 = vpop.f32.mrf.mxu1  ;;  %8320 = vmatprep.subr.mxu0 %v6751_v5  ;;  %v6750_v45 = vld [vmem:[%s10354_s7 + $0x8] sm:$0xff] }
 0xac0   : > { %v8283_v32 = vpop.f32.mrf.mxu0  ;;  %8321 = vmatpush3.msra.mxu0 %v6751_v5  ;;  %v6749_v12 = vld [vmem:[%s10354_s7] sm:$0xff] }
 0xac1   : > { %8322 = vmatprep.subr.mxu0 %v6750_v45  ;;  %v6904_v32 = vld [vmem:[%s10356_s9 + $0x38] sm:$0xff] }
 0xac2   : > { %v6483_v36 = vpop.f32.mrf.mxu0  ;;  %8323 = vmatpush3.msra.mxu0 %v6750_v45  ;;  %8338 = vmatprep.subr.mxu1 %v6904_v32 }
 0xac3   : > { %6573 = vrot.lane.b32.xlu1 %v6483_v36, %s8565_s15  ;;  %8324 = vmatprep.subr.mxu0 %v6749_v12  ;;  %v6903_v36 = vld [vmem:[%s10356_s9 + $0x30] sm:$0xff] }
 0xac4   : > { %v8297_v37 = vpop.f32.mrf.mxu0  ;;  %8325 = vmatpush3.msra.mxu0 %v6749_v12 }
 0xac5   : > { %v6404_v39 = vpop.f32.mrf.mxu1  ;;  %v6902_v37 = vld [vmem:[%s10356_s9 + $0x28] sm:$0xff] }
 0xac6   : > { %6571 = vrot.lane.b32.xlu0 %v6404_v39, %s8565_s15  ;;  %v6901_v39 = vld [vmem:[%s10356_s9 + $0x20] sm:$0xff] }
 0xac7   : > { %v8290_v43 = vpop.f32.mrf.mxu1 }
 0xb1d   : > { %v6562_v33 = vpop.permute.xlu1 %6561 }
 0xb1e   : > { %v6601_v63 = vsel %vm6599_vm4, %v6592_v59, %v6562_v33  ;;  %v6898_v33 = vld [vmem:[%s10356_s9 + $0x8] sm:$0xff] }
 0xb20   : > { %v6560_v4 = vpop.permute.xlu0 %6559 }
 0xb21   : > { %v6600_v61 = vsel %vm6599_vm4, %v6591_v11, %v6560_v4 }
 0xb22   : > { %8306 = vmatprep.mubr.msk.f32.mxu1 %vm539_vm0, %v6600_v61 }
 0xb23   : > { %8307 = vmatmul.mubr.msk.f32.vlgmr.msra.gmra.mxu1 %vm539_vm0, %v6601_v63 }
 0xb24   : > { %8339 = vmatpush3.msra.mxu1 %v6904_v32 }
 0xb25   : > { %8340 = vmatprep.subr.mxu1 %v6903_v36 }
 0xb26   : > { %8341 = vmatpush3.msra.mxu1 %v6903_v36 }
 0xb27   : > { %8342 = vmatprep.subr.mxu1 %v6902_v37 }
 0xb28   : > { %v6564_v9 = vpop.permute.xlu0 %6563  ;;  %8343 = vmatpush3.msra.mxu1 %v6902_v37 }
 0xb29   : > { %v6602_v0 = vsel %vm6599_vm4, %v6593_v20, %v6564_v9  ;;  %8344 = vmatprep.subr.mxu1 %v6901_v39 }
 0xb2a   : > { %8309 = vmatprep.mubr.msk.f32.mxu1 %vm539_vm0, %v6602_v0  ;;  %8345 = vmatpush3.msra.mxu1 %v6901_v39 }
 0xb2b   : > { %8346 = vmatprep.subr.mxu1 %v6900_v46 }
 0xb2c   : > { %v6566_v44 = vpop.permute.xlu1 %6565  ;;  %8347 = vmatpush3.msra.mxu1 %v6900_v46  ;;  %v8539_v46 = vld [vmem:[%s8652_s13 + $0x28] sm:$0xff] }
 0xb2d   : > { %v6603_v42 = vsel %vm6599_vm4, %v6594_v40, %v6566_v44  ;;  %8348 = vmatprep.subr.mxu1 %v6899_v62 }
 0xb2e   : > { %8310 = vmatmul.mubr.msk.f32.gmra.mxu1 %vm539_vm0, %v6603_v42 }
 0xb2f   : > { %8349 = vmatpush3.msra.mxu1 %v6899_v62 }
 0xb30   : > { %v6568_v34 = vpop.permute.xlu0 %6567  ;;  %8350 = vmatprep.subr.mxu1 %v6898_v33 }
 0xb31   : > { %v6604_v35 = vsel %vm6599_vm4, %v6595_v54, %v6568_v34  ;;  %v6570_v16 = vpop.permute.xlu1 %6569  ;;  %8351 = vmatpush3.msra.mxu1 %v6898_v33 }
 0xb32   : > { %v6605_v41 = vsel %vm6599_vm4, %v6596_v10, %v6570_v16  ;;  %8312 = vmatprep.mubr.msk.f32.mxu1 %vm539_vm0, %v6604_v35  ;;  %8352 = vmatprep.subr.mxu1 %v6897_v18 }
 0xb33   : > { %8313 = vmatmul.mubr.msk.f32.gmra.mxu1 %vm539_vm0, %v6605_v41  ;;  %v7493_v41 = vld [vmem:[%s10357_s10 + $0x1] ss:$0 sm:$0xff] }
 0xb34   : > { %8353 = vmatpush3.msra.mxu1 %v6897_v18 }
 0xb35   : > { %v6574_v25 = vpop.permute.xlu1 %6573 }
 0xb36   : > { %v6607_v22 = vsel %vm6599_vm4, %v6598_v21, %v6574_v25 }
 0xb38   : > { %v6572_v24 = vpop.permute.xlu0 %6571 }
 0xb39   : > { %v6606_v29 = vsel %vm6599_vm4, %v6597_v60, %v6572_v24  ;;  %v8535_v24 = vld [vmem:[%s8652_s13] sm:$0xff] }
 0xb3a   : > { %8315 = vmatprep.mubr.msk.f32.mxu1 %vm539_vm0, %v6606_v29 }
 0xb3b   : > { %8316 = vmatmul.mubr.msk.f32.gmra.mxu1 %vm539_vm0, %v6607_v22 }
 0xbe3   : > { %v8308_v43 = vpop.f32.mrf.mxu1 }
 0xbe4   : > { %v6716_v51 = vadd.f32 %v8308_v43, %v7475_v47  ;;  %v8536_v43 = vld [vmem:[%s8652_s13 + $0x18] sm:$0xff] }
 0xbe5   : > { %v6710_v48 = vpop.f32.mrf.mxu1 }
 0xbe6   : > { %v6711_v50 = vadd.f32 %v7475_v47, %v6710_v48 }
 0xbe8   : > { %8326 = vmatprep.mubr.msk.f32.mxu0 %vm539_vm0, %v6711_v50  ;;  %v8537_v50 = vld [vmem:[%s8652_s13 + $0x10] sm:$0xff] }
 0xbe9   : > { %8327 = vmatmul.mubr.msk.f32.vlgmr.msra.gmra.mxu0 %vm539_vm0, %v6716_v51 }
 0xbee   : > { %v8311_v31 = vpop.f32.mrf.mxu1 }
 0xbef   : > { %v6726_v58 = vadd.f32 %v8311_v31, %v7475_v47 }
 0xbf0   : > { %v6720_v52 = vpop.f32.mrf.mxu1 }
 0xbf1   : > { %v6721_v23 = vadd.f32 %v7475_v47, %v6720_v52 }
 0xbf3   : > { %v8314_v26 = vpop.f32.mrf.mxu1  ;;  %8329 = vmatprep.mubr.msk.f32.mxu0 %vm539_vm0, %v6721_v23 }
 0xbf4   : > { %8330 = vmatmul.mubr.msk.f32.gmra.mxu0 %vm539_vm0, %v6726_v58  ;;  %v6736_v13 = vadd.f32 %v8314_v26, %v7475_v47 }
 0xbf5   : > { %v6730_v28 = vpop.f32.mrf.mxu1 }
 0xbf6   : > { %v6731_v53 = vadd.f32 %v7475_v47, %v6730_v28 }
 0xbf8   : > { %8332 = vmatprep.mubr.msk.f32.mxu0 %vm539_vm0, %v6731_v53 }
 0xbf9   : > { %8333 = vmatmul.mubr.msk.f32.gmra.mxu0 %vm539_vm0, %v6736_v13 }
 0xbfb   : > { %v8317_v2 = vpop.f32.mrf.mxu1 }
 0xbfc   : > { %v6746_v55 = vadd.f32 %v8317_v2, %v7475_v47 }
 0xbfd   : > { %v6740_v15 = vpop.f32.mrf.mxu1 }
 0xbfe   : > { %v6741_v17 = vadd.f32 %v7475_v47, %v6740_v15  ;;  %v8538_v15 = vld [vmem:[%s8652_s13 + $0x20] sm:$0xff] }
 0xc00   : > { %8335 = vmatprep.mubr.msk.f32.mxu0 %vm539_vm0, %v6741_v17 }
 0xc01   : > { %8336 = vmatmul.mubr.msk.f32.gmra.mxu0 %vm539_vm0, %v6746_v55 }
 0xca9   : > { %v8328_v11 = vpop.f32.mrf.mxu0 }
 0xcaa   : > { %v6856_v4 = vadd.f32 %v8328_v11, %v7484_v57 }
 0xcab   : > { %v6850_v59 = vpop.f32.mrf.mxu0 }
 0xcac   : > { %v6851_v61 = vadd.f32 %v7484_v57, %v6850_v59  ;;  %v6890_v1 = vmax.f32 %v6856_v4, 0.0 }
 0xcae   : > { %v6889_v63 = vmax.f32 %v6851_v61, 0.0 }
 0xcb0   : > { %8354 = vmatprep.mubr.msk.f32.mxu1 %vm6909_vm5, %v6889_v63 }
 0xcb1   : > { %8355 = vmatmul.mubr.msk.f32.vlgmr.msra.gmra.mxu1 %vm6909_vm5, %v6890_v1 }
 0xcb4   : > { %v8331_v3 = vpop.f32.mrf.mxu0 }
 0xcb5   : > { %v6866_v20 = vadd.f32 %v8331_v3, %v7484_v57  ;;  %v8540_v3 = vld [vmem:[%s8652_s13 + $0x30] sm:$0xff] }
 0xcb6   : > { %v6860_v9 = vpop.f32.mrf.mxu0 }
 0xcb7   : > { %v6861_v0 = vadd.f32 %v7484_v57, %v6860_v9  ;;  %v6892_v40 = vmax.f32 %v6866_v20, 0.0 }
 0xcb9   : > { %v6891_v8 = vmax.f32 %v6861_v0, 0.0  ;;  %v8334_v49 = vpop.f32.mrf.mxu0  ;;  %v8541_v0 = vld [vmem:[%s8652_s13 + $0x38] sm:$0xff] }
 0xcba   : > { %v6876_v44 = vadd.f32 %v8334_v49, %v7484_v57 }
 0xcbb   : > { %v6870_v42 = vpop.f32.mrf.mxu0  ;;  %8357 = vmatprep.mubr.msk.f32.mxu1 %vm6909_vm5, %v6891_v8 }
 0xcbc   : > { %v6871_v14 = vadd.f32 %v7484_v57, %v6870_v42  ;;  %8358 = vmatmul.mubr.msk.f32.gmra.mxu1 %vm6909_vm5, %v6892_v40  ;;  %v6894_v38 = vmax.f32 %v6876_v44, 0.0 }
 0xcbe   : > { %v6893_v27 = vmax.f32 %v6871_v14, 0.0 }
 0xcc0   : > { %8360 = vmatprep.mubr.msk.f32.mxu1 %vm6909_vm5, %v6893_v27 }
 0xcc1   : > { %v8337_v19 = vpop.f32.mrf.mxu0  ;;  %8361 = vmatmul.mubr.msk.f32.gmra.mxu1 %vm6909_vm5, %v6894_v38 }
 0xcc2   : > { %v6886_v54 = vadd.f32 %v8337_v19, %v7484_v57 }
 0xcc3   : > { %v6880_v34 = vpop.f32.mrf.mxu0 }
 0xcc4   : > { %v6881_v10 = vadd.f32 %v7484_v57, %v6880_v34  ;;  %v6896_v16 = vmax.f32 %v6886_v54, 0.0 }
 0xcc6   : > { %v6895_v35 = vmax.f32 %v6881_v10, 0.0 }
 0xcc8   : > { %8363 = vmatprep.mubr.msk.f32.mxu1 %vm6909_vm5, %v6895_v35 }
 0xcc9   : > { %8364 = vmatmul.mubr.msk.f32.gmra.mxu1 %vm6909_vm5, %v6896_v16 }
 0xd71   : > { %v8356_v6 = vpop.f32.mrf.mxu1 }
 0xd72   : > { %v7006_v7 = vadd.f32 %v8356_v6, %v7493_v41 }
 0xd73   : > { %v7000_v25 = vpop.f32.mrf.mxu1 }
 0xd74   : > { %v10215_v56 = vadd.f32 %v8534_v30, %v7006_v7  ;;  %v7001_v60 = vadd.f32 %v7493_v41, %v7000_v25 }
 0xd76   : > { %v10218_v21 = vadd.f32 %v8535_v24, %v7001_v60  ;;  %v7050_v29 = vsel %vm539_vm0, %v10215_v56, 0.0  ;;  %v7072_v45 = vmul.f32 %v10215_v56, %v10215_v56 }
 0xd77   : > { %7051 = vadd.xlane.f32.xlu1 %v7050_v29 }
 0xd78   : > { %v7047_v22 = vsel %vm539_vm0, %v10218_v21, 0.0  ;;  %v7071_v5 = vmul.f32 %v10218_v21, %v10218_v21  ;;  %v7082_v36 = vsel %vm539_vm0, %v7072_v45, 0.0 }
 0xd79   : > { %7048 = vadd.xlane.f32.xlu0 %v7047_v22 }
 0xd7a   : > { %v7079_v12 = vsel %vm539_vm0, %v7071_v5, 0.0 }
 0xd7b   : > { %7080 = vadd.xlane.f32.xlu1 %v7079_v12 }
 0xd7c   : > { %v8359_v32 = vpop.f32.mrf.mxu1 }
 0xd7d   : > { %v7016_v37 = vadd.f32 %v8359_v32, %v7493_v41  ;;  %7083 = vadd.xlane.f32.xlu0 %v7082_v36 }
 0xd7e   : > { %v7010_v39 = vpop.f32.mrf.mxu1 }
 0xd7f   : > { %v10231_v47 = vadd.f32 %v8536_v43, %v7016_v37  ;;  %v7011_v48 = vadd.f32 %v7493_v41, %v7010_v39 }
 0xd81   : > { %v10234_v51 = vadd.f32 %v8537_v50, %v7011_v48  ;;  %v8362_v31 = vpop.f32.mrf.mxu1  ;;  %v7056_v52 = vsel %vm539_vm0, %v10231_v47, 0.0  ;;  %v7074_v2 = vmul.f32 %v10231_v47, %v10231_v47 }
 0xd82   : > { %7057 = vadd.xlane.f32.xlu0 %v7056_v52  ;;  %v7026_v28 = vadd.f32 %v8362_v31, %v7493_v41 }
 0xd83   : > { %v7020_v23 = vpop.f32.mrf.mxu1  ;;  %v7073_v58 = vmul.f32 %v10234_v51, %v10234_v51  ;;  %v7053_v13 = vsel %vm539_vm0, %v10234_v51, 0.0  ;;  %v7088_v18 = vsel %vm539_vm0, %v7074_v2, 0.0  ;;  %v10290_v2 = vld [vmem:[%s10357_s10 + $0x2] ss:$0 sm:$0xff] }
 0xd84   : > { %v7021_v26 = vadd.f32 %v7493_v41, %v7020_v23  ;;  %v10251_v62 = vadd.f32 %v8539_v46, %v7026_v28 }
 0xd85   : > { %v7085_v53 = vsel %vm539_vm0, %v7073_v58, 0.0 }
 0xd86   : > { %v10246_v17 = vadd.f32 %v8538_v15, %v7021_v26  ;;  %7086 = vadd.xlane.f32.xlu1 %v7085_v53  ;;  %7054 = vadd.xlane.f32.xlu0 %v7053_v13  ;;  %v7062_v63 = vsel %vm539_vm0, %v10251_v62, 0.0  ;;  %v7076_v1 = vmul.f32 %v10251_v62, %v10251_v62 }
 0xd88   : > { %v7059_v55 = vsel %vm539_vm0, %v10246_v17, 0.0  ;;  %v7075_v57 = vmul.f32 %v10246_v17, %v10246_v17  ;;  %v7094_v49 = vsel %vm539_vm0, %v7076_v1, 0.0 }
 0xd89   : > { %v8365_v33 = vpop.f32.mrf.mxu1 }
 0xd8a   : > { %7060 = vadd.xlane.f32.xlu1 %v7059_v55  ;;  %7089 = vadd.xlane.f32.xlu0 %v7088_v18  ;;  %v7036_v59 = vadd.f32 %v8365_v33, %v7493_v41  ;;  %v7091_v61 = vsel %vm539_vm0, %v7075_v57, 0.0  ;;  %v10296_v57 = vld [vmem:[%s10357_s10 + $0x3] ss:$0 sm:$0xff] }
 0xd8b   : > { %v7030_v11 = vpop.f32.mrf.mxu1 }
 0xd8c   : > { %v7031_v4 = vadd.f32 %v7493_v41, %v7030_v11  ;;  %v10267_v8 = vadd.f32 %v8541_v0, %v7036_v59 }
 0xd8e   : > { %v10262_v20 = vadd.f32 %v8540_v3, %v7031_v4  ;;  %7092 = vadd.xlane.f32.xlu1 %v7091_v61  ;;  %7063 = vadd.xlane.f32.xlu0 %v7062_v63  ;;  %v7068_v42 = vsel %vm539_vm0, %v10267_v8, 0.0  ;;  %v7078_v14 = vmul.f32 %v10267_v8, %v10267_v8 }
 0xd90   : > { %v7065_v9 = vsel %vm539_vm0, %v10262_v20, 0.0  ;;  %v7077_v40 = vmul.f32 %v10262_v20, %v10262_v20  ;;  %v7100_v27 = vsel %vm539_vm0, %v7078_v14, 0.0 }
 0xd92   : > { %7066 = vadd.xlane.f32.xlu1 %v7065_v9  ;;  %7095 = vadd.xlane.f32.xlu0 %v7094_v49  ;;  %v7097_v44 = vsel %vm539_vm0, %v7077_v40, 0.0 }
 0xd96   : > { %7098 = vadd.xlane.f32.xlu1 %v7097_v44  ;;  %7069 = vadd.xlane.f32.xlu0 %v7068_v42 }
 0xd9a   : > { %7101 = vadd.xlane.f32.xlu0 %v7100_v27 }
 0xe00   : > { %v7052_v38 = vpop.xlane.xlu1 %7051 }
 0xe01   : > { %v7104_v54 = vmul.f32 0.03125, %v7052_v38 }
 0xe02   : > { %v7049_v19 = vpop.xlane.xlu0 %7048 }
 0xe03   : > { %v7103_v34 = vmul.f32 0.03125, %v7049_v19  ;;  %v7120_v6 = vmul.f32 %v7104_v54, %v7104_v54  ;;  %v7136_v33 = vsub.f32 %v10215_v56, %v7104_v54 }
 0xe04   : > { %v7081_v10 = vpop.xlane.xlu1 %7080 }
 0xe05   : > { %v7119_v35 = vmul.f32 %v7103_v34, %v7103_v34  ;;  %v7111_v16 = vmul.f32 0.03125, %v7081_v10  ;;  %v7135_v58 = vsub.f32 %v10218_v21, %v7103_v34 }
 0xe06   : > { %v7084_v41 = vpop.xlane.xlu0 %7083 }
 0xe07   : > { %v7127_v7 = vsub.f32 %v7111_v16, %v7119_v35  ;;  %v7112_v25 = vmul.f32 0.03125, %v7084_v41 }
 0xe09   : > { %v7143_v30 = vadd.f32 1e-05, %v7127_v7  ;;  %v7128_v60 = vsub.f32 %v7112_v25, %v7120_v6 }
 0xe0b   : > { %8518 = vrsqrt.f32 %v7143_v30  ;;  %v7144_v24 = vadd.f32 1e-05, %v7128_v60  ;;  %v7058_v29 = vpop.xlane.xlu0 %7057 }
 0xe0c   : > { %v10278_v45 = vmul.f32 0.03125, %v7058_v29 }
 0xe0d   : > { %8520 = vrsqrt.f32 %v7144_v24 }
 0xe0e   : > { %v7122_v43 = vmul.f32 %v10278_v45, %v10278_v45  ;;  %v7138_v25 = vsub.f32 %v10231_v47, %v10278_v45 }
 0xe0f   : > { %v7087_v22 = vpop.xlane.xlu1 %7086  ;;  %v7055_v5 = vpop.xlane.xlu0 %7054 }
 0xe10   : > { %v7105_v12 = vmul.f32 0.03125, %v7055_v5  ;;  %v7113_v32 = vmul.f32 0.03125, %v7087_v22 }
 0xe12   : > { %v7121_v36 = vmul.f32 %v7105_v12, %v7105_v12  ;;  %v7137_v35 = vsub.f32 %v10234_v51, %v7105_v12 }
 0xe13   : > { %v7061_v37 = vpop.xlane.xlu1 %7060  ;;  %v7090_v39 = vpop.xlane.xlu0 %7089 }
 0xe14   : > { %v7129_v48 = vsub.f32 %v7113_v32, %v7121_v36  ;;  %v10282_v50 = vmul.f32 0.03125, %v7061_v37  ;;  %v7114_v31 = vmul.f32 0.03125, %v7090_v39 }
 0xe16   : > { %v7145_v52 = vadd.f32 1e-05, %v7129_v48  ;;  %v7130_v23 = vsub.f32 %v7114_v31, %v7122_v43  ;;  %v7123_v26 = vmul.f32 %v10282_v50, %v10282_v50  ;;  %v7139_v12 = vsub.f32 %v10246_v17, %v10282_v50 }
 0xe17   : > { %v7093_v28 = vpop.xlane.xlu1 %7092  ;;  %v7064_v53 = vpop.xlane.xlu0 %7063 }
 0xe18   : > { %v8519_v13 = vpop.eup %8518  ;;  %8522 = vrsqrt.f32 %v7145_v52  ;;  %v7146_v15 = vadd.f32 1e-05, %v7130_v23  ;;  %v7115_v55 = vmul.f32 0.03125, %v7093_v28  ;;  %v7108_v46 = vmul.f32 0.03125, %v7064_v53 }
 0xe19   : > { %v7159_v18 = vmul.f32 %v8519_v13, %v7135_v58 }
 0xe1a   : > { %v8521_v21 = vpop.eup %8520  ;;  %8524 = vrsqrt.f32 %v7146_v15  ;;  %v7131_v11 = vsub.f32 %v7115_v55, %v7123_v26  ;;  %v7124_v1 = vmul.f32 %v7108_v46, %v7108_v46  ;;  %v7140_v39 = vsub.f32 %v10251_v62, %v7108_v46 }
 0xe1b   : > { %v7171_v4 = vmul.f32 %v10290_v2, %v7159_v18  ;;  %v7160_v59 = vmul.f32 %v8521_v21, %v7136_v33  ;;  %v7067_v61 = vpop.xlane.xlu1 %7066  ;;  %v7096_v63 = vpop.xlane.xlu0 %7095 }
 0xe1c   : > { %v7147_v56 = vadd.f32 1e-05, %v7131_v11  ;;  %v7109_v3 = vmul.f32 0.03125, %v7067_v61  ;;  %v7116_v9 = vmul.f32 0.03125, %v7096_v63 }
 0xe1d   : > { %v7183_v0 = vadd.f32 %v10296_v57, %v7171_v4  ;;  %v7172_v49 = vmul.f32 %v10290_v2, %v7160_v59 }
 0xe1e   : > { %8526 = vrsqrt.f32 %v7147_v56  ;;  %v7132_v40 = vsub.f32 %v7116_v9, %v7124_v1  ;;  %v7125_v27 = vmul.f32 %v7109_v3, %v7109_v3  ;;  %v7141_v50 = vsub.f32 %v10262_v20, %v7109_v3 }
 0xe1f   : > { %7191 = vst.msk [vmem:[%s10303_s20] sm:$0xff] %vm539_vm0, %v7183_v0  ;;  %v7184_v44 = vadd.f32 %v10296_v57, %v7172_v49  ;;  %v7099_v42 = vpop.xlane.xlu1 %7098  ;;  %v7070_v14 = vpop.xlane.xlu0 %7069 }
 0xe20   : > { %v7148_v38 = vadd.f32 1e-05, %v7132_v40  ;;  %v7117_v19 = vmul.f32 0.03125, %v7099_v42  ;;  %v7110_v54 = vmul.f32 0.03125, %v7070_v14 }
 0xe21   : > { %7192 = vst.msk [vmem:[%s10303_s20 + $0x8] sm:$0xff] %vm539_vm0, %v7184_v44 }
 0xe22   : > { %8528 = vrsqrt.f32 %v7148_v38  ;;  %v7133_v34 = vsub.f32 %v7117_v19, %v7125_v27  ;;  %v7126_v41 = vmul.f32 %v7110_v54, %v7110_v54  ;;  %v7142_v26 = vsub.f32 %v10267_v8, %v7110_v54 }
 0xe23   : > { %v7102_v10 = vpop.xlane.xlu0 %7101 }
 0xe24   : > { %v7149_v16 = vadd.f32 1e-05, %v7133_v34  ;;  %v7118_v6 = vmul.f32 0.03125, %v7102_v10 }
 0xe25   : > { %v8523_v7 = vpop.eup %8522 }
 0xe26   : > { %v7161_v30 = vmul.f32 %v8523_v7, %v7137_v35  ;;  %8530 = vrsqrt.f32 %v7149_v16  ;;  %v7134_v60 = vsub.f32 %v7118_v6, %v7126_v41 }
 0xe27   : > { %v8525_v24 = vpop.eup %8524 }
 0xe28   : > { %v7173_v29 = vmul.f32 %v10290_v2, %v7161_v30  ;;  %v7162_v22 = vmul.f32 %v8525_v24, %v7138_v25  ;;  %v7150_v5 = vadd.f32 1e-05, %v7134_v60 }
 0xe2a   : > { %v7185_v51 = vadd.f32 %v10296_v57, %v7173_v29  ;;  %v7174_v32 = vmul.f32 %v10290_v2, %v7162_v22  ;;  %8532 = vrsqrt.f32 %v7150_v5 }
 0xe2b   : > { %v8527_v36 = vpop.eup %8526 }
 0xe2c   : > { %7193 = vst.msk [vmem:[%s10303_s20 + $0x10] sm:$0xff] %vm539_vm0, %v7185_v51  ;;  %v7186_v47 = vadd.f32 %v10296_v57, %v7174_v32  ;;  %v7163_v45 = vmul.f32 %v8527_v36, %v7139_v12 }
 0xe2e   : > { %7194 = vst.msk [vmem:[%s10303_s20 + $0x18] sm:$0xff] %vm539_vm0, %v7186_v47  ;;  %v7175_v37 = vmul.f32 %v10290_v2, %v7163_v45 }
 0xe2f   : > { %v8529_v43 = vpop.eup %8528 }
 0xe30   : > { %v7187_v17 = vadd.f32 %v10296_v57, %v7175_v37  ;;  %v7164_v48 = vmul.f32 %v8529_v43, %v7140_v39 }
 0xe32   : > { %7195 = vst.msk [vmem:[%s10303_s20 + $0x20] sm:$0xff] %vm539_vm0, %v7187_v17  ;;  %v7176_v31 = vmul.f32 %v10290_v2, %v7164_v48 }
 0xe33   : > { %v8531_v52 = vpop.eup %8530 }
 0xe34   : > { %v7188_v23 = vadd.f32 %v10296_v57, %v7176_v31  ;;  %v7165_v58 = vmul.f32 %v8531_v52, %v7141_v50 }
 0xe36   : > { %7196 = vst.msk [vmem:[%s10303_s20 + $0x28] sm:$0xff] %vm539_vm0, %v7188_v23  ;;  %v7177_v62 = vmul.f32 %v10290_v2, %v7165_v58 }
 0xe37   : > { %v8533_v28 = vpop.eup %8532 }
 0xe38   : > { %v7189_v53 = vadd.f32 %v10296_v57, %v7177_v62  ;;  %v7166_v13 = vmul.f32 %v8533_v28, %v7142_v26 }
 0xe3a   : > { %7197 = vst.msk [vmem:[%s10303_s20 + $0x30] sm:$0xff] %vm539_vm0, %v7189_v53  ;;  %v7178_v20 = vmul.f32 %v10290_v2, %v7166_v13 }
 0xe3c   : > { %v7190_v15 = vadd.f32 %v10296_v57, %v7178_v20 }
 0xe3e   : > { %7198 = vst.msk [vmem:[%s10303_s20 + $0x38] sm:$0xff] %vm539_vm0, %v7190_v15 }
 0xe3f PF: > { %s21_s17 = sadd.s32 1, %s8548_s17  }
 0xe40   : > { %p18_p5 = scmp.ge.s32.totalorder %s21_s17, 4  }
 0xe42   :  { %20 = sbr.rel (!%p18_p5) target bundleno = 1 (0x1), region = 103 }

</bundles_post_ra>
